<compile_context>
chip_gen: v5e
topology: v5e:2x2
jax: 0.10.0
libtpu: 0.0.40
codegen_flags: <defaults>
</compile_context>

<pallas_src>
import functools

import jax
import jax.numpy as jnp
from jax.experimental import pallas as pl
from jax.experimental.pallas import tpu as pltpu

_INV_SQRT2 = 0.7071067811865476
_LN_EPS = 1e-5
_PARAM_ORDER = ("w_in", "b_in", "ln_g", "ln_b", "w_h", "b_h", "w_out", "b_out")


def _gelu(x, approximate):
    if approximate:
        # tanh approximation -> transcendental on the EUP slot instead of the long
        # erf VALU polynomial (helps when the VPU, not the MXU, is the binding unit).
        return jax.nn.gelu(x, approximate=True)
    # exact erf GELU: matches torch.nn.GELU() default
    return 0.5 * x * (1.0 + jax.lax.erf(x * _INV_SQRT2))


def _layer_norm(h, gamma, beta):
    # One-pass mean / mean-of-squares: the two lane reductions are independent and a
    # full (h - mu) VALU pass is removed.  Biased variance + eps matches torch LayerNorm.
    mu = jnp.mean(h, axis=-1, keepdims=True)
    ms = jnp.mean(h * h, axis=-1, keepdims=True)
    var = jnp.maximum(ms - mu * mu, 0.0)
    return (h - mu) * jax.lax.rsqrt(var + _LN_EPS) * gamma + beta


def _mlp_trunk(x, w_in_ref, b_in_ref, ln_g_ref, ln_b_ref, w_h_ref, b_h_ref, approx_gelu):
    """Linear -> GELU -> 3x(LayerNorm -> Linear -> GELU).  f32 activations, MXU f32 accum."""
    h = jnp.dot(x.astype(w_in_ref.dtype), w_in_ref[...],
                preferred_element_type=jnp.float32) + b_in_ref[...]
    h = _gelu(h, approx_gelu)
    for i in range(3):  # static unroll over the 3 hidden blocks
        hn = _layer_norm(h, ln_g_ref[i], ln_b_ref[i])
        h = _gelu(jnp.dot(hn.astype(w_h_ref.dtype), w_h_ref[i],
                          preferred_element_type=jnp.float32) + b_h_ref[i], approx_gelu)
    return h


# ---------------------------------------------------------------------------
# Fused kernel: encoder MLP -> (mean, logvar) -> KL partial -> reparam -> decoder MLP
# One grid step processes one batch tile of `tm` rows.
# ---------------------------------------------------------------------------
def fused_vae_kernel(
        x_ref, noise_ref,
        # encoder params
        e_w_in, e_b_in, e_ln_g, e_ln_b, e_w_h, e_b_h, e_w_out, e_b_out,
        # decoder params
        d_w_in, d_b_in, d_ln_g, d_ln_b, d_w_h, d_b_h, d_w_out, d_b_out,
        # outputs
        y_ref, kl_ref,
        *, bottleneck, approx_gelu):
    # ----- encoder trunk -----
    h = _mlp_trunk(x_ref[...], e_w_in, e_b_in, e_ln_g, e_ln_b, e_w_h, e_b_h, approx_gelu)

    # Single merged (H, 2C) head: one lane-dense MXU pass; then split mean/logvar
    # on the f32 result (exactly equivalent to torch chunk(2, dim=-1)).
    enc = jnp.dot(h.astype(e_w_out.dtype), e_w_out[...],
                  preferred_element_type=jnp.float32) + e_b_out[...]
    mean = enc[:, :bottleneck]
    logvar = enc[:, bottleneck:]

    # ----- KL partial sum for this batch tile -----
    std = jnp.exp(0.5 * logvar)                 # exp(logvar) == std*std: one EUP exp
    kl_terms = 1.0 + logvar - mean * mean - std * std
    # Broadcast the tile's scalar sum into a full (8,128) vreg block: unmasked lane-dense
    # store; the wrapper reads element [b, 0, 0] per tile and does the tiny reduction.
    kl_ref[...] = jnp.full(kl_ref.shape, jnp.sum(kl_terms), dtype=kl_ref.dtype)

    # ----- reparameterize: z = mean + eps * std -----
    z = mean + noise_ref[...] * std

    # ----- decoder -----
    h2 = _mlp_trunk(z, d_w_in, d_b_in, d_ln_g, d_ln_b, d_w_h, d_b_h, approx_gelu)
    y = jnp.dot(h2.astype(d_w_out.dtype), d_w_out[...],
                preferred_element_type=jnp.float32) + d_b_out[...]
    y_ref[...] = y.astype(y_ref.dtype)


# ---------------------------------------------------------------------------
# Wrapper helpers
# ---------------------------------------------------------------------------
def _flatten(p):
    return tuple(p[k] for k in _PARAM_ORDER)


def _resident_spec(arr):
    """Whole-array VMEM block, constant index_map -> DMA'd once, resident across grid
    steps.  Single-buffered (Buffered(1)): the block never changes, so double-buffering
    it would only burn VMEM."""
    nd = arr.ndim
    idx_map = lambda b, _nd=nd: (0,) * _nd
    try:
        return pl.BlockSpec(arr.shape, idx_map, pipeline_mode=pl.Buffered(1))
    except (TypeError, AttributeError):
        # Older API without pipeline_mode: fall back to the default (double-buffered).
        return pl.BlockSpec(arr.shape, idx_map)


def _vmem_limit_bytes(default=48 * 1024 * 1024):
    """Generation-aware scoped-VMEM limit: ~75% of physical capacity, capped at 100 MiB.
    Fallback 48 MiB is safe on every generation (v7x has 64 MiB per TensorCore)."""
    try:
        cap = int(pltpu.get_tpu_info().vmem_capacity_bytes)
        return min((cap * 3) // 4, 100 * 1024 * 1024)
    except Exception:
        return default


def _pick_batch_tile(batch, max_tile, row_bytes, act_budget_bytes):
    """Largest sublane-aligned tile that divides the batch, fits the activation VMEM
    budget and (when possible) leaves >= 2 grid steps so both v7x TensorCores get work."""
    if batch >= 16:
        max_tile = min(max_tile, batch // 2)
    cands = [t for t in (512, 256, 128, 64, 32, 16, 8)
             if t <= max_tile and batch % t == 0]
    if not cands:
        return batch  # small / odd batch: one full-batch tile (block == full dims)
    for t in cands:
        if t * row_bytes <= act_budget_bytes:
            return t
    return cands[-1]


# ---------------------------------------------------------------------------
# Wrapper: grid/BlockSpec construction + final tiny KL reduction
# ---------------------------------------------------------------------------
@functools.partial(jax.jit,
                   static_argnames=("block_batch", "vmem_limit_bytes", "approx_gelu"))
def kl_vae_forward(x2, noise, enc_params, dec_params, *,
                   block_batch=512, vmem_limit_bytes=48 * 1024 * 1024,
                   approx_gelu=False):
    """x2: (B, L), noise: (B, C) f32 -> (decoded (B, L) f32, kl scalar f32)."""
    B, L = x2.shape
    C = noise.shape[1]
    H = enc_params["w_in"].shape[1]
    enc_flat = _flatten(enc_params)
    dec_flat = _flatten(dec_params)

    # --- trace-time VMEM planning (all static shapes) ---
    weight_bytes = sum(int(w.size) * w.dtype.itemsize for w in enc_flat + dec_flat)
    # per-batch-row bytes: double-buffered x / noise / y tiles + ~6 live f32 intermediates
    row_bytes = (2 * L * x2.dtype.itemsize + 2 * 4 * C + 2 * 4 * L
                 + 6 * 4 * max(L, H, 2 * C))
    act_budget = max(vmem_limit_bytes - weight_bytes - (1 << 20), 1 << 20)
    tm = _pick_batch_tile(B, block_batch, row_bytes, act_budget)
    nb = B // tm
    # TODO(synk): if weight_bytes alone exceeds ~70% of vmem_limit_bytes (large hidden_dim
    # on v7x's 64 MiB/TC), stream the six (H, H) hidden weights per layer instead
    # (memory_space=pl.ANY + manual double-buffered pltpu.make_async_copy) rather than
    # holding every weight VMEM-resident.

    in_specs = ([pl.BlockSpec((tm, L), lambda b: (b, 0)),     # x tile (streamed)
                 pl.BlockSpec((tm, C), lambda b: (b, 0))]     # noise tile (streamed)
                + [_resident_spec(w) for w in enc_flat]
                + [_resident_spec(w) for w in dec_flat])
    out_specs = [pl.BlockSpec((tm, L), lambda b: (b, 0)),          # decoded tile
                 pl.BlockSpec((1, 8, 128), lambda b: (b, 0, 0))]   # KL partial per tile
    out_shape = (jax.ShapeDtypeStruct((B, L), jnp.float32),
                 jax.ShapeDtypeStruct((nb, 8, 128), jnp.float32))

    grid_spec = pltpu.PrefetchScalarGridSpec(
        num_scalar_prefetch=0, grid=(nb,),
        in_specs=in_specs, out_specs=out_specs)

    y, kl_part = pl.pallas_call(
        functools.partial(fused_vae_kernel, bottleneck=C, approx_gelu=approx_gelu),
        out_shape=out_shape,
        grid_spec=grid_spec,
        compiler_params=pltpu.CompilerParams(
            dimension_semantics=("parallel",),
            vmem_limit_bytes=vmem_limit_bytes),
    )(x2, noise, *enc_flat, *dec_flat)

    # torch: -0.5 * sum(1 + logvar - mean^2 - exp(logvar), dim=1).mean()
    # dim=1 is the singleton channel axis for the MLP encoder, so .mean() divides
    # by B*C -> exactly -0.5 * sum_all / (B*C).
    kl = -0.5 * jnp.sum(kl_part[:, 0, 0]) / (B * C)
    return y, kl


# ---------------------------------------------------------------------------
# Parameter setup (deterministic, in-script)
# ---------------------------------------------------------------------------
def init_mlp_params(key, d_in, hidden, d_out, w_dtype=jnp.bfloat16):
    ks = jax.random.split(key, 6)

    def w(k, fan_in, fan_out):
        return (jax.random.normal(k, (fan_in, fan_out), jnp.float32)
                * (1.0 / jnp.sqrt(jnp.float32(fan_in)))).astype(w_dtype)

    def b(k, n):
        return jax.random.normal(k, (1, n), jnp.float32) * 0.01

    return {
        "w_in": w(ks[0], d_in, hidden),
        "b_in": b(ks[1], hidden),
        # LayerNorm affine params (torch init: weight=1, bias=0), kept in f32
        "ln_g": jnp.ones((3, 1, hidden), jnp.float32),
        "ln_b": jnp.zeros((3, 1, hidden), jnp.float32),
        "w_h": jnp.stack([w(k, hidden, hidden) for k in jax.random.split(ks[2], 3)]),
        "b_h": jnp.stack([b(k, hidden) for k in jax.random.split(ks[3], 3)]),
        "w_out": w(ks[4], hidden, d_out),
        "b_out": b(ks[5], d_out),
    }


class KLRegAutoencoderPallas:
    """Size-planning note: on v6e/v7x the MXU is 256 wide - prefer batch tiles >= 256 and
    hidden_dim / seq_length that are multiples of 256; on v5e, 128 suffices."""

    def __init__(self, in_channels, seq_length, bottleneck_channels, hidden_dim,
                 downsampling_factor, key, *, block_batch=512,
                 weight_dtype=jnp.bfloat16, gelu_approximate=False):
        assert in_channels == 1
        self.in_channels = in_channels
        self.seq_length = seq_length
        self.bottleneck = bottleneck_channels
        self.hidden_dim = hidden_dim
        self.downsampling_factor = downsampling_factor  # unused by the MLP path (as in torch)
        self.block_batch = block_batch
        self.gelu_approximate = gelu_approximate
        self.vmem_limit_bytes = _vmem_limit_bytes()

        k_enc, k_dec = jax.random.split(key)
        # Encoder head stays a single (H, 2C) Linear: the kernel splits mean/logvar
        # after one merged lane-dense dot (== torch chunk(2, dim=-1)).
        self.enc_params = init_mlp_params(k_enc, seq_length, hidden_dim,
                                          bottleneck_channels * 2, weight_dtype)
        self.dec_params = init_mlp_params(k_dec, bottleneck_channels, hidden_dim,
                                          seq_length, weight_dtype)

    def __call__(self, x, noise_key):
        """x: (batch, 1, seq_length) -> (decoded (batch, 1, seq_length), kl scalar)"""
        B = x.shape[0]
        # Cast the input to the (bf16) weight dtype in the wrapper: it would be cast
        # before the first dot anyway, and this halves the streamed x-tile DMA bytes.
        x2 = x.reshape(B, self.seq_length).astype(self.enc_params["w_in"].dtype)
        noise = jax.random.normal(noise_key, (B, self.bottleneck), jnp.float32)
        decoded, kl = kl_vae_forward(
            x2, noise, self.enc_params, self.dec_params,
            block_batch=self.block_batch,
            vmem_limit_bytes=self.vmem_limit_bytes,
            approx_gelu=self.gelu_approximate)
        return decoded.reshape(B, 1, self.seq_length), kl


if __name__ == "__main__":
    key = jax.random.PRNGKey(0)
    k_param, k_x, k_noise = jax.random.split(key, 3)

    # Small but hardware-friendly demo shapes: lane (last) dims are multiples of 128,
    # the batch is a multiple of the 8-row sublane tile, and the default tile logic
    # splits batch=32 into >= 2 grid steps (exercising the megacore path).
    batch, in_channels = 32, 1
    seq_length, bottleneck_channels, hidden_dim, downsampling_factor = 128, 64, 128, 2

    model = KLRegAutoencoderPallas(
        in_channels, seq_length, bottleneck_channels, hidden_dim,
        downsampling_factor, k_param)
    x = jax.random.normal(k_x, (batch, in_channels, seq_length), jnp.float32)

    decoded, kl_loss = model(x, k_noise)
    jax.block_until_ready((decoded, kl_loss))
    assert decoded.shape == (batch, in_channels, seq_length)
    assert kl_loss.shape == ()
    assert bool(jnp.all(jnp.isfinite(decoded)))
    assert bool(jnp.isfinite(kl_loss))
    print("KERNEL_OK")
</pallas_src>

<mosaic_0001>
module attributes {stable_mosaic.version = 11 : i64} {
  func.func @fused_vae_kernel(%arg0: i32, %arg1: memref<16x128xbf16, #tpu.memory_space<vmem>>, %arg2: memref<16x64xf32, #tpu.memory_space<vmem>>, %arg3: memref<128x128xbf16, #tpu.memory_space<vmem>>, %arg4: memref<1x128xf32, #tpu.memory_space<vmem>>, %arg5: memref<3x1x128xf32, #tpu.memory_space<vmem>>, %arg6: memref<3x1x128xf32, #tpu.memory_space<vmem>>, %arg7: memref<3x128x128xbf16, #tpu.memory_space<vmem>>, %arg8: memref<3x1x128xf32, #tpu.memory_space<vmem>>, %arg9: memref<128x128xbf16, #tpu.memory_space<vmem>>, %arg10: memref<1x128xf32, #tpu.memory_space<vmem>>, %arg11: memref<64x128xbf16, #tpu.memory_space<vmem>>, %arg12: memref<1x128xf32, #tpu.memory_space<vmem>>, %arg13: memref<3x1x128xf32, #tpu.memory_space<vmem>>, %arg14: memref<3x1x128xf32, #tpu.memory_space<vmem>>, %arg15: memref<3x128x128xbf16, #tpu.memory_space<vmem>>, %arg16: memref<3x1x128xf32, #tpu.memory_space<vmem>>, %arg17: memref<128x128xbf16, #tpu.memory_space<vmem>>, %arg18: memref<1x128xf32, #tpu.memory_space<vmem>>, %arg19: memref<16x128xf32, #tpu.memory_space<vmem>>, %arg20: memref<1x8x128xf32, #tpu.memory_space<vmem>>) attributes {dimension_semantics = [#tpu.dimension_semantics<parallel>], iteration_bounds = array<i64: 2>, scalar_prefetch = 0 : i64, scratch_operands = 0 : i64, tpu.core_type = #tpu.core_type<tc>, window_params = [{transform_indices = @transform_0, window_bounds = array<i64: 16, 128>}, {transform_indices = @transform_1, window_bounds = array<i64: 16, 64>}, {pipeline_mode = #tpu.pipeline_mode<synchronous>, transform_indices = @transform_2, window_bounds = array<i64: 128, 128>}, {pipeline_mode = #tpu.pipeline_mode<synchronous>, transform_indices = @transform_3, window_bounds = array<i64: 1, 128>}, {pipeline_mode = #tpu.pipeline_mode<synchronous>, transform_indices = @transform_4, window_bounds = array<i64: 3, 1, 128>}, {pipeline_mode = #tpu.pipeline_mode<synchronous>, transform_indices = @transform_5, window_bounds = array<i64: 3, 1, 128>}, {pipeline_mode = #tpu.pipeline_mode<synchronous>, transform_indices = @transform_6, window_bounds = array<i64: 3, 128, 128>}, {pipeline_mode = #tpu.pipeline_mode<synchronous>, transform_indices = @transform_7, window_bounds = array<i64: 3, 1, 128>}, {pipeline_mode = #tpu.pipeline_mode<synchronous>, transform_indices = @transform_8, window_bounds = array<i64: 128, 128>}, {pipeline_mode = #tpu.pipeline_mode<synchronous>, transform_indices = @transform_9, window_bounds = array<i64: 1, 128>}, {pipeline_mode = #tpu.pipeline_mode<synchronous>, transform_indices = @transform_10, window_bounds = array<i64: 64, 128>}, {pipeline_mode = #tpu.pipeline_mode<synchronous>, transform_indices = @transform_11, window_bounds = array<i64: 1, 128>}, {pipeline_mode = #tpu.pipeline_mode<synchronous>, transform_indices = @transform_12, window_bounds = array<i64: 3, 1, 128>}, {pipeline_mode = #tpu.pipeline_mode<synchronous>, transform_indices = @transform_13, window_bounds = array<i64: 3, 1, 128>}, {pipeline_mode = #tpu.pipeline_mode<synchronous>, transform_indices = @transform_14, window_bounds = array<i64: 3, 128, 128>}, {pipeline_mode = #tpu.pipeline_mode<synchronous>, transform_indices = @transform_15, window_bounds = array<i64: 3, 1, 128>}, {pipeline_mode = #tpu.pipeline_mode<synchronous>, transform_indices = @transform_16, window_bounds = array<i64: 128, 128>}, {pipeline_mode = #tpu.pipeline_mode<synchronous>, transform_indices = @transform_17, window_bounds = array<i64: 1, 128>}, {transform_indices = @transform_18, window_bounds = array<i64: 16, 128>}, {transform_indices = @transform_19, window_bounds = array<i64: 1, 8, 128>}]} {
    %c0 = arith.constant 0 : index
    %c0_0 = arith.constant 0 : index
    %0 = vector.load %arg1[%c0, %c0_0] : memref<16x128xbf16, #tpu.memory_space<vmem>>, vector<16x128xbf16>
    %c0_1 = arith.constant 0 : index
    %c0_2 = arith.constant 0 : index
    %1 = vector.load %arg3[%c0_1, %c0_2] : memref<128x128xbf16, #tpu.memory_space<vmem>>, vector<128x128xbf16>
    %cst = arith.constant dense<0.000000e+00> : vector<16x128xf32>
    %2 = tpu.matmul %0, %1, %cst {dimension_numbers = #tpu.dot_dimension_numbers<[1], [0], [0], [1], [0, 0, 1, 1], [], []>} : vector<16x128xbf16>, vector<128x128xbf16>, vector<16x128xf32> -> vector<16x128xf32>
    %c0_3 = arith.constant 0 : index
    %c0_4 = arith.constant 0 : index
    %3 = vector.load %arg4[%c0_3, %c0_4] : memref<1x128xf32, #tpu.memory_space<vmem>>, vector<1x128xf32>
    %4 = vector.broadcast %3 : vector<1x128xf32> to vector<16x128xf32>
    %5 = arith.addf %2, %4 : vector<16x128xf32>
    %cst_5 = arith.constant 5.000000e-01 : f32
    %6 = vector.broadcast %cst_5 : f32 to vector<16x128xf32>
    %7 = arith.mulf %6, %5 : vector<16x128xf32>
    %cst_6 = arith.constant 0.707106769 : f32
    %8 = vector.broadcast %cst_6 : f32 to vector<16x128xf32>
    %9 = arith.mulf %5, %8 : vector<16x128xf32>
    %10 = math.erf %9 : vector<16x128xf32>
    %cst_7 = arith.constant 1.000000e+00 : f32
    %11 = vector.broadcast %cst_7 : f32 to vector<16x128xf32>
    %12 = arith.addf %11, %10 : vector<16x128xf32>
    %13 = arith.mulf %7, %12 : vector<16x128xf32>
    %c0_8 = arith.constant 0 : index
    %c0_9 = arith.constant 0 : index
    %c0_10 = arith.constant 0 : index
    %14 = vector.load %arg5[%c0_8, %c0_9, %c0_10] : memref<3x1x128xf32, #tpu.memory_space<vmem>>, vector<1x1x128xf32>
    %15 = vector.shape_cast %14 : vector<1x1x128xf32> to vector<1x128xf32>
    %c0_11 = arith.constant 0 : index
    %c0_12 = arith.constant 0 : index
    %c0_13 = arith.constant 0 : index
    %16 = vector.load %arg6[%c0_11, %c0_12, %c0_13] : memref<3x1x128xf32, #tpu.memory_space<vmem>>, vector<1x1x128xf32>
    %17 = vector.shape_cast %16 : vector<1x1x128xf32> to vector<1x128xf32>
    %cst_14 = arith.constant dense<0.000000e+00> : vector<16xf32>
    %18 = vector.multi_reduction <add>, %13, %cst_14 [1] : vector<16x128xf32> to vector<16xf32>
    %19 = vector.shape_cast %18 : vector<16xf32> to vector<16x1xf32>
    %cst_15 = arith.constant 1.280000e+02 : f32
    %20 = vector.broadcast %cst_15 : f32 to vector<16x1xf32>
    %21 = arith.divf %19, %20 : vector<16x1xf32>
    %22 = arith.mulf %13, %13 : vector<16x128xf32>
    %cst_16 = arith.constant dense<0.000000e+00> : vector<16xf32>
    %23 = vector.multi_reduction <add>, %22, %cst_16 [1] : vector<16x128xf32> to vector<16xf32>
    %24 = vector.shape_cast %23 : vector<16xf32> to vector<16x1xf32>
    %cst_17 = arith.constant 1.280000e+02 : f32
    %25 = vector.broadcast %cst_17 : f32 to vector<16x1xf32>
    %26 = arith.divf %24, %25 : vector<16x1xf32>
    %27 = arith.mulf %21, %21 : vector<16x1xf32>
    %28 = arith.subf %26, %27 : vector<16x1xf32>
    %cst_18 = arith.constant 0.000000e+00 : f32
    %29 = vector.broadcast %cst_18 : f32 to vector<16x1xf32>
    %30 = arith.maximumf %28, %29 : vector<16x1xf32>
    %31 = vector.broadcast %21 : vector<16x1xf32> to vector<16x128xf32>
    %32 = arith.subf %13, %31 : vector<16x128xf32>
    %cst_19 = arith.constant 9.99999974E-6 : f32
    %33 = vector.broadcast %cst_19 : f32 to vector<16x1xf32>
    %34 = arith.addf %30, %33 : vector<16x1xf32>
    %35 = math.rsqrt %34 : vector<16x1xf32>
    %36 = vector.broadcast %35 : vector<16x1xf32> to vector<16x128xf32>
    %37 = arith.mulf %32, %36 : vector<16x128xf32>
    %38 = vector.broadcast %15 : vector<1x128xf32> to vector<16x128xf32>
    %39 = arith.mulf %37, %38 : vector<16x128xf32>
    %40 = vector.broadcast %17 : vector<1x128xf32> to vector<16x128xf32>
    %41 = arith.addf %39, %40 : vector<16x128xf32>
    %42 = arith.truncf %41 : vector<16x128xf32> to vector<16x128xbf16>
    %c0_20 = arith.constant 0 : index
    %c0_21 = arith.constant 0 : index
    %c0_22 = arith.constant 0 : index
    %43 = vector.load %arg7[%c0_20, %c0_21, %c0_22] : memref<3x128x128xbf16, #tpu.memory_space<vmem>>, vector<1x128x128xbf16>
    %44 = vector.shape_cast %43 : vector<1x128x128xbf16> to vector<128x128xbf16>
    %cst_23 = arith.constant dense<0.000000e+00> : vector<16x128xf32>
    %45 = tpu.matmul %42, %44, %cst_23 {dimension_numbers = #tpu.dot_dimension_numbers<[1], [0], [0], [1], [0, 0, 1, 1], [], []>} : vector<16x128xbf16>, vector<128x128xbf16>, vector<16x128xf32> -> vector<16x128xf32>
    %c0_24 = arith.constant 0 : index
    %c0_25 = arith.constant 0 : index
    %c0_26 = arith.constant 0 : index
    %46 = vector.load %arg8[%c0_24, %c0_25, %c0_26] : memref<3x1x128xf32, #tpu.memory_space<vmem>>, vector<1x1x128xf32>
    %47 = vector.shape_cast %46 : vector<1x1x128xf32> to vector<1x128xf32>
    %48 = vector.broadcast %47 : vector<1x128xf32> to vector<16x128xf32>
    %49 = arith.addf %45, %48 : vector<16x128xf32>
    %cst_27 = arith.constant 5.000000e-01 : f32
    %50 = vector.broadcast %cst_27 : f32 to vector<16x128xf32>
    %51 = arith.mulf %50, %49 : vector<16x128xf32>
    %cst_28 = arith.constant 0.707106769 : f32
    %52 = vector.broadcast %cst_28 : f32 to vector<16x128xf32>
    %53 = arith.mulf %49, %52 : vector<16x128xf32>
    %54 = math.erf %53 : vector<16x128xf32>
    %cst_29 = arith.constant 1.000000e+00 : f32
    %55 = vector.broadcast %cst_29 : f32 to vector<16x128xf32>
    %56 = arith.addf %55, %54 : vector<16x128xf32>
    %57 = arith.mulf %51, %56 : vector<16x128xf32>
    %c1 = arith.constant 1 : index
    %c0_30 = arith.constant 0 : index
    %c0_31 = arith.constant 0 : index
    %58 = vector.load %arg5[%c1, %c0_30, %c0_31] : memref<3x1x128xf32, #tpu.memory_space<vmem>>, vector<1x1x128xf32>
    %59 = vector.shape_cast %58 : vector<1x1x128xf32> to vector<1x128xf32>
    %c1_32 = arith.constant 1 : index
    %c0_33 = arith.constant 0 : index
    %c0_34 = arith.constant 0 : index
    %60 = vector.load %arg6[%c1_32, %c0_33, %c0_34] : memref<3x1x128xf32, #tpu.memory_space<vmem>>, vector<1x1x128xf32>
    %61 = vector.shape_cast %60 : vector<1x1x128xf32> to vector<1x128xf32>
    %cst_35 = arith.constant dense<0.000000e+00> : vector<16xf32>
    %62 = vector.multi_reduction <add>, %57, %cst_35 [1] : vector<16x128xf32> to vector<16xf32>
    %63 = vector.shape_cast %62 : vector<16xf32> to vector<16x1xf32>
    %cst_36 = arith.constant 1.280000e+02 : f32
    %64 = vector.broadcast %cst_36 : f32 to vector<16x1xf32>
    %65 = arith.divf %63, %64 : vector<16x1xf32>
    %66 = arith.mulf %57, %57 : vector<16x128xf32>
    %cst_37 = arith.constant dense<0.000000e+00> : vector<16xf32>
    %67 = vector.multi_reduction <add>, %66, %cst_37 [1] : vector<16x128xf32> to vector<16xf32>
    %68 = vector.shape_cast %67 : vector<16xf32> to vector<16x1xf32>
    %cst_38 = arith.constant 1.280000e+02 : f32
    %69 = vector.broadcast %cst_38 : f32 to vector<16x1xf32>
    %70 = arith.divf %68, %69 : vector<16x1xf32>
    %71 = arith.mulf %65, %65 : vector<16x1xf32>
    %72 = arith.subf %70, %71 : vector<16x1xf32>
    %cst_39 = arith.constant 0.000000e+00 : f32
    %73 = vector.broadcast %cst_39 : f32 to vector<16x1xf32>
    %74 = arith.maximumf %72, %73 : vector<16x1xf32>
    %75 = vector.broadcast %65 : vector<16x1xf32> to vector<16x128xf32>
    %76 = arith.subf %57, %75 : vector<16x128xf32>
    %cst_40 = arith.constant 9.99999974E-6 : f32
    %77 = vector.broadcast %cst_40 : f32 to vector<16x1xf32>
    %78 = arith.addf %74, %77 : vector<16x1xf32>
    %79 = math.rsqrt %78 : vector<16x1xf32>
    %80 = vector.broadcast %79 : vector<16x1xf32> to vector<16x128xf32>
    %81 = arith.mulf %76, %80 : vector<16x128xf32>
    %82 = vector.broadcast %59 : vector<1x128xf32> to vector<16x128xf32>
    %83 = arith.mulf %81, %82 : vector<16x128xf32>
    %84 = vector.broadcast %61 : vector<1x128xf32> to vector<16x128xf32>
    %85 = arith.addf %83, %84 : vector<16x128xf32>
    %86 = arith.truncf %85 : vector<16x128xf32> to vector<16x128xbf16>
    %c1_41 = arith.constant 1 : index
    %c0_42 = arith.constant 0 : index
    %c0_43 = arith.constant 0 : index
    %87 = vector.load %arg7[%c1_41, %c0_42, %c0_43] : memref<3x128x128xbf16, #tpu.memory_space<vmem>>, vector<1x128x128xbf16>
    %88 = vector.shape_cast %87 : vector<1x128x128xbf16> to vector<128x128xbf16>
    %cst_44 = arith.constant dense<0.000000e+00> : vector<16x128xf32>
    %89 = tpu.matmul %86, %88, %cst_44 {dimension_numbers = #tpu.dot_dimension_numbers<[1], [0], [0], [1], [0, 0, 1, 1], [], []>} : vector<16x128xbf16>, vector<128x128xbf16>, vector<16x128xf32> -> vector<16x128xf32>
    %c1_45 = arith.constant 1 : index
    %c0_46 = arith.constant 0 : index
    %c0_47 = arith.constant 0 : index
    %90 = vector.load %arg8[%c1_45, %c0_46, %c0_47] : memref<3x1x128xf32, #tpu.memory_space<vmem>>, vector<1x1x128xf32>
    %91 = vector.shape_cast %90 : vector<1x1x128xf32> to vector<1x128xf32>
    %92 = vector.broadcast %91 : vector<1x128xf32> to vector<16x128xf32>
    %93 = arith.addf %89, %92 : vector<16x128xf32>
    %cst_48 = arith.constant 5.000000e-01 : f32
    %94 = vector.broadcast %cst_48 : f32 to vector<16x128xf32>
    %95 = arith.mulf %94, %93 : vector<16x128xf32>
    %cst_49 = arith.constant 0.707106769 : f32
    %96 = vector.broadcast %cst_49 : f32 to vector<16x128xf32>
    %97 = arith.mulf %93, %96 : vector<16x128xf32>
    %98 = math.erf %97 : vector<16x128xf32>
    %cst_50 = arith.constant 1.000000e+00 : f32
    %99 = vector.broadcast %cst_50 : f32 to vector<16x128xf32>
    %100 = arith.addf %99, %98 : vector<16x128xf32>
    %101 = arith.mulf %95, %100 : vector<16x128xf32>
    %c2 = arith.constant 2 : index
    %c0_51 = arith.constant 0 : index
    %c0_52 = arith.constant 0 : index
    %102 = vector.load %arg5[%c2, %c0_51, %c0_52] : memref<3x1x128xf32, #tpu.memory_space<vmem>>, vector<1x1x128xf32>
    %103 = vector.shape_cast %102 : vector<1x1x128xf32> to vector<1x128xf32>
    %c2_53 = arith.constant 2 : index
    %c0_54 = arith.constant 0 : index
    %c0_55 = arith.constant 0 : index
    %104 = vector.load %arg6[%c2_53, %c0_54, %c0_55] : memref<3x1x128xf32, #tpu.memory_space<vmem>>, vector<1x1x128xf32>
    %105 = vector.shape_cast %104 : vector<1x1x128xf32> to vector<1x128xf32>
    %cst_56 = arith.constant dense<0.000000e+00> : vector<16xf32>
    %106 = vector.multi_reduction <add>, %101, %cst_56 [1] : vector<16x128xf32> to vector<16xf32>
    %107 = vector.shape_cast %106 : vector<16xf32> to vector<16x1xf32>
    %cst_57 = arith.constant 1.280000e+02 : f32
    %108 = vector.broadcast %cst_57 : f32 to vector<16x1xf32>
    %109 = arith.divf %107, %108 : vector<16x1xf32>
    %110 = arith.mulf %101, %101 : vector<16x128xf32>
    %cst_58 = arith.constant dense<0.000000e+00> : vector<16xf32>
    %111 = vector.multi_reduction <add>, %110, %cst_58 [1] : vector<16x128xf32> to vector<16xf32>
    %112 = vector.shape_cast %111 : vector<16xf32> to vector<16x1xf32>
    %cst_59 = arith.constant 1.280000e+02 : f32
    %113 = vector.broadcast %cst_59 : f32 to vector<16x1xf32>
    %114 = arith.divf %112, %113 : vector<16x1xf32>
    %115 = arith.mulf %109, %109 : vector<16x1xf32>
    %116 = arith.subf %114, %115 : vector<16x1xf32>
    %cst_60 = arith.constant 0.000000e+00 : f32
    %117 = vector.broadcast %cst_60 : f32 to vector<16x1xf32>
    %118 = arith.maximumf %116, %117 : vector<16x1xf32>
    %119 = vector.broadcast %109 : vector<16x1xf32> to vector<16x128xf32>
    %120 = arith.subf %101, %119 : vector<16x128xf32>
    %cst_61 = arith.constant 9.99999974E-6 : f32
    %121 = vector.broadcast %cst_61 : f32 to vector<16x1xf32>
    %122 = arith.addf %118, %121 : vector<16x1xf32>
    %123 = math.rsqrt %122 : vector<16x1xf32>
    %124 = vector.broadcast %123 : vector<16x1xf32> to vector<16x128xf32>
    %125 = arith.mulf %120, %124 : vector<16x128xf32>
    %126 = vector.broadcast %103 : vector<1x128xf32> to vector<16x128xf32>
    %127 = arith.mulf %125, %126 : vector<16x128xf32>
    %128 = vector.broadcast %105 : vector<1x128xf32> to vector<16x128xf32>
    %129 = arith.addf %127, %128 : vector<16x128xf32>
    %130 = arith.truncf %129 : vector<16x128xf32> to vector<16x128xbf16>
    %c2_62 = arith.constant 2 : index
    %c0_63 = arith.constant 0 : index
    %c0_64 = arith.constant 0 : index
    %131 = vector.load %arg7[%c2_62, %c0_63, %c0_64] : memref<3x128x128xbf16, #tpu.memory_space<vmem>>, vector<1x128x128xbf16>
    %132 = vector.shape_cast %131 : vector<1x128x128xbf16> to vector<128x128xbf16>
    %cst_65 = arith.constant dense<0.000000e+00> : vector<16x128xf32>
    %133 = tpu.matmul %130, %132, %cst_65 {dimension_numbers = #tpu.dot_dimension_numbers<[1], [0], [0], [1], [0, 0, 1, 1], [], []>} : vector<16x128xbf16>, vector<128x128xbf16>, vector<16x128xf32> -> vector<16x128xf32>
    %c2_66 = arith.constant 2 : index
    %c0_67 = arith.constant 0 : index
    %c0_68 = arith.constant 0 : index
    %134 = vector.load %arg8[%c2_66, %c0_67, %c0_68] : memref<3x1x128xf32, #tpu.memory_space<vmem>>, vector<1x1x128xf32>
    %135 = vector.shape_cast %134 : vector<1x1x128xf32> to vector<1x128xf32>
    %136 = vector.broadcast %135 : vector<1x128xf32> to vector<16x128xf32>
    %137 = arith.addf %133, %136 : vector<16x128xf32>
    %cst_69 = arith.constant 5.000000e-01 : f32
    %138 = vector.broadcast %cst_69 : f32 to vector<16x128xf32>
    %139 = arith.mulf %138, %137 : vector<16x128xf32>
    %cst_70 = arith.constant 0.707106769 : f32
    %140 = vector.broadcast %cst_70 : f32 to vector<16x128xf32>
    %141 = arith.mulf %137, %140 : vector<16x128xf32>
    %142 = math.erf %141 : vector<16x128xf32>
    %cst_71 = arith.constant 1.000000e+00 : f32
    %143 = vector.broadcast %cst_71 : f32 to vector<16x128xf32>
    %144 = arith.addf %143, %142 : vector<16x128xf32>
    %145 = arith.mulf %139, %144 : vector<16x128xf32>
    %146 = arith.truncf %145 : vector<16x128xf32> to vector<16x128xbf16>
    %c0_72 = arith.constant 0 : index
    %c0_73 = arith.constant 0 : index
    %147 = vector.load %arg9[%c0_72, %c0_73] : memref<128x128xbf16, #tpu.memory_space<vmem>>, vector<128x128xbf16>
    %cst_74 = arith.constant dense<0.000000e+00> : vector<16x128xf32>
    %148 = tpu.matmul %146, %147, %cst_74 {dimension_numbers = #tpu.dot_dimension_numbers<[1], [0], [0], [1], [0, 0, 1, 1], [], []>} : vector<16x128xbf16>, vector<128x128xbf16>, vector<16x128xf32> -> vector<16x128xf32>
    %c0_75 = arith.constant 0 : index
    %c0_76 = arith.constant 0 : index
    %149 = vector.load %arg10[%c0_75, %c0_76] : memref<1x128xf32, #tpu.memory_space<vmem>>, vector<1x128xf32>
    %150 = vector.broadcast %149 : vector<1x128xf32> to vector<16x128xf32>
    %151 = arith.addf %148, %150 : vector<16x128xf32>
    %152 = vector.extract_strided_slice %151 {offsets = [0, 0], sizes = [16, 64], strides = [1, 1]} : vector<16x128xf32> to vector<16x64xf32>
    %153 = vector.extract_strided_slice %151 {offsets = [0, 64], sizes = [16, 64], strides = [1, 1]} : vector<16x128xf32> to vector<16x64xf32>
    %cst_77 = arith.constant 5.000000e-01 : f32
    %154 = vector.broadcast %cst_77 : f32 to vector<16x64xf32>
    %155 = arith.mulf %154, %153 : vector<16x64xf32>
    %156 = math.exp %155 : vector<16x64xf32>
    %cst_78 = arith.constant 1.000000e+00 : f32
    %157 = vector.broadcast %cst_78 : f32 to vector<16x64xf32>
    %158 = arith.addf %157, %153 : vector<16x64xf32>
    %159 = arith.mulf %152, %152 : vector<16x64xf32>
    %160 = arith.subf %158, %159 : vector<16x64xf32>
    %161 = arith.mulf %156, %156 : vector<16x64xf32>
    %162 = arith.subf %160, %161 : vector<16x64xf32>
    %163 = vector.shape_cast %162 : vector<16x64xf32> to vector<1x16x64xf32>
    %cst_79 = arith.constant dense<0.000000e+00> : vector<1xf32>
    %164 = vector.multi_reduction <add>, %163, %cst_79 [1, 2] : vector<1x16x64xf32> to vector<1xf32>
    %165 = vector.shape_cast %164 : vector<1xf32> to vector<1x1x1xf32>
    %166 = vector.extract %165[0, 0, 0] : f32 from vector<1x1x1xf32>
    %167 = vector.broadcast %166 : f32 to vector<1x8x128xf32>
    %c0_80 = arith.constant 0 : index
    %c0_81 = arith.constant 0 : index
    %c0_82 = arith.constant 0 : index
    %168 = vector.load %arg20[%c0_80, %c0_81, %c0_82] : memref<1x8x128xf32, #tpu.memory_space<vmem>>, vector<1x8x128xf32>
    tpu.vector_store %arg20[%c0_80, %c0_81, %c0_82], %167 {strides = array<i32>} : memref<1x8x128xf32, #tpu.memory_space<vmem>>, vector<1x8x128xf32>,
    %c0_83 = arith.constant 0 : index
    %c0_84 = arith.constant 0 : index
    %169 = vector.load %arg2[%c0_83, %c0_84] : memref<16x64xf32, #tpu.memory_space<vmem>>, vector<16x64xf32>
    %170 = arith.mulf %169, %156 : vector<16x64xf32>
    %171 = arith.addf %152, %170 : vector<16x64xf32>
    %172 = arith.truncf %171 : vector<16x64xf32> to vector<16x64xbf16>
    %c0_85 = arith.constant 0 : index
    %c0_86 = arith.constant 0 : index
    %173 = vector.load %arg11[%c0_85, %c0_86] : memref<64x128xbf16, #tpu.memory_space<vmem>>, vector<64x128xbf16>
    %cst_87 = arith.constant dense<0.000000e+00> : vector<16x128xf32>
    %174 = tpu.matmul %172, %173, %cst_87 {dimension_numbers = #tpu.dot_dimension_numbers<[1], [0], [0], [1], [0, 0, 1, 1], [], []>} : vector<16x64xbf16>, vector<64x128xbf16>, vector<16x128xf32> -> vector<16x128xf32>
    %c0_88 = arith.constant 0 : index
    %c0_89 = arith.constant 0 : index
    %175 = vector.load %arg12[%c0_88, %c0_89] : memref<1x128xf32, #tpu.memory_space<vmem>>, vector<1x128xf32>
    %176 = vector.broadcast %175 : vector<1x128xf32> to vector<16x128xf32>
    %177 = arith.addf %174, %176 : vector<16x128xf32>
    %cst_90 = arith.constant 5.000000e-01 : f32
    %178 = vector.broadcast %cst_90 : f32 to vector<16x128xf32>
    %179 = arith.mulf %178, %177 : vector<16x128xf32>
    %cst_91 = arith.constant 0.707106769 : f32
    %180 = vector.broadcast %cst_91 : f32 to vector<16x128xf32>
    %181 = arith.mulf %177, %180 : vector<16x128xf32>
    %182 = math.erf %181 : vector<16x128xf32>
    %cst_92 = arith.constant 1.000000e+00 : f32
    %183 = vector.broadcast %cst_92 : f32 to vector<16x128xf32>
    %184 = arith.addf %183, %182 : vector<16x128xf32>
    %185 = arith.mulf %179, %184 : vector<16x128xf32>
    %c0_93 = arith.constant 0 : index
    %c0_94 = arith.constant 0 : index
    %c0_95 = arith.constant 0 : index
    %186 = vector.load %arg13[%c0_93, %c0_94, %c0_95] : memref<3x1x128xf32, #tpu.memory_space<vmem>>, vector<1x1x128xf32>
    %187 = vector.shape_cast %186 : vector<1x1x128xf32> to vector<1x128xf32>
    %c0_96 = arith.constant 0 : index
    %c0_97 = arith.constant 0 : index
    %c0_98 = arith.constant 0 : index
    %188 = vector.load %arg14[%c0_96, %c0_97, %c0_98] : memref<3x1x128xf32, #tpu.memory_space<vmem>>, vector<1x1x128xf32>
    %189 = vector.shape_cast %188 : vector<1x1x128xf32> to vector<1x128xf32>
    %cst_99 = arith.constant dense<0.000000e+00> : vector<16xf32>
    %190 = vector.multi_reduction <add>, %185, %cst_99 [1] : vector<16x128xf32> to vector<16xf32>
    %191 = vector.shape_cast %190 : vector<16xf32> to vector<16x1xf32>
    %cst_100 = arith.constant 1.280000e+02 : f32
    %192 = vector.broadcast %cst_100 : f32 to vector<16x1xf32>
    %193 = arith.divf %191, %192 : vector<16x1xf32>
    %194 = arith.mulf %185, %185 : vector<16x128xf32>
    %cst_101 = arith.constant dense<0.000000e+00> : vector<16xf32>
    %195 = vector.multi_reduction <add>, %194, %cst_101 [1] : vector<16x128xf32> to vector<16xf32>
    %196 = vector.shape_cast %195 : vector<16xf32> to vector<16x1xf32>
    %cst_102 = arith.constant 1.280000e+02 : f32
    %197 = vector.broadcast %cst_102 : f32 to vector<16x1xf32>
    %198 = arith.divf %196, %197 : vector<16x1xf32>
    %199 = arith.mulf %193, %193 : vector<16x1xf32>
    %200 = arith.subf %198, %199 : vector<16x1xf32>
    %cst_103 = arith.constant 0.000000e+00 : f32
    %201 = vector.broadcast %cst_103 : f32 to vector<16x1xf32>
    %202 = arith.maximumf %200, %201 : vector<16x1xf32>
    %203 = vector.broadcast %193 : vector<16x1xf32> to vector<16x128xf32>
    %204 = arith.subf %185, %203 : vector<16x128xf32>
    %cst_104 = arith.constant 9.99999974E-6 : f32
    %205 = vector.broadcast %cst_104 : f32 to vector<16x1xf32>
    %206 = arith.addf %202, %205 : vector<16x1xf32>
    %207 = math.rsqrt %206 : vector<16x1xf32>
    %208 = vector.broadcast %207 : vector<16x1xf32> to vector<16x128xf32>
    %209 = arith.mulf %204, %208 : vector<16x128xf32>
    %210 = vector.broadcast %187 : vector<1x128xf32> to vector<16x128xf32>
    %211 = arith.mulf %209, %210 : vector<16x128xf32>
    %212 = vector.broadcast %189 : vector<1x128xf32> to vector<16x128xf32>
    %213 = arith.addf %211, %212 : vector<16x128xf32>
    %214 = arith.truncf %213 : vector<16x128xf32> to vector<16x128xbf16>
    %c0_105 = arith.constant 0 : index
    %c0_106 = arith.constant 0 : index
    %c0_107 = arith.constant 0 : index
    %215 = vector.load %arg15[%c0_105, %c0_106, %c0_107] : memref<3x128x128xbf16, #tpu.memory_space<vmem>>, vector<1x128x128xbf16>
    %216 = vector.shape_cast %215 : vector<1x128x128xbf16> to vector<128x128xbf16>
    %cst_108 = arith.constant dense<0.000000e+00> : vector<16x128xf32>
    %217 = tpu.matmul %214, %216, %cst_108 {dimension_numbers = #tpu.dot_dimension_numbers<[1], [0], [0], [1], [0, 0, 1, 1], [], []>} : vector<16x128xbf16>, vector<128x128xbf16>, vector<16x128xf32> -> vector<16x128xf32>
    %c0_109 = arith.constant 0 : index
    %c0_110 = arith.constant 0 : index
    %c0_111 = arith.constant 0 : index
    %218 = vector.load %arg16[%c0_109, %c0_110, %c0_111] : memref<3x1x128xf32, #tpu.memory_space<vmem>>, vector<1x1x128xf32>
    %219 = vector.shape_cast %218 : vector<1x1x128xf32> to vector<1x128xf32>
    %220 = vector.broadcast %219 : vector<1x128xf32> to vector<16x128xf32>
    %221 = arith.addf %217, %220 : vector<16x128xf32>
    %cst_112 = arith.constant 5.000000e-01 : f32
    %222 = vector.broadcast %cst_112 : f32 to vector<16x128xf32>
    %223 = arith.mulf %222, %221 : vector<16x128xf32>
    %cst_113 = arith.constant 0.707106769 : f32
    %224 = vector.broadcast %cst_113 : f32 to vector<16x128xf32>
    %225 = arith.mulf %221, %224 : vector<16x128xf32>
    %226 = math.erf %225 : vector<16x128xf32>
    %cst_114 = arith.constant 1.000000e+00 : f32
    %227 = vector.broadcast %cst_114 : f32 to vector<16x128xf32>
    %228 = arith.addf %227, %226 : vector<16x128xf32>
    %229 = arith.mulf %223, %228 : vector<16x128xf32>
    %c1_115 = arith.constant 1 : index
    %c0_116 = arith.constant 0 : index
    %c0_117 = arith.constant 0 : index
    %230 = vector.load %arg13[%c1_115, %c0_116, %c0_117] : memref<3x1x128xf32, #tpu.memory_space<vmem>>, vector<1x1x128xf32>
    %231 = vector.shape_cast %230 : vector<1x1x128xf32> to vector<1x128xf32>
    %c1_118 = arith.constant 1 : index
    %c0_119 = arith.constant 0 : index
    %c0_120 = arith.constant 0 : index
    %232 = vector.load %arg14[%c1_118, %c0_119, %c0_120] : memref<3x1x128xf32, #tpu.memory_space<vmem>>, vector<1x1x128xf32>
    %233 = vector.shape_cast %232 : vector<1x1x128xf32> to vector<1x128xf32>
    %cst_121 = arith.constant dense<0.000000e+00> : vector<16xf32>
    %234 = vector.multi_reduction <add>, %229, %cst_121 [1] : vector<16x128xf32> to vector<16xf32>
    %235 = vector.shape_cast %234 : vector<16xf32> to vector<16x1xf32>
    %cst_122 = arith.constant 1.280000e+02 : f32
    %236 = vector.broadcast %cst_122 : f32 to vector<16x1xf32>
    %237 = arith.divf %235, %236 : vector<16x1xf32>
    %238 = arith.mulf %229, %229 : vector<16x128xf32>
    %cst_123 = arith.constant dense<0.000000e+00> : vector<16xf32>
    %239 = vector.multi_reduction <add>, %238, %cst_123 [1] : vector<16x128xf32> to vector<16xf32>
    %240 = vector.shape_cast %239 : vector<16xf32> to vector<16x1xf32>
    %cst_124 = arith.constant 1.280000e+02 : f32
    %241 = vector.broadcast %cst_124 : f32 to vector<16x1xf32>
    %242 = arith.divf %240, %241 : vector<16x1xf32>
    %243 = arith.mulf %237, %237 : vector<16x1xf32>
    %244 = arith.subf %242, %243 : vector<16x1xf32>
    %cst_125 = arith.constant 0.000000e+00 : f32
    %245 = vector.broadcast %cst_125 : f32 to vector<16x1xf32>
    %246 = arith.maximumf %244, %245 : vector<16x1xf32>
    %247 = vector.broadcast %237 : vector<16x1xf32> to vector<16x128xf32>
    %248 = arith.subf %229, %247 : vector<16x128xf32>
    %cst_126 = arith.constant 9.99999974E-6 : f32
    %249 = vector.broadcast %cst_126 : f32 to vector<16x1xf32>
    %250 = arith.addf %246, %249 : vector<16x1xf32>
    %251 = math.rsqrt %250 : vector<16x1xf32>
    %252 = vector.broadcast %251 : vector<16x1xf32> to vector<16x128xf32>
    %253 = arith.mulf %248, %252 : vector<16x128xf32>
    %254 = vector.broadcast %231 : vector<1x128xf32> to vector<16x128xf32>
    %255 = arith.mulf %253, %254 : vector<16x128xf32>
    %256 = vector.broadcast %233 : vector<1x128xf32> to vector<16x128xf32>
    %257 = arith.addf %255, %256 : vector<16x128xf32>
    %258 = arith.truncf %257 : vector<16x128xf32> to vector<16x128xbf16>
    %c1_127 = arith.constant 1 : index
    %c0_128 = arith.constant 0 : index
    %c0_129 = arith.constant 0 : index
    %259 = vector.load %arg15[%c1_127, %c0_128, %c0_129] : memref<3x128x128xbf16, #tpu.memory_space<vmem>>, vector<1x128x128xbf16>
    %260 = vector.shape_cast %259 : vector<1x128x128xbf16> to vector<128x128xbf16>
    %cst_130 = arith.constant dense<0.000000e+00> : vector<16x128xf32>
    %261 = tpu.matmul %258, %260, %cst_130 {dimension_numbers = #tpu.dot_dimension_numbers<[1], [0], [0], [1], [0, 0, 1, 1], [], []>} : vector<16x128xbf16>, vector<128x128xbf16>, vector<16x128xf32> -> vector<16x128xf32>
    %c1_131 = arith.constant 1 : index
    %c0_132 = arith.constant 0 : index
    %c0_133 = arith.constant 0 : index
    %262 = vector.load %arg16[%c1_131, %c0_132, %c0_133] : memref<3x1x128xf32, #tpu.memory_space<vmem>>, vector<1x1x128xf32>
    %263 = vector.shape_cast %262 : vector<1x1x128xf32> to vector<1x128xf32>
    %264 = vector.broadcast %263 : vector<1x128xf32> to vector<16x128xf32>
    %265 = arith.addf %261, %264 : vector<16x128xf32>
    %cst_134 = arith.constant 5.000000e-01 : f32
    %266 = vector.broadcast %cst_134 : f32 to vector<16x128xf32>
    %267 = arith.mulf %266, %265 : vector<16x128xf32>
    %cst_135 = arith.constant 0.707106769 : f32
    %268 = vector.broadcast %cst_135 : f32 to vector<16x128xf32>
    %269 = arith.mulf %265, %268 : vector<16x128xf32>
    %270 = math.erf %269 : vector<16x128xf32>
    %cst_136 = arith.constant 1.000000e+00 : f32
    %271 = vector.broadcast %cst_136 : f32 to vector<16x128xf32>
    %272 = arith.addf %271, %270 : vector<16x128xf32>
    %273 = arith.mulf %267, %272 : vector<16x128xf32>
    %c2_137 = arith.constant 2 : index
    %c0_138 = arith.constant 0 : index
    %c0_139 = arith.constant 0 : index
    %274 = vector.load %arg13[%c2_137, %c0_138, %c0_139] : memref<3x1x128xf32, #tpu.memory_space<vmem>>, vector<1x1x128xf32>
    %275 = vector.shape_cast %274 : vector<1x1x128xf32> to vector<1x128xf32>
    %c2_140 = arith.constant 2 : index
    %c0_141 = arith.constant 0 : index
    %c0_142 = arith.constant 0 : index
    %276 = vector.load %arg14[%c2_140, %c0_141, %c0_142] : memref<3x1x128xf32, #tpu.memory_space<vmem>>, vector<1x1x128xf32>
    %277 = vector.shape_cast %276 : vector<1x1x128xf32> to vector<1x128xf32>
    %cst_143 = arith.constant dense<0.000000e+00> : vector<16xf32>
    %278 = vector.multi_reduction <add>, %273, %cst_143 [1] : vector<16x128xf32> to vector<16xf32>
    %279 = vector.shape_cast %278 : vector<16xf32> to vector<16x1xf32>
    %cst_144 = arith.constant 1.280000e+02 : f32
    %280 = vector.broadcast %cst_144 : f32 to vector<16x1xf32>
    %281 = arith.divf %279, %280 : vector<16x1xf32>
    %282 = arith.mulf %273, %273 : vector<16x128xf32>
    %cst_145 = arith.constant dense<0.000000e+00> : vector<16xf32>
    %283 = vector.multi_reduction <add>, %282, %cst_145 [1] : vector<16x128xf32> to vector<16xf32>
    %284 = vector.shape_cast %283 : vector<16xf32> to vector<16x1xf32>
    %cst_146 = arith.constant 1.280000e+02 : f32
    %285 = vector.broadcast %cst_146 : f32 to vector<16x1xf32>
    %286 = arith.divf %284, %285 : vector<16x1xf32>
    %287 = arith.mulf %281, %281 : vector<16x1xf32>
    %288 = arith.subf %286, %287 : vector<16x1xf32>
    %cst_147 = arith.constant 0.000000e+00 : f32
    %289 = vector.broadcast %cst_147 : f32 to vector<16x1xf32>
    %290 = arith.maximumf %288, %289 : vector<16x1xf32>
    %291 = vector.broadcast %281 : vector<16x1xf32> to vector<16x128xf32>
    %292 = arith.subf %273, %291 : vector<16x128xf32>
    %cst_148 = arith.constant 9.99999974E-6 : f32
    %293 = vector.broadcast %cst_148 : f32 to vector<16x1xf32>
    %294 = arith.addf %290, %293 : vector<16x1xf32>
    %295 = math.rsqrt %294 : vector<16x1xf32>
    %296 = vector.broadcast %295 : vector<16x1xf32> to vector<16x128xf32>
    %297 = arith.mulf %292, %296 : vector<16x128xf32>
    %298 = vector.broadcast %275 : vector<1x128xf32> to vector<16x128xf32>
    %299 = arith.mulf %297, %298 : vector<16x128xf32>
    %300 = vector.broadcast %277 : vector<1x128xf32> to vector<16x128xf32>
    %301 = arith.addf %299, %300 : vector<16x128xf32>
    %302 = arith.truncf %301 : vector<16x128xf32> to vector<16x128xbf16>
    %c2_149 = arith.constant 2 : index
    %c0_150 = arith.constant 0 : index
    %c0_151 = arith.constant 0 : index
    %303 = vector.load %arg15[%c2_149, %c0_150, %c0_151] : memref<3x128x128xbf16, #tpu.memory_space<vmem>>, vector<1x128x128xbf16>
    %304 = vector.shape_cast %303 : vector<1x128x128xbf16> to vector<128x128xbf16>
    %cst_152 = arith.constant dense<0.000000e+00> : vector<16x128xf32>
    %305 = tpu.matmul %302, %304, %cst_152 {dimension_numbers = #tpu.dot_dimension_numbers<[1], [0], [0], [1], [0, 0, 1, 1], [], []>} : vector<16x128xbf16>, vector<128x128xbf16>, vector<16x128xf32> -> vector<16x128xf32>
    %c2_153 = arith.constant 2 : index
    %c0_154 = arith.constant 0 : index
    %c0_155 = arith.constant 0 : index
    %306 = vector.load %arg16[%c2_153, %c0_154, %c0_155] : memref<3x1x128xf32, #tpu.memory_space<vmem>>, vector<1x1x128xf32>
    %307 = vector.shape_cast %306 : vector<1x1x128xf32> to vector<1x128xf32>
    %308 = vector.broadcast %307 : vector<1x128xf32> to vector<16x128xf32>
    %309 = arith.addf %305, %308 : vector<16x128xf32>
    %cst_156 = arith.constant 5.000000e-01 : f32
    %310 = vector.broadcast %cst_156 : f32 to vector<16x128xf32>
    %311 = arith.mulf %310, %309 : vector<16x128xf32>
    %cst_157 = arith.constant 0.707106769 : f32
    %312 = vector.broadcast %cst_157 : f32 to vector<16x128xf32>
    %313 = arith.mulf %309, %312 : vector<16x128xf32>
    %314 = math.erf %313 : vector<16x128xf32>
    %cst_158 = arith.constant 1.000000e+00 : f32
    %315 = vector.broadcast %cst_158 : f32 to vector<16x128xf32>
    %316 = arith.addf %315, %314 : vector<16x128xf32>
    %317 = arith.mulf %311, %316 : vector<16x128xf32>
    %318 = arith.truncf %317 : vector<16x128xf32> to vector<16x128xbf16>
    %c0_159 = arith.constant 0 : index
    %c0_160 = arith.constant 0 : index
    %319 = vector.load %arg17[%c0_159, %c0_160] : memref<128x128xbf16, #tpu.memory_space<vmem>>, vector<128x128xbf16>
    %cst_161 = arith.constant dense<0.000000e+00> : vector<16x128xf32>
    %320 = tpu.matmul %318, %319, %cst_161 {dimension_numbers = #tpu.dot_dimension_numbers<[1], [0], [0], [1], [0, 0, 1, 1], [], []>} : vector<16x128xbf16>, vector<128x128xbf16>, vector<16x128xf32> -> vector<16x128xf32>
    %c0_162 = arith.constant 0 : index
    %c0_163 = arith.constant 0 : index
    %321 = vector.load %arg18[%c0_162, %c0_163] : memref<1x128xf32, #tpu.memory_space<vmem>>, vector<1x128xf32>
    %322 = vector.broadcast %321 : vector<1x128xf32> to vector<16x128xf32>
    %323 = arith.addf %320, %322 : vector<16x128xf32>
    %c0_164 = arith.constant 0 : index
    %c0_165 = arith.constant 0 : index
    %324 = vector.load %arg19[%c0_164, %c0_165] : memref<16x128xf32, #tpu.memory_space<vmem>>, vector<16x128xf32>
    tpu.vector_store %arg19[%c0_164, %c0_165], %323 {strides = array<i32>} : memref<16x128xf32, #tpu.memory_space<vmem>>, vector<16x128xf32>,
    return
  }
  func.func @transform_0(%arg0: i32) -> (i32, i32) {
    %c0_i32 = arith.constant 0 : i32
    %c0_i32_0 = arith.constant 0 : i32
    return %arg0, %c0_i32 : i32, i32
  }
  func.func @transform_1(%arg0: i32) -> (i32, i32) {
    %c0_i32 = arith.constant 0 : i32
    %c0_i32_0 = arith.constant 0 : i32
    return %arg0, %c0_i32 : i32, i32
  }
  func.func @transform_2(%arg0: i32) -> (i32, i32) {
    %c0_i32 = arith.constant 0 : i32
    %c0_i32_0 = arith.constant 0 : i32
    %c0_i32_1 = arith.constant 0 : i32
    return %c0_i32, %c0_i32_0 : i32, i32
  }
  func.func @transform_3(%arg0: i32) -> (i32, i32) {
    %c0_i32 = arith.constant 0 : i32
    %c0_i32_0 = arith.constant 0 : i32
    %c0_i32_1 = arith.constant 0 : i32
    return %c0_i32, %c0_i32_0 : i32, i32
  }
  func.func @transform_4(%arg0: i32) -> (i32, i32, i32) {
    %c0_i32 = arith.constant 0 : i32
    %c0_i32_0 = arith.constant 0 : i32
    %c0_i32_1 = arith.constant 0 : i32
    %c0_i32_2 = arith.constant 0 : i32
    return %c0_i32, %c0_i32_0, %c0_i32_1 : i32, i32, i32
  }
  func.func @transform_5(%arg0: i32) -> (i32, i32, i32) {
    %c0_i32 = arith.constant 0 : i32
    %c0_i32_0 = arith.constant 0 : i32
    %c0_i32_1 = arith.constant 0 : i32
    %c0_i32_2 = arith.constant 0 : i32
    return %c0_i32, %c0_i32_0, %c0_i32_1 : i32, i32, i32
  }
  func.func @transform_6(%arg0: i32) -> (i32, i32, i32) {
    %c0_i32 = arith.constant 0 : i32
    %c0_i32_0 = arith.constant 0 : i32
    %c0_i32_1 = arith.constant 0 : i32
    %c0_i32_2 = arith.constant 0 : i32
    return %c0_i32, %c0_i32_0, %c0_i32_1 : i32, i32, i32
  }
  func.func @transform_7(%arg0: i32) -> (i32, i32, i32) {
    %c0_i32 = arith.constant 0 : i32
    %c0_i32_0 = arith.constant 0 : i32
    %c0_i32_1 = arith.constant 0 : i32
    %c0_i32_2 = arith.constant 0 : i32
    return %c0_i32, %c0_i32_0, %c0_i32_1 : i32, i32, i32
  }
  func.func @transform_8(%arg0: i32) -> (i32, i32) {
    %c0_i32 = arith.constant 0 : i32
    %c0_i32_0 = arith.constant 0 : i32
    %c0_i32_1 = arith.constant 0 : i32
    return %c0_i32, %c0_i32_0 : i32, i32
  }
  func.func @transform_9(%arg0: i32) -> (i32, i32) {
    %c0_i32 = arith.constant 0 : i32
    %c0_i32_0 = arith.constant 0 : i32
    %c0_i32_1 = arith.constant 0 : i32
    return %c0_i32, %c0_i32_0 : i32, i32
  }
  func.func @transform_10(%arg0: i32) -> (i32, i32) {
    %c0_i32 = arith.constant 0 : i32
    %c0_i32_0 = arith.constant 0 : i32
    %c0_i32_1 = arith.constant 0 : i32
    return %c0_i32, %c0_i32_0 : i32, i32
  }
  func.func @transform_11(%arg0: i32) -> (i32, i32) {
    %c0_i32 = arith.constant 0 : i32
    %c0_i32_0 = arith.constant 0 : i32
    %c0_i32_1 = arith.constant 0 : i32
    return %c0_i32, %c0_i32_0 : i32, i32
  }
  func.func @transform_12(%arg0: i32) -> (i32, i32, i32) {
    %c0_i32 = arith.constant 0 : i32
    %c0_i32_0 = arith.constant 0 : i32
    %c0_i32_1 = arith.constant 0 : i32
    %c0_i32_2 = arith.constant 0 : i32
    return %c0_i32, %c0_i32_0, %c0_i32_1 : i32, i32, i32
  }
  func.func @transform_13(%arg0: i32) -> (i32, i32, i32) {
    %c0_i32 = arith.constant 0 : i32
    %c0_i32_0 = arith.constant 0 : i32
    %c0_i32_1 = arith.constant 0 : i32
    %c0_i32_2 = arith.constant 0 : i32
    return %c0_i32, %c0_i32_0, %c0_i32_1 : i32, i32, i32
  }
  func.func @transform_14(%arg0: i32) -> (i32, i32, i32) {
    %c0_i32 = arith.constant 0 : i32
    %c0_i32_0 = arith.constant 0 : i32
    %c0_i32_1 = arith.constant 0 : i32
    %c0_i32_2 = arith.constant 0 : i32
    return %c0_i32, %c0_i32_0, %c0_i32_1 : i32, i32, i32
  }
  func.func @transform_15(%arg0: i32) -> (i32, i32, i32) {
    %c0_i32 = arith.constant 0 : i32
    %c0_i32_0 = arith.constant 0 : i32
    %c0_i32_1 = arith.constant 0 : i32
    %c0_i32_2 = arith.constant 0 : i32
    return %c0_i32, %c0_i32_0, %c0_i32_1 : i32, i32, i32
  }
  func.func @transform_16(%arg0: i32) -> (i32, i32) {
    %c0_i32 = arith.constant 0 : i32
    %c0_i32_0 = arith.constant 0 : i32
    %c0_i32_1 = arith.constant 0 : i32
    return %c0_i32, %c0_i32_0 : i32, i32
  }
  func.func @transform_17(%arg0: i32) -> (i32, i32) {
    %c0_i32 = arith.constant 0 : i32
    %c0_i32_0 = arith.constant 0 : i32
    %c0_i32_1 = arith.constant 0 : i32
    return %c0_i32, %c0_i32_0 : i32, i32
  }
  func.func @transform_18(%arg0: i32) -> (i32, i32) {
    %c0_i32 = arith.constant 0 : i32
    %c0_i32_0 = arith.constant 0 : i32
    return %arg0, %c0_i32 : i32, i32
  }
  func.func @transform_19(%arg0: i32) -> (i32, i32, i32) {
    %c0_i32 = arith.constant 0 : i32
    %c0_i32_0 = arith.constant 0 : i32
    %c0_i32_1 = arith.constant 0 : i32
    return %arg0, %c0_i32, %c0_i32_0 : i32, i32, i32
  }
}

</mosaic_0001>

<bundles_post_ra>
// kernel: kl_vae_forward.1
= control target key start
LH: loop header
LB: loop body
LE: loop exit
PB: predicated region body
PF: predicated region fallthrough
CT: control target
= control target key end

     0   :  { %s5180_s0 = inlined_call_operand.vmem [shape: bf16[32,128], index: 0, kind: input, shape index: {}]   ;;  %s5181_s1 = inlined_call_operand.hbm [shape: f32[32,64], index: 1, kind: input, shape index: {}]   ;;  %s5182_s2 = inlined_call_operand.hbm [shape: bf16[128,128], index: 2, kind: input, shape index: {}]   ;;  %s5183_s3 = inlined_call_operand.hbm [shape: f32[1,128], index: 3, kind: input, shape index: {}]   ;;  %s5184_s4 = inlined_call_operand.hbm [shape: f32[3,1,128], index: 4, kind: input, shape index: {}]   ;;  %s5185_s5 = inlined_call_operand.hbm [shape: f32[3,1,128], index: 5, kind: input, shape index: {}]   ;;  %s5186_s6 = inlined_call_operand.hbm [shape: bf16[3,128,128], index: 6, kind: input, shape index: {}]   ;;  %s5187_s7 = inlined_call_operand.hbm [shape: f32[3,1,128], index: 7, kind: input, shape index: {}]   ;;  %s5188_s8 = inlined_call_operand.hbm [shape: bf16[128,128], index: 8, kind: input, shape index: {}]   ;;  %s5189_s9 = inlined_call_operand.hbm [shape: f32[1,128], index: 9, kind: input, shape index: {}]   ;;  %s5190_s10 = inlined_call_operand.hbm [shape: bf16[64,128], index: 10, kind: input, shape index: {}]   ;;  %s5191_s11 = inlined_call_operand.hbm [shape: f32[1,128], index: 11, kind: input, shape index: {}]   ;;  %s5192_s12 = inlined_call_operand.hbm [shape: f32[3,1,128], index: 12, kind: input, shape index: {}]   ;;  %s5193_s13 = inlined_call_operand.hbm [shape: f32[3,1,128], index: 13, kind: input, shape index: {}]   ;;  %s5194_s14 = inlined_call_operand.hbm [shape: bf16[3,128,128], index: 14, kind: input, shape index: {}]   ;;  %s5195_s15 = inlined_call_operand.hbm [shape: f32[3,1,128], index: 15, kind: input, shape index: {}]   ;;  %s5196_s16 = inlined_call_operand.hbm [shape: bf16[128,128], index: 16, kind: input, shape index: {}]   ;;  %s5197_s17 = inlined_call_operand.hbm [shape: f32[1,128], index: 17, kind: input, shape index: {}]   ;;  %s5198_s18 = inlined_call_operand.hbm [shape: f32[32,128], index: 18, kind: output, shape index: {0}]   ;;  %s5199_s19 = inlined_call_operand.vmem [shape: f32[2,8,128], index: 19, kind: output, shape index: {1}]  }
   0x1   :  { %5210 = sst [smem:[#allocation43_spill]] %s5180_s0 }
   0x2   :  { %5211 = sst [smem:[#allocation44_spill]] %s5181_s1 }
   0x3   :  { %5212 = sst [smem:[#allocation45_spill]] %s5182_s2 }
   0x4   :  { %5213 = sst [smem:[#allocation46_spill]] %s5183_s3 }
   0x5   :  { %5214 = sst [smem:[#allocation47_spill]] %s5184_s4 }
   0x6   :  { %5215 = sst [smem:[#allocation48_spill]] %s5185_s5 }
   0x7   :  { %5216 = sst [smem:[#allocation49_spill]] %s5186_s6 }
   0x8   :  { %5217 = sst [smem:[#allocation50_spill]] %s5187_s7 }
   0x9   :  { %5218 = sst [smem:[#allocation51_spill]] %s5188_s8 }
   0xa   :  { %5219 = sst [smem:[#allocation52_spill]] %s5189_s9 }
   0xb   :  { %5220 = sst [smem:[#allocation53_spill]] %s5190_s10 }
   0xc   :  { %5221 = sst [smem:[#allocation54_spill]] %s5191_s11 }
   0xd   :  { %5222 = sst [smem:[#allocation55_spill]] %s5198_s18 }
   0xe   :  { %5223 = sst [smem:[#allocation56_spill]] %s5199_s19 }
   0xf   :  { %25 = vsyncpa [#allocation3], 0 }
  0x10   :  { %27 = vsyncpa [#allocation3 + $0x1], 0 }
  0x11   :  { %28 = vsyncpa [#allocation6], 0 }
  0x12   :  { %29 = vsyncpa [#allocation9], 0 }
  0x13   :  { %30 = vsyncpa [#allocation12], 0 }
  0x14   :  { %31 = vsyncpa [#allocation15], 0 }
  0x15   :  { %32 = vsyncpa [#allocation18], 0 }
  0x16   :  { %33 = vsyncpa [#allocation21], 0 }
  0x17   :  { %34 = vsyncpa [#allocation24], 0 }
  0x18   :  { %35 = vsyncpa [#allocation27], 0 }
  0x19   :  { %36 = vsyncpa [#allocation4], 0 }
  0x1a   :  { %38 = vsyncpa [#allocation4 + $0x1], 0  ;;  %s4637_s0 = smov 0   ;;  %s4639_s30 = smov 0  }
  0x1b   :  { %s4641_s20 = smov 0   ;;  %s4643_s21 = smov 0  }
  0x1c LB: > { %5224 = sst [smem:[#allocation40_spill]] %s4497_s0  ;;  %s4661_s24 = sadd.s32 4294967295, %s4509_s21   ;;  %s4509_s21 = sphi %s4643_s21, %s5259_s21   ;;  %s4505_s20 = sphi %s4641_s20, %s5258_s20   ;;  %s4501_s30 = sphi %s4639_s30, %s5257_s30   ;;  %s4497_s0 = sphi %s4637_s0, %s5256_s0  }
  0x1d   : > { %s5225_s2 = sld [smem:[#allocation45_spill]]  ;;  %p3146_p0 = scmp.ge.s32.totalorder %s4509_s21, 1 }
  0x1e   : > { %5226 = sst [smem:[#allocation41_spill]] %s4661_s24  ;;  %p91_p1 = scmp.eq.s32.totalorder %s4661_s24, 0 }
  0x1f   : > { %p489_p2 = scmp.lt.s32.totalorder %s4509_s21, 3  ;;  %s4511_s3 = smov [#allocation5]  }
  0x20   : > { %s502_s26 = sshll.u32 %s4511_s3, 4  ;;  %s5229_s4 = sld [smem:[#allocation47_spill]]  ;;  %s503_s26 = int_to_ptr.vmem [resolvable:$true] %s502_s26 }
  0x21   : > { %p4666_p3 = pnand %p3146_p0, %p489_p2  ;;  %s4512_s22 = smov [#allocation8]  }
  0x22   : > { %s4513_s3 = smov 64   ;;  %s4514_s18 = smov 4  }
  0x23   : > { %s500_s23 = sshll.u32 %s5225_s2, 4  ;;  %p3668_p4 = pneg %p4666_p3  ;;  %s501_s23 = int_to_ptr.hbm [resolvable:$true] %s500_s23 }
  0x24   : > { %s5227_s25 = scalar_select %p4666_p3, 1, 0 }
  0x25   : > { %p4678_p6 = pnand %p3668_p4, %p91_p1  ;;  %s528_s2 = sshll.u32 %s4512_s22, 4  ;;  %s529_s2 = int_to_ptr.vmem [resolvable:$true] %s528_s2 }
  0x26   : > { %5228 = sst [smem:[#allocation42_spill]] %s5227_s25  ;;  %s526_s29 = sshll.u32 %s5229_s4, 4  ;;  %s527_s29 = int_to_ptr.hbm [resolvable:$true] %s526_s29 }
  0x27   : > { %3671 = dma.hbm_to_vmem [thread:$0]  (!%p4678_p6), %s501_s23, 1024, %s503_s26, [#allocation6], %s4513_s3, %s4513_s3, %s4514_s18  }
  0x28   : > { %s5206_s27 = smov 16   ;;  %s5208_s28 = smov 1  }
  0x29   : > { %3677 = dma.hbm_to_vmem [thread:$0]  (!%p4678_p6), %s527_s29, 48, %s529_s2, [#allocation9], %s5206_s27, %s5206_s27, %s5208_s28  }
  0x2a   : > { %s5231_s6 = sld [smem:[#allocation49_spill]]  ;;  %s4517_s25 = smov [#allocation11]  }
  0x2b   : > { %s556_s24 = sshll.u32 %s4517_s25, 4  ;;  %s5232_s8 = sld [smem:[#allocation51_spill]]  ;;  %s557_s24 = int_to_ptr.vmem [resolvable:$true] %s556_s24 }
  0x2c   : > { %s4518_s29 = smov [#allocation14]   ;;  %s5233_s10 = sld [smem:[#allocation53_spill]] }
  0x2d   : > { %s584_s2 = sshll.u32 %s4518_s29, 4  ;;  %s634_s23 = sshll.u32 %s5192_s12, 4  ;;  %s585_s2 = int_to_ptr.vmem [resolvable:$true] %s584_s2  ;;  %s635_s23 = int_to_ptr.hbm [resolvable:$true] %s634_s23 }
  0x2e   : > { %s4520_s27 = smov [#allocation20]   ;;  %s5235_s0 = smov 16  }
  0x2f   : > { %s636_s29 = sshll.u32 %s4520_s27, 4  ;;  %s4522_s28 = smov [#allocation26]   ;;  %s637_s29 = int_to_ptr.vmem [resolvable:$true] %s636_s29 }
  0x30   : > { %s554_s22 = sshll.u32 %s5231_s6, 4  ;;  %s690_s6 = sshll.u32 %s5196_s16, 4  ;;  %s555_s22 = int_to_ptr.hbm [resolvable:$true] %s554_s22  ;;  %s691_s6 = int_to_ptr.hbm [resolvable:$true] %s690_s6 }
  0x31   : > { %s582_s26 = sshll.u32 %s5232_s8, 4  ;;  %s4521_s8 = smov [#allocation23]   ;;  %s583_s26 = int_to_ptr.hbm [resolvable:$true] %s582_s26 }
  0x32   : > { %3683 = dma.hbm_to_vmem [thread:$0]  (!%p4678_p6), %s555_s22, 3072, %s557_s24, [#allocation12], %s4513_s3, %s4513_s3, %s4514_s18  }
  0x33   : > { %s608_s19 = sshll.u32 %s5233_s10, 4  ;;  %s4519_s24 = smov [#allocation17]   ;;  %s609_s19 = int_to_ptr.hbm [resolvable:$true] %s608_s19 }
  0x34   : > { %3689 = dma.hbm_to_vmem [thread:$0]  (!%p4678_p6), %s583_s26, 1024, %s585_s2, [#allocation15], %s4513_s3, %s4513_s3, %s4514_s18  }
  0x35   : > { %s610_s22 = sshll.u32 %s4519_s24, 4  ;;  %s662_s26 = sshll.u32 %s5194_s14, 4  ;;  %s611_s22 = int_to_ptr.vmem [resolvable:$true] %s610_s22  ;;  %s663_s26 = int_to_ptr.hbm [resolvable:$true] %s662_s26 }
  0x36   : > { %3695 = dma.hbm_to_vmem [thread:$0]  (!%p4678_p6), %s609_s19, 512, %s611_s22, [#allocation18], %s4513_s3, %s4513_s3, %s4514_s18  }
  0x37   : > { %s5234_s2 = smov 1   ;;  %s664_s19 = sshll.u32 %s4521_s8, 4  ;;  %s665_s19 = int_to_ptr.vmem [resolvable:$true] %s664_s19 }
  0x38   : > { %3701 = dma.hbm_to_vmem [thread:$0]  (!%p4678_p6), %s635_s23, 48, %s637_s29, [#allocation21], %s5235_s0, %s5235_s0, %s5234_s2  }
  0x39   : > { %3707 = dma.hbm_to_vmem [thread:$0]  (!%p4678_p6), %s663_s26, 3072, %s665_s19, [#allocation24], %s4513_s3, %s4513_s3, %s4514_s18  }
  0x3a   : > { %s692_s22 = sshll.u32 %s4522_s28, 4  ;;  %s5236_s10 = sld [smem:[#allocation46_spill]]  ;;  %s693_s22 = int_to_ptr.vmem [resolvable:$true] %s692_s22 }
  0x3b   : > { %3713 = dma.hbm_to_vmem [thread:$0]  (!%p4678_p6), %s691_s6, 1024, %s693_s22, [#allocation27], %s4513_s3, %s4513_s3, %s4514_s18  }
  0x3c   : > { %s5237_s5 = sld [smem:[#allocation48_spill]]  ;;  %s4523_s24 = smov [#allocation7]  }
  0x3d   : > { %s517_s26 = sshll.u32 %s4523_s24, 4  ;;  %s4524_s19 = smov [#allocation10]   ;;  %s518_s26 = int_to_ptr.vmem [resolvable:$true] %s517_s26 }
  0x3e   : > { %s5238_s7 = sld [smem:[#allocation50_spill]]  ;;  %s4525_s22 = smov [#allocation13]  }
  0x3f   : > { %s5239_s9 = sld [smem:[#allocation52_spill]]  ;;  %s4526_s8 = smov [#allocation16]  }
  0x40   : > { %s515_s23 = sshll.u32 %s5236_s10, 4  ;;  %s542_s10 = sshll.u32 %s4524_s19, 4  ;;  %s516_s23 = int_to_ptr.hbm [resolvable:$true] %s515_s23  ;;  %s543_s10 = int_to_ptr.vmem [resolvable:$true] %s542_s10 }
  0x41   : > { %3674 = dma.hbm_to_vmem [thread:$0]  (!%p4678_p6), %s516_s23, 16, %s518_s26, [#allocation6]  }
  0x42   : > { %s540_s25 = sshll.u32 %s5237_s5, 4  ;;  %s570_s23 = sshll.u32 %s4525_s22, 4  ;;  %s541_s25 = int_to_ptr.hbm [resolvable:$true] %s540_s25  ;;  %s571_s23 = int_to_ptr.vmem [resolvable:$true] %s570_s23 }
  0x43   : > { %3680 = dma.hbm_to_vmem [thread:$0]  (!%p4678_p6), %s541_s25, 48, %s543_s10, [#allocation9], %s5235_s0, %s5235_s0, %s5234_s2  }
  0x44   : > { %s568_s4 = sshll.u32 %s5238_s7, 4  ;;  %s599_s29 = sshll.u32 %s4526_s8, 4  ;;  %s569_s4 = int_to_ptr.hbm [resolvable:$true] %s568_s4  ;;  %s600_s29 = int_to_ptr.vmem [resolvable:$true] %s599_s29 }
  0x45   : > { %s597_s3 = sshll.u32 %s5239_s9, 4  ;;  %s5240_s11 = sld [smem:[#allocation54_spill]]  ;;  %s598_s3 = int_to_ptr.hbm [resolvable:$true] %s597_s3 }
  0x46   : > { %3686 = dma.hbm_to_vmem [thread:$0]  (!%p4678_p6), %s569_s4, 48, %s571_s23, [#allocation12], %s5235_s0, %s5235_s0, %s5234_s2  }
  0x47   : > { %3692 = dma.hbm_to_vmem [thread:$0]  (!%p4678_p6), %s598_s3, 16, %s600_s29, [#allocation15]  }
  0x48   : > { %s648_s28 = sshll.u32 %s5193_s13, 4  ;;  %s4527_s27 = smov [#allocation19]   ;;  %s649_s28 = int_to_ptr.hbm [resolvable:$true] %s648_s28 }
  0x49   : > { %s625_s6 = sshll.u32 %s4527_s27, 4  ;;  %s4528_s4 = smov [#allocation22]   ;;  %s626_s6 = int_to_ptr.vmem [resolvable:$true] %s625_s6 }
  0x4a   : > { %s650_s18 = sshll.u32 %s4528_s4, 4  ;;  %s676_s3 = sshll.u32 %s5195_s15, 4  ;;  %s651_s18 = int_to_ptr.vmem [resolvable:$true] %s650_s18  ;;  %s677_s3 = int_to_ptr.hbm [resolvable:$true] %s676_s3 }
  0x4b   : > { %s623_s25 = sshll.u32 %s5240_s11, 4  ;;  %s705_s24 = sshll.u32 %s5197_s17, 4  ;;  %s624_s25 = int_to_ptr.hbm [resolvable:$true] %s623_s25  ;;  %s706_s24 = int_to_ptr.hbm [resolvable:$true] %s705_s24 }
  0x4c   : > { %3698 = dma.hbm_to_vmem [thread:$0]  (!%p4678_p6), %s624_s25, 16, %s626_s6, [#allocation18]  }
  0x4d   : > { %3704 = dma.hbm_to_vmem [thread:$0]  (!%p4678_p6), %s649_s28, 48, %s651_s18, [#allocation21], %s5235_s0, %s5235_s0, %s5234_s2  }
  0x4e   : > { %s4529_s26 = smov [#allocation25]   ;;  %s5241_s25 = sld [smem:[#allocation40_spill]] }
  0x4f   : > { %s678_s19 = sshll.u32 %s4529_s26, 4  ;;  %s5242_s10 = sld [smem:[#allocation41_spill]]  ;;  %s679_s19 = int_to_ptr.vmem [resolvable:$true] %s678_s19 }
  0x50   : > { %3710 = dma.hbm_to_vmem [thread:$0]  (!%p4678_p6), %s677_s3, 48, %s679_s19, [#allocation24], %s5235_s0, %s5235_s0, %s5234_s2  }
  0x51   : > { %s4530_s28 = smov [#allocation28]   ;;  %s3145_s6 = sadd.s32 4294967294, %s4509_s21  }
  0x52   : > { %s707_s27 = sshll.u32 %s4530_s28, 4  ;;  %s4794_s4 = sadd.s32 1, %s4509_s21   ;;  %s708_s27 = int_to_ptr.vmem [resolvable:$true] %s707_s27 }
  0x53   : > { %3716 = dma.hbm_to_vmem [thread:$0]  (!%p4678_p6), %s706_s24, 16, %s708_s27, [#allocation27]  }
  0x54   : > { %s74_s18 = ssub.s32 %s4509_s21, %s4794_s4  ;;  %s77_s22 = sadd.s32 1, %s4505_s20 }
  0x55   : > { %p75_p7 = scmp.eq.s32.totalorder %s74_s18, 0  ;;  %p84_p8 = scmp.ne.s32.totalorder %s4505_s20, %s4501_s30 }
  0x56   : > { %p85_p9 = scmp.eq.s32.totalorder %s4509_s21, 0  ;;  %p90_p10 = scmp.ne.s32.totalorder %s4501_s30, %s5241_s25 }
  0x57   : > { %s4805_s2 = scalar_select %p75_p7, %s4505_s20, %s77_s22  }
  0x58   : > { %p4807_p11 = por %p85_p9, %p84_p8  ;;  %p4813_p12 = por %p91_p1, %p90_p10 }
  0x59   : > { %p450_p13 = scmp.eq.s32.totalorder %s5242_s10, 1  ;;  %p456_p0 = scmp.eq.s32.totalorder %s3145_s6, 1 }
  0x5a   : > { %p3741_p2 = scmp.lt.s32.totalorder %s4509_s21, 2  ;;  %s727_s23 = sand.u32 1, %s4505_s20  }
  0x5b   : > { %p4820_p4 = por %p450_p13, %p84_p8  ;;  %p4824_p6 = por %p456_p0, %p90_p10 }
  0x5c   : > { %s3164_s29 = sshll.u32 %s727_s23, 4  ;;  %s3519_s24 = sshll.u32 %s4509_s21, 4 }
  0x5d   : > { %s5247_s19 = sld [smem:[#allocation44_spill]]  ;;  %s731_s27 = scalar_lea.vmem [#allocation2], %s3164_s29 }
  0x5e   : > { %s739_s18 = sshll.u32 %s731_s27, 4  ;;  %p4834_p7 = pnand %p3741_p2, %p4807_p11  ;;  %s740_s18 = int_to_ptr.vmem [resolvable:$true] %s739_s18 }
  0x5f   : > { %s728_s22 = scalar_lea.sflag [#allocation3], %s727_s23 }
  0x60   : > { %p4385_p9 = pneg %p4834_p7 }
  0x63   : > { %s736_s28 = scalar_lea.hbm %s5247_s19, %s3519_s24  ;;  %s4388_s26 = scalar_lea.hbm %s5247_s19, 32 }
  0x64   : > { %s737_s10 = sshll.u32 %s736_s28, 4  ;;  %s738_s10 = int_to_ptr.hbm [resolvable:$true] %s737_s10 }
  0x65   : > { %s4381_s5 = sshra.s32 %s738_s10, 4  ;;  %s4382_s5 = int_to_ptr.hbm [resolvable:$true] %s4381_s5 }
  0x66   : > { %s4383_s7 = scalar_lea.hbm %s4382_s5, 16  ;;  %p4389_p11 = scmp.lt.s32.totalorder %s4382_s5, %s5247_s19 }
  0x67   : > { %p4384_p8 = scmp.ne.s32.totalorder %s4382_s5, %s4383_s7  ;;  %p4390_p0 = scmp.lt.s32.totalorder %s4388_s26, %s4383_s7 }
  0x69   : > { %p4386_p10 = pnand %p4385_p9, %p4384_p8  ;;  %p4391_p2 = por %p4390_p0, %p4389_p11 }
  0x6b   : > { %p4387_p13 = pneg %p4386_p10 }
  0x6d   : > { %p4392_p5 = pnand %p4391_p2, %p4387_p13 }
  0x6f   : > { %4395 = shalt.err (!%p4392_p5)
}
  0x70   : > { %s4531_s23 = smov 128   ;;  %s4532_s28 = smov 8  }
  0x71   : > { %3720 = dma.hbm_to_vmem [thread:$0]  (!%p4834_p7), %s738_s10, 256, %s740_s18, %s728_s22, %s4531_s23, %s4531_s23, %s4532_s28  }
  0x72   : > { %751 = sbr.rel (%p4666_p3) target bundleno = 3030 (0xbd6), region = 92  ;;  %s4851_s29 = sand.u32 (!%p4666_p3), 1, %s4501_s30  }
  0x73   : > { %s3168_s5 = sshll.u32 (!%p4666_p3), %s4851_s29, 4  ;;  %s754_s7 = scalar_lea.sflag (!%p4666_p3), [#allocation3], %s4851_s29 }
  0x74   : > { %s4857_s24 = scalar_lea.vmem (!%p4666_p3), [#allocation2], %s3168_s5 }
  0x77   : > { %4456 = dma.done.wait (%p4813_p12), %s754_s7, 256  }
  0x78   : > { %4458 = vsyncadd (%p4813_p12), %s754_s7, 4294967040  ;;  %s5250_s18 = sld [smem:[#allocation41_spill]] }
  0x79   : > { %4460 = dma.done.wait (%p91_p1), [#allocation6], 1040  }
  0x7a   : > { %4462 = vsyncadd (%p91_p1), [#allocation6], 4294966256 }
  0x7b   : > { %4464 = dma.done.wait (%p91_p1), [#allocation9], 96  }
  0x7c   : > { %4466 = vsyncadd (%p91_p1), [#allocation9], 4294967200 }
  0x7d   : > { %4468 = dma.done.wait (%p91_p1), [#allocation12], 3120  }
  0x7e   : > { %4470 = vsyncadd (%p91_p1), [#allocation12], 4294964176 }
  0x7f   : > { %4472 = dma.done.wait (%p91_p1), [#allocation15], 1040  }
  0x80   : > { %4474 = vsyncadd (%p91_p1), [#allocation15], 4294966256 }
  0x81   : > { %4476 = dma.done.wait (%p91_p1), [#allocation18], 528  }
  0x82   : > { %4478 = vsyncadd (%p91_p1), [#allocation18], 4294966768 }
  0x83   : > { %4480 = dma.done.wait (%p91_p1), [#allocation21], 96  }
  0x84   : > { %4482 = vsyncadd (%p91_p1), [#allocation21], 4294967200 }
  0x85   : > { %4484 = dma.done.wait (%p91_p1), [#allocation24], 3120  }
  0x86   : > { %4486 = vsyncadd (%p91_p1), [#allocation24], 4294964176 }
  0x87   : > { %4488 = dma.done.wait (%p91_p1), [#allocation27], 1040  }
  0x88   : > { %4490 = vsyncadd (%p91_p1), [#allocation27], 4294966256  ;;  %v3528_v0 = vld [vmem:[#allocation5 + $0x38] sm:$0xff]  ;;  %v3527_v1 = vld [vmem:[#allocation5 + $0x30] sm:$0xff]  ;;  %s3186_s1 = sshll.u32 %s5250_s18, 1  ;;  %s5251_s26 = sld [smem:[#allocation43_spill]] }
  0x89   : > { %991 = vmatpush.bf16.msra.mxu0 %v3528_v0  ;;  %v3526_v2 = vld [vmem:[#allocation5 + $0x28] sm:$0xff]  ;;  %v3525_v3 = vld [vmem:[#allocation5 + $0x20] sm:$0xff]  ;;  %v3524_v4 = vld [vmem:[#allocation5 + $0x18] sm:$0xff]  ;;  %p903_p3 = scmp.lt.s32.totalorder %s3186_s1, 3  ;;  %s4534_s0 = smov 64  }
  0x8a   : > { %v3523_v5 = vld [vmem:[#allocation5 + $0x10] sm:$0xff]  ;;  %v3522_v6 = vld [vmem:[#allocation5 + $0x8] sm:$0xff]  ;;  %v3521_v7 = vld [vmem:[#allocation5] sm:$0xff]  ;;  %p910_p1 = scmp.lt.s32.totalorder %s5250_s18, 1  ;;  %s3597_s6 = sshll.u32 %s5250_s18, 4 }
  0x8b   : > { %s5261_s1 = smov (!%p903_p3, %s3186_s1), 3  ;;  %v3817_v9 = vld [vmem:[#allocation7] ss:$0 sm:$0xff]  ;;  %s895_s9 = scalar_lea.vmem [#allocation29], %s3168_s5 }
  0x8c   : > { %s3187_s10 = sshll.u32 %s5261_s1, 2 }
  0x8d   : > { %992 = vmatpush.bf16.msra.mxu0 %v3527_v1  ;;  %s911_s23 = scalar_select %p910_p1, %s5250_s18, 1 }
  0x8e   : > { %s906_s25 = scalar_lea.vmem %s5251_s26, %s3187_s10 }
  0x8f   : > { %v3520_v8 = vld [vmem:[%s906_s25] sm:$0xff]  ;;  %s3188_s28 = sshll.u32 %s911_s23, 3  ;;  %s5253_s25 = sld [smem:[#allocation55_spill]] }
  0x90   : > { %s2878_s23 = sshll.u32 %s895_s9, 4  ;;  %s2879_s23 = int_to_ptr.vmem [resolvable:$true] %s2878_s23 }
  0x91   : > { %993 = vmatpush.bf16.msra.mxu0 %v3526_v2 }
  0x95   : > { %994 = vmatpush.bf16.msra.mxu0 %v3525_v3  ;;  %s4431_s5 = scalar_lea.hbm %s5253_s25, 32 }
  0x99   : > { %995 = vmatpush.bf16.msra.mxu0 %v3524_v4 }
  0x9d   : > { %996 = vmatpush.bf16.msra.mxu0 %v3523_v5 }
  0xa1   : > { %997 = vmatpush.bf16.msra.mxu0 %v3522_v6 }
  0xa5   : > { %998 = vmatpush.bf16.msra.mxu0 %v3521_v7 }
  0xa8   : > { %999 = vmatmul.bf16.vlgmr.msra.gmra.mxu0 %v3520_v8 }
 0x125   : > { %v1000_v10 = vpop.f32.mrf.mxu0 }
 0x126   : > { %v4899_v11 = vadd.f32 %v3817_v9, %v1000_v10 }
 0x128   : > { %v1007_v12 = vmul.f32 0.70710677, %v4899_v11 }
 0x12a   : > { %v1009_v13 = vmul.f32 %v1007_v12, %v1007_v12 }
 0x12c   : > { %v1010_v14 = vmin.f32 %v1009_v13, 16.0 }
 0x12d   : > { %v1002_v15 = vpop.f32.mrf.mxu0 }
 0x12e   : > { %v1011_v16 = vmul.f32 2.1237322e-06, %v1010_v14  ;;  %v1022_v17 = vmul.f32 3.8918573e-05, %v1010_v14  ;;  %v4902_v18 = vadd.f32 %v3817_v9, %v1002_v15 }
 0x130   : > { %v1012_v19 = vadd.f32 0.00028619796, %v1011_v16  ;;  %v1023_v20 = vadd.f32 0.001143296, %v1022_v17  ;;  %v4905_v21 = vmul.f32 0.70710677, %v4902_v18 }
 0x131   : > { %v1005_v17 = vmul.f32 0.5, %v4899_v11 }
 0x132   : > { %v1013_v22 = vmul.f32 %v1012_v19, %v1010_v14  ;;  %v1024_v23 = vmul.f32 %v1023_v20, %v1010_v14  ;;  %v1049_v24 = vmul.f32 %v4905_v21, %v4905_v21 }
 0x134   : > { %v1025_v25 = vadd.f32 0.014752088, %v1024_v23  ;;  %v1014_v26 = vadd.f32 0.0036580483, %v1013_v22  ;;  %v1050_v27 = vmin.f32 %v1049_v24, 16.0 }
 0x136   : > { %v1026_v28 = vmul.f32 %v1025_v25, %v1010_v14  ;;  %v1051_v29 = vmul.f32 2.1237322e-06, %v1050_v27  ;;  %v1062_v30 = vmul.f32 3.8918573e-05, %v1050_v27  ;;  %v1015_v32 = vmul.f32 %v1014_v26, %v1010_v14 }
 0x138   : > { %v1027_v31 = vadd.f32 0.112945676, %v1026_v28  ;;  %v1052_v33 = vadd.f32 0.00028619796, %v1051_v29  ;;  %v1063_v34 = vadd.f32 0.001143296, %v1062_v30 }
 0x139   : > { %v1016_v39 = vadd.f32 0.05243302, %v1015_v32  ;;  %v1006_v28 = vmul.f32 0.5, %v4902_v18  ;;  %v3534_v18 = vld [vmem:[#allocation11 + $0x28] sm:$0xff] }
 0x13a   : > { %v1028_v35 = vmul.f32 %v1027_v31, %v1010_v14  ;;  %v1053_v36 = vmul.f32 %v1052_v33, %v1050_v27  ;;  %v1064_v37 = vmul.f32 %v1063_v34, %v1050_v27  ;;  %v4533_v31 = vmov 128.0   ;;  %v3536_v34 = vld [vmem:[#allocation11 + $0x38] sm:$0xff] }
 0x13b   : > { %v1017_v45 = vmul.f32 %v1016_v39, %v1010_v14  ;;  %1227 = vmatpush.bf16.msra.mxu1 %v3536_v34  ;;  %v3533_v39 = vld [vmem:[#allocation11 + $0x20] sm:$0xff] }
 0x13c   : > { %v1029_v38 = vadd.f32 0.4994258, %v1028_v35  ;;  %v1065_v40 = vadd.f32 0.014752088, %v1064_v37  ;;  %v1054_v42 = vadd.f32 0.0036580483, %v1053_v36 }
 0x13d   : > { %v1018_v49 = vadd.f32 0.18741608, %v1017_v45  ;;  %v3535_v36 = vld [vmem:[#allocation11 + $0x30] sm:$0xff] }
 0x13e   : > { %v1030_v41 = vmul.f32 %v1029_v38, %v1010_v14  ;;  %v1066_v43 = vmul.f32 %v1065_v40, %v1050_v27  ;;  %v1055_v47 = vmul.f32 %v1054_v42, %v1050_v27 }
 0x13f   : > { %v1019_v54 = vmul.f32 %v1018_v49, %v1010_v14  ;;  %1228 = vmatpush.bf16.msra.mxu1 %v3535_v36 }
 0x140   : > { %v1031_v44 = vadd.f32 1.0, %v1030_v41  ;;  %v1067_v46 = vadd.f32 0.112945676, %v1066_v43  ;;  %v1056_v51 = vadd.f32 0.05243302, %v1055_v47  ;;  %v3532_v41 = vld [vmem:[#allocation11 + $0x18] sm:$0xff] }
 0x141   : > { %v1020_v60 = vadd.f32 1.1283791, %v1019_v54 }
 0x142   : > { %3839 = vrcp.f32 %v1031_v44  ;;  %v1068_v48 = vmul.f32 %v1067_v46, %v1050_v27  ;;  %v1057_v57 = vmul.f32 %v1056_v51, %v1050_v27  ;;  %v1043_v59 = vand.u32 2147483648, %v1031_v44  ;;  %v3529_v51 = vld [vmem:[#allocation11] sm:$0xff] }
 0x143   : > { %v1041_v62 = vand.u32 2147483647, %v1031_v44  ;;  %vm1037_vm1 = vweird.f32 %v1031_v44  ;;  %v1021_v3 = vmul.f32 %v1020_v60, %v1007_v12  ;;  %1229 = vmatpush.bf16.msra.mxu1 %v3534_v18 }
 0x144   : > { %v1069_v50 = vadd.f32 0.4994258, %v1068_v48  ;;  %v1058_v63 = vadd.f32 0.18741608, %v1057_v57  ;;  %v1044_v1 = vor.u32 1.1754944e-38, %v1043_v59  ;;  %v3530_v48 = vld [vmem:[#allocation11 + $0x8] sm:$0xff] }
 0x145   : > { %vm1042_vm3 = vcmp.eq.f32.partialorder %v1041_v62, 8.507059e+37 }
 0x146   : > { %v1070_v52 = vmul.f32 %v1069_v50, %v1050_v27  ;;  %v1059_v6 = vmul.f32 %v1058_v63, %v1050_v27 }
 0x147   : > { %1230 = vmatpush.bf16.msra.mxu1 %v3533_v39 }
 0x148   : > { %v3840_v53 = vpop.eup %3839  ;;  %v1071_v56 = vadd.f32 1.0, %v1070_v52  ;;  %v1060_v14 = vadd.f32 1.1283791, %v1059_v6 }
 0x149   : > { %v1033_v55 = vmul.f32 %v3840_v53, %v1031_v44  ;;  %vm1038_vm0 = vweird.f32 %v3840_v53  ;;  %v3531_v44 = vld [vmem:[#allocation11 + $0x10] sm:$0xff] }
 0x14a   : > { %3841 = vrcp.f32 %v1071_v56  ;;  %vm1039_vm2 = vmor %vm1037_vm1, %vm1038_vm0  ;;  %v1083_v10 = vand.u32 2147483648, %v1071_v56  ;;  %v1081_v16 = vand.u32 2147483647, %v1071_v56  ;;  %vm1077_vm5 = vweird.f32 %v1071_v56 }
 0x14b   : > { %v1034_v58 = vsub.f32 1.0, %v1033_v55  ;;  %v1061_v23 = vmul.f32 %v1060_v14, %v4905_v21  ;;  %3843 = vrcp.f32 %v4533_v31  ;;  %1231 = vmatpush.bf16.msra.mxu1 %v3532_v41 }
 0x14c   : > { %v1084_v12 = vor.u32 1.1754944e-38, %v1083_v10  ;;  %vm1082_vm7 = vcmp.eq.f32.partialorder %v1081_v16, 8.507059e+37 }
 0x14d   : > { %v1035_v61 = vmul.f32 %v3840_v53, %v1034_v58 }
 0x14f   : > { %v1036_v0 = vadd.f32 %v3840_v53, %v1035_v61  ;;  %1232 = vmatpush.bf16.msra.mxu1 %v3531_v44 }
 0x150   : > { %v3842_v2 = vpop.eup %3841 }
 0x151   : > { %v1040_v4 = vsel %vm1039_vm2, %v3840_v53, %v1036_v0  ;;  %v1073_v7 = vmul.f32 %v3842_v2, %v1071_v56  ;;  %vm1078_vm4 = vweird.f32 %v3842_v2  ;;  %v3844_v32 = vpop.eup %3843 }
 0x152   : > { %v1045_v5 = vsel %vm1042_vm3, %v1044_v1, %v1040_v4  ;;  %vm1079_vm6 = vmor %vm1077_vm5, %vm1078_vm4  ;;  %v1100_v33 = vmul.f32 128.0, %v3844_v32  ;;  %vm1104_vm8 = vweird.f32 %v3844_v32 }
 0x153   : > { %v1046_v8 = vmul.f32 %v1045_v5, %v1021_v3  ;;  %v1074_v9 = vsub.f32 1.0, %v1073_v7  ;;  %1233 = vmatpush.bf16.msra.mxu1 %v3530_v48 }
 0x154   : > { %v1101_v35 = vsub.f32 1.0, %v1100_v33 }
 0x155   : > { %v3225_v13 = vclamps-f32 %v1046_v8, 1.0  ;;  %v1075_v15 = vmul.f32 %v3842_v2, %v1074_v9 }
 0x156   : > { %v1102_v37 = vmul.f32 %v3844_v32, %v1101_v35 }
 0x157   : > { %v1089_v19 = vadd.f32 1.0, %v3225_v13  ;;  %v1076_v20 = vadd.f32 %v3842_v2, %v1075_v15  ;;  %1234 = vmatpush.bf16.msra.mxu1 %v3529_v51  ;;  %v3818_v13 = vld [vmem:[#allocation8] ss:$0 sm:$0xff] }
 0x158   : > { %v1103_v38 = vadd.f32 %v3844_v32, %v1102_v37 }
 0x159   : > { %v4910_v22 = vmul.f32 %v1089_v19, %v1005_v17  ;;  %v1080_v24 = vsel %vm1079_vm6, %v3842_v2, %v1076_v20  ;;  %v3819_v20 = vld [vmem:[#allocation10] ss:$0 sm:$0xff] }
 0x15a   : > { %v1085_v25 = vsel %vm1082_vm7, %v1084_v12, %v1080_v24  ;;  %v4922_v40 = vsel %vm1104_vm8, %v3844_v32, %v1103_v38 }
 0x15b   : > { %1095 = vadd.xlane.f32.xlu0 %v4910_v22  ;;  %v1108_v26 = vmul.f32 %v4910_v22, %v4910_v22  ;;  %v1086_v27 = vmul.f32 %v1085_v25, %v1061_v23 }
 0x15d   : > { %1110 = vadd.xlane.f32.xlu1 %v1108_v26  ;;  %v3226_v11 = vclamps-f32 %v1086_v27, 1.0  ;;  %v3820_v26 = vld [vmem:[#allocation13] ss:$0 sm:$0xff] }
 0x15f   : > { %v1090_v29 = vadd.f32 1.0, %v3226_v11 }
 0x161   : > { %v4917_v30 = vmul.f32 %v1090_v29, %v1006_v28 }
 0x163   : > { %1097 = vadd.xlane.f32.xlu0 %v4917_v30  ;;  %v1109_v21 = vmul.f32 %v4917_v30, %v4917_v30 }
 0x165   : > { %1112 = vadd.xlane.f32.xlu1 %v1109_v21 }
 0x1ce   : > { %v1096_v42 = vpop.xlane.xlu0 %1095 }
 0x1cf   : > { %v1106_v43 = vmul.f32 %v4922_v40, %v1096_v42 }
 0x1d0   : > { %v1111_v45 = vpop.xlane.xlu1 %1110 }
 0x1d1   : > { %v1116_v46 = vmul.f32 %v1106_v43, %v1106_v43  ;;  %v1114_v47 = vmul.f32 %v1111_v45, %v4922_v40  ;;  %v1122_v8 = vsub.f32 %v4910_v22, %v1106_v43 }
 0x1d3   : > { %v1118_v49 = vsub.f32 %v1114_v47, %v1116_v46 }
 0x1d5   : > { %v1120_v50 = vmax.f32 %v1118_v49, 0.0 }
 0x1d6   : > { %v1098_v53 = vpop.xlane.xlu0 %1097 }
 0x1d7   : > { %v1124_v52 = vadd.f32 1e-05, %v1120_v50  ;;  %v1107_v54 = vmul.f32 %v4922_v40, %v1098_v53 }
 0x1d8   : > { %v1113_v55 = vpop.xlane.xlu1 %1112 }
 0x1d9   : > { %3845 = vrsqrt.f32 %v1124_v52  ;;  %v1117_v56 = vmul.f32 %v1107_v54, %v1107_v54  ;;  %v1115_v57 = vmul.f32 %v1113_v55, %v4922_v40  ;;  %vm1132_vm10 = vweird.f32 %v1124_v52 }
 0x1da   : > { %v1123_v15 = vsub.f32 %v4917_v30, %v1107_v54 }
 0x1db   : > { %v1119_v58 = vsub.f32 %v1115_v57, %v1117_v56 }
 0x1dd   : > { %v1121_v59 = vmax.f32 %v1119_v58, 0.0 }
 0x1df   : > { %v3846_v60 = vpop.eup %3845  ;;  %v1125_v62 = vadd.f32 1e-05, %v1121_v59 }
 0x1e0   : > { %v1127_v61 = vmul.f32 %v3846_v60, %v1124_v52  ;;  %vm1133_vm9 = vweird.f32 %v3846_v60 }
 0x1e1   : > { %3847 = vrsqrt.f32 %v1125_v62  ;;  %vm1134_vm11 = vmor %vm1132_vm10, %vm1133_vm9  ;;  %vm1142_vm13 = vweird.f32 %v1125_v62 }
 0x1e2   : > { %v1128_v63 = vmul.f32 %v3846_v60, %v1127_v61 }
 0x1e4   : > { %v1129_v0 = vmul.f32 0.5, %v1128_v63 }
 0x1e6   : > { %v1130_v1 = vsub.f32 1.5, %v1129_v0 }
 0x1e7   : > { %v3848_v2 = vpop.eup %3847 }
 0x1e8   : > { %v1137_v3 = vmul.f32 %v3848_v2, %v1125_v62  ;;  %v1131_v4 = vmul.f32 %v3846_v60, %v1130_v1  ;;  %vm1143_vm12 = vweird.f32 %v3848_v2 }
 0x1e9   : > { %vm1144_vm14 = vmor %vm1142_vm13, %vm1143_vm12 }
 0x1ea   : > { %v1138_v5 = vmul.f32 %v3848_v2, %v1137_v3  ;;  %v1135_v7 = vsel %vm1134_vm11, %v3846_v60, %v1131_v4 }
 0x1eb   : > { %v1146_v10 = vmul.f32 %v1135_v7, %v1122_v8 }
 0x1ec   : > { %v1139_v6 = vmul.f32 0.5, %v1138_v5 }
 0x1ed   : > { %v1151_v19 = vmul.f32 %v3818_v13, %v1146_v10 }
 0x1ee   : > { %v1140_v9 = vsub.f32 1.5, %v1139_v6 }
 0x1ef   : > { %v1156_v23 = vadd.f32 %v3819_v20, %v1151_v19 }
 0x1f0   : > { %v1141_v14 = vmul.f32 %v3848_v2, %v1140_v9 }
 0x1f2   : > { %v1145_v16 = vsel %vm1144_vm14, %v3848_v2, %v1141_v14 }
 0x1f3   : > { %v1147_v17 = vmul.f32 %v1145_v16, %v1123_v15 }
 0x1f5   : > { %v1152_v12 = vmul.f32 %v3818_v13, %v1147_v17 }
 0x1f7   : > { %v1157_v24 = vadd.f32 %v3819_v20, %v1152_v12 }
 0x1f9   : > { %v1158_v25 = vpack.c.bf16 %v1157_v24, %v1156_v23 }
 0x1fb   : > { %1235 = vmatmul.bf16.vlgmr.msra.gmra.mxu1 %v1158_v25 }
 0x278   : > { %v1236_v22 = vpop.f32.mrf.mxu1 }
 0x279   : > { %v4930_v27 = vadd.f32 %v3820_v26, %v1236_v22 }
 0x27b   : > { %v1243_v11 = vmul.f32 0.70710677, %v4930_v27 }
 0x27d   : > { %v1245_v28 = vmul.f32 %v1243_v11, %v1243_v11 }
 0x27f   : > { %v1246_v29 = vmin.f32 %v1245_v28, 16.0 }
 0x280   : > { %v1238_v21 = vpop.f32.mrf.mxu1 }
 0x281   : > { %v1247_v30 = vmul.f32 2.1237322e-06, %v1246_v29  ;;  %v1258_v31 = vmul.f32 3.8918573e-05, %v1246_v29  ;;  %v4933_v32 = vadd.f32 %v3820_v26, %v1238_v21 }
 0x283   : > { %v1248_v33 = vadd.f32 0.00028619796, %v1247_v30  ;;  %v1259_v34 = vadd.f32 0.001143296, %v1258_v31  ;;  %v4936_v35 = vmul.f32 0.70710677, %v4933_v32 }
 0x285   : > { %v1249_v36 = vmul.f32 %v1248_v33, %v1246_v29  ;;  %v1260_v37 = vmul.f32 %v1259_v34, %v1246_v29  ;;  %v1285_v18 = vmul.f32 %v4936_v35, %v4936_v35  ;;  %v1241_v33 = vmul.f32 0.5, %v4930_v27 }
 0x287   : > { %v1261_v38 = vadd.f32 0.014752088, %v1260_v37  ;;  %v1250_v39 = vadd.f32 0.0036580483, %v1249_v36  ;;  %v1286_v41 = vmin.f32 %v1285_v18, 16.0 }
 0x289   : > { %v1262_v42 = vmul.f32 %v1261_v38, %v1246_v29  ;;  %v1287_v43 = vmul.f32 2.1237322e-06, %v1286_v41  ;;  %v1298_v44 = vmul.f32 3.8918573e-05, %v1286_v41  ;;  %v1251_v46 = vmul.f32 %v1250_v39, %v1246_v29 }
 0x28b   : > { %v1263_v45 = vadd.f32 0.112945676, %v1262_v42  ;;  %v1288_v47 = vadd.f32 0.00028619796, %v1287_v43  ;;  %v1299_v48 = vadd.f32 0.001143296, %v1298_v44 }
 0x28c   : > { %v1252_v53 = vadd.f32 0.05243302, %v1251_v46  ;;  %v1242_v43 = vmul.f32 0.5, %v4933_v32  ;;  %v3544_v46 = vld [vmem:[#allocation11 + $0x78] sm:$0xff] }
 0x28d   : > { %v1264_v49 = vmul.f32 %v1263_v45, %v1246_v29  ;;  %v1289_v50 = vmul.f32 %v1288_v47, %v1286_v41  ;;  %v1300_v51 = vmul.f32 %v1299_v48, %v1286_v41  ;;  %1460 = vmatpush.bf16.msra.mxu2 %v3544_v46  ;;  %v3543_v47 = vld [vmem:[#allocation11 + $0x70] sm:$0xff]  ;;  %v3542_v48 = vld [vmem:[#allocation11 + $0x68] sm:$0xff] }
 0x28e   : > { %v1253_v59 = vmul.f32 %v1252_v53, %v1246_v29 }
 0x28f   : > { %v1265_v52 = vadd.f32 0.4994258, %v1264_v49  ;;  %v1301_v54 = vadd.f32 0.014752088, %v1300_v51  ;;  %v1290_v56 = vadd.f32 0.0036580483, %v1289_v50 }
 0x290   : > { %v1254_v63 = vadd.f32 0.18741608, %v1253_v59  ;;  %v3541_v49 = vld [vmem:[#allocation11 + $0x60] sm:$0xff]  ;;  %v3540_v50 = vld [vmem:[#allocation11 + $0x58] sm:$0xff] }
 0x291   : > { %v1266_v55 = vmul.f32 %v1265_v52, %v1246_v29  ;;  %v1302_v57 = vmul.f32 %v1301_v54, %v1286_v41  ;;  %v1291_v61 = vmul.f32 %v1290_v56, %v1286_v41  ;;  %1461 = vmatpush.bf16.msra.mxu2 %v3543_v47  ;;  %v3539_v52 = vld [vmem:[#allocation11 + $0x50] sm:$0xff]  ;;  %v3538_v56 = vld [vmem:[#allocation11 + $0x48] sm:$0xff]  ;;  %v3537_v59 = vld [vmem:[#allocation11 + $0x40] sm:$0xff] }
 0x292   : > { %v1255_v4 = vmul.f32 %v1254_v63, %v1246_v29 }
 0x293   : > { %v1267_v58 = vadd.f32 1.0, %v1266_v55  ;;  %v1303_v60 = vadd.f32 0.112945676, %v1302_v57  ;;  %v1292_v1 = vadd.f32 0.05243302, %v1291_v61 }
 0x294   : > { %v1256_v10 = vadd.f32 1.1283791, %v1255_v4 }
 0x295   : > { %3849 = vrcp.f32 %v1267_v58  ;;  %v1304_v62 = vmul.f32 %v1303_v60, %v1286_v41  ;;  %v1293_v7 = vmul.f32 %v1292_v1, %v1286_v41  ;;  %v1279_v9 = vand.u32 2147483648, %v1267_v58  ;;  %1462 = vmatpush.bf16.msra.mxu2 %v3542_v48 }
 0x296   : > { %v1277_v14 = vand.u32 2147483647, %v1267_v58  ;;  %vm1273_vm0 = vweird.f32 %v1267_v58  ;;  %v1257_v20 = vmul.f32 %v1256_v10, %v1243_v11 }
 0x297   : > { %v1305_v0 = vadd.f32 0.4994258, %v1304_v62  ;;  %v1294_v15 = vadd.f32 0.18741608, %v1293_v7  ;;  %v1280_v17 = vor.u32 1.1754944e-38, %v1279_v9 }
 0x298   : > { %vm1278_vm2 = vcmp.eq.f32.partialorder %v1277_v14, 8.507059e+37 }
 0x299   : > { %v1306_v2 = vmul.f32 %v1305_v0, %v1286_v41  ;;  %v1295_v24 = vmul.f32 %v1294_v15, %v1286_v41  ;;  %1463 = vmatpush.bf16.msra.mxu2 %v3541_v49 }
 0x29b   : > { %v3850_v3 = vpop.eup %3849  ;;  %v1307_v6 = vadd.f32 1.0, %v1306_v2  ;;  %v1296_v21 = vadd.f32 1.1283791, %v1295_v24 }
 0x29c   : > { %v1269_v5 = vmul.f32 %v3850_v3, %v1267_v58  ;;  %vm1274_vm15 = vweird.f32 %v3850_v3 }
 0x29d   : > { %3851 = vrcp.f32 %v1307_v6  ;;  %vm1275_vm1 = vmor %vm1273_vm0, %vm1274_vm15  ;;  %v1319_v28 = vand.u32 2147483648, %v1307_v6  ;;  %v1317_v31 = vand.u32 2147483647, %v1307_v6  ;;  %vm1313_vm4 = vweird.f32 %v1307_v6  ;;  %1464 = vmatpush.bf16.msra.mxu2 %v3540_v50 }
 0x29e   : > { %v1270_v8 = vsub.f32 1.0, %v1269_v5  ;;  %v1297_v18 = vmul.f32 %v1296_v21, %v4936_v35 }
 0x29f   : > { %v1320_v11 = vor.u32 1.1754944e-38, %v1319_v28  ;;  %vm1318_vm6 = vcmp.eq.f32.partialorder %v1317_v31, 8.507059e+37 }
 0x2a0   : > { %v1271_v13 = vmul.f32 %v3850_v3, %v1270_v8 }
 0x2a1   : > { %1465 = vmatpush.bf16.msra.mxu2 %v3539_v52 }
 0x2a2   : > { %v1272_v16 = vadd.f32 %v3850_v3, %v1271_v13 }
 0x2a3   : > { %v3852_v19 = vpop.eup %3851 }
 0x2a4   : > { %v1276_v12 = vsel %vm1275_vm1, %v3850_v3, %v1272_v16  ;;  %v1309_v25 = vmul.f32 %v3852_v19, %v1307_v6  ;;  %vm1314_vm3 = vweird.f32 %v3852_v19 }
 0x2a5   : > { %v1281_v23 = vsel %vm1278_vm2, %v1280_v17, %v1276_v12  ;;  %vm1315_vm5 = vmor %vm1313_vm4, %vm1314_vm3  ;;  %1466 = vmatpush.bf16.msra.mxu2 %v3538_v56 }
 0x2a6   : > { %v1282_v26 = vmul.f32 %v1281_v23, %v1257_v20  ;;  %v1310_v22 = vsub.f32 1.0, %v1309_v25  ;;  %v3821_v23 = vld [vmem:[#allocation8 + $0x1] ss:$0 sm:$0xff] }
 0x2a8   : > { %v3259_v29 = vclamps-f32 %v1282_v26, 1.0  ;;  %v1311_v30 = vmul.f32 %v3852_v19, %v1310_v22 }
 0x2a9   : > { %1467 = vmatpush.bf16.msra.mxu2 %v3537_v59 }
 0x2aa   : > { %v1325_v34 = vadd.f32 1.0, %v3259_v29  ;;  %v1312_v36 = vadd.f32 %v3852_v19, %v1311_v30  ;;  %v3822_v29 = vld [vmem:[#allocation10 + $0x1] ss:$0 sm:$0xff] }
 0x2ac   : > { %v4941_v37 = vmul.f32 %v1325_v34, %v1241_v33  ;;  %v1316_v38 = vsel %vm1315_vm5, %v3852_v19, %v1312_v36  ;;  %v3823_v34 = vld [vmem:[#allocation13 + $0x1] ss:$0 sm:$0xff] }
 0x2ad   : > { %v1321_v39 = vsel %vm1318_vm6, %v1320_v11, %v1316_v38 }
 0x2ae   : > { %1333 = vadd.xlane.f32.xlu2 %v4941_v37  ;;  %v1339_v41 = vmul.f32 %v4941_v37, %v4941_v37  ;;  %v1322_v42 = vmul.f32 %v1321_v39, %v1297_v18 }
 0x2b0   : > { %1341 = vadd.xlane.f32.xlu0 %v1339_v41  ;;  %v3260_v27 = vclamps-f32 %v1322_v42, 1.0 }
 0x2b2   : > { %v1326_v44 = vadd.f32 1.0, %v3260_v27 }
 0x2b4   : > { %v4948_v45 = vmul.f32 %v1326_v44, %v1242_v43 }
 0x2b6   : > { %1335 = vadd.xlane.f32.xlu2 %v4948_v45  ;;  %v1340_v35 = vmul.f32 %v4948_v45, %v4948_v45 }
 0x2b8   : > { %1343 = vadd.xlane.f32.xlu1 %v1340_v35 }
 0x321   : > { %v1334_v51 = vpop.xlane.xlu2 %1333 }
 0x322   : > { %v1337_v32 = vmul.f32 %v1334_v51, %v4922_v40 }
 0x323   : > { %v1342_v53 = vpop.xlane.xlu0 %1341 }
 0x324   : > { %v1347_v54 = vmul.f32 %v1337_v32, %v1337_v32  ;;  %v1345_v55 = vmul.f32 %v1342_v53, %v4922_v40  ;;  %v1353_v19 = vsub.f32 %v4941_v37, %v1337_v32 }
 0x326   : > { %v1349_v57 = vsub.f32 %v1345_v55, %v1347_v54 }
 0x328   : > { %v1351_v58 = vmax.f32 %v1349_v57, 0.0 }
 0x329   : > { %v1336_v61 = vpop.xlane.xlu2 %1335 }
 0x32a   : > { %v1355_v60 = vadd.f32 1e-05, %v1351_v58  ;;  %v1338_v62 = vmul.f32 %v1336_v61, %v4922_v40 }
 0x32b   : > { %v1344_v63 = vpop.xlane.xlu1 %1343 }
 0x32c   : > { %3853 = vrsqrt.f32 %v1355_v60  ;;  %v1348_v0 = vmul.f32 %v1338_v62, %v1338_v62  ;;  %v1346_v1 = vmul.f32 %v1344_v63, %v4922_v40  ;;  %vm1363_vm8 = vweird.f32 %v1355_v60 }
 0x32d   : > { %v1354_v25 = vsub.f32 %v4948_v45, %v1338_v62 }
 0x32e   : > { %v1350_v2 = vsub.f32 %v1346_v1, %v1348_v0 }
 0x330   : > { %v1352_v3 = vmax.f32 %v1350_v2, 0.0 }
 0x332   : > { %v3854_v4 = vpop.eup %3853  ;;  %v1356_v6 = vadd.f32 1e-05, %v1352_v3 }
 0x333   : > { %v1358_v5 = vmul.f32 %v3854_v4, %v1355_v60  ;;  %vm1364_vm7 = vweird.f32 %v3854_v4 }
 0x334   : > { %3855 = vrsqrt.f32 %v1356_v6  ;;  %vm1365_vm9 = vmor %vm1363_vm8, %vm1364_vm7  ;;  %vm1373_vm11 = vweird.f32 %v1356_v6 }
 0x335   : > { %v1359_v7 = vmul.f32 %v3854_v4, %v1358_v5 }
 0x337   : > { %v1360_v8 = vmul.f32 0.5, %v1359_v7 }
 0x339   : > { %v1361_v9 = vsub.f32 1.5, %v1360_v8 }
 0x33a   : > { %v3856_v10 = vpop.eup %3855 }
 0x33b   : > { %v1368_v13 = vmul.f32 %v3856_v10, %v1356_v6  ;;  %v1362_v14 = vmul.f32 %v3854_v4, %v1361_v9  ;;  %vm1374_vm10 = vweird.f32 %v3856_v10 }
 0x33c   : > { %vm1375_vm12 = vmor %vm1373_vm11, %vm1374_vm10 }
 0x33d   : > { %v1369_v15 = vmul.f32 %v3856_v10, %v1368_v13  ;;  %v1366_v17 = vsel %vm1365_vm9, %v3854_v4, %v1362_v14 }
 0x33e   : > { %v1377_v12 = vmul.f32 %v1366_v17, %v1353_v19 }
 0x33f   : > { %v1370_v16 = vmul.f32 0.5, %v1369_v15 }
 0x340   : > { %v1382_v28 = vmul.f32 %v3821_v23, %v1377_v12 }
 0x341   : > { %v1371_v20 = vsub.f32 1.5, %v1370_v16 }
 0x342   : > { %v1387_v30 = vadd.f32 %v3822_v29, %v1382_v28 }
 0x343   : > { %v1372_v24 = vmul.f32 %v3856_v10, %v1371_v20 }
 0x345   : > { %v1376_v26 = vsel %vm1375_vm12, %v3856_v10, %v1372_v24 }
 0x346   : > { %v1378_v22 = vmul.f32 %v1376_v26, %v1354_v25 }
 0x348   : > { %v1383_v21 = vmul.f32 %v3821_v23, %v1378_v22 }
 0x34a   : > { %v1388_v31 = vadd.f32 %v3822_v29, %v1383_v21 }
 0x34c   : > { %v1389_v33 = vpack.c.bf16 %v1388_v31, %v1387_v30 }
 0x34e   : > { %1468 = vmatmul.bf16.vlgmr.msra.gmra.mxu2 %v1389_v33 }
 0x3d1   : > { %v1469_v36 = vpop.f32.mrf.mxu2 }
 0x3d2   : > { %v4959_v11 = vadd.f32 %v3823_v34, %v1469_v36 }
 0x3d4   : > { %v1476_v37 = vmul.f32 0.70710677, %v4959_v11 }
 0x3d6   : > { %v1478_v18 = vmul.f32 %v1476_v37, %v1476_v37 }
 0x3d8   : > { %v1479_v38 = vmin.f32 %v1478_v18, 16.0 }
 0x3d9   : > { %v1471_v39 = vpop.f32.mrf.mxu2 }
 0x3da   : > { %v1480_v41 = vmul.f32 2.1237322e-06, %v1479_v38  ;;  %v1491_v42 = vmul.f32 3.8918573e-05, %v1479_v38  ;;  %v4962_v27 = vadd.f32 %v3823_v34, %v1471_v39 }
 0x3dc   : > { %v1481_v43 = vadd.f32 0.00028619796, %v1480_v41  ;;  %v1492_v44 = vadd.f32 0.001143296, %v1491_v42  ;;  %v4965_v45 = vmul.f32 0.70710677, %v4962_v27 }
 0x3de   : > { %v1482_v35 = vmul.f32 %v1481_v43, %v1479_v38  ;;  %v1493_v46 = vmul.f32 %v1492_v44, %v1479_v38  ;;  %v1518_v47 = vmul.f32 %v4965_v45, %v4965_v45  ;;  %v1474_v43 = vmul.f32 0.5, %v4959_v11 }
 0x3e0   : > { %v1494_v48 = vadd.f32 0.014752088, %v1493_v46  ;;  %v1483_v49 = vadd.f32 0.0036580483, %v1482_v35  ;;  %v1519_v50 = vmin.f32 %v1518_v47, 16.0 }
 0x3e2   : > { %v1495_v51 = vmul.f32 %v1494_v48, %v1479_v38  ;;  %v1520_v32 = vmul.f32 2.1237322e-06, %v1519_v50  ;;  %v1531_v52 = vmul.f32 3.8918573e-05, %v1519_v50  ;;  %v1484_v54 = vmul.f32 %v1483_v49, %v1479_v38 }
 0x3e4   : > { %v1496_v53 = vadd.f32 0.112945676, %v1495_v51  ;;  %v1521_v55 = vadd.f32 0.00028619796, %v1520_v32  ;;  %v1532_v56 = vadd.f32 0.001143296, %v1531_v52 }
 0x3e5   : > { %v1485_v61 = vadd.f32 0.05243302, %v1484_v54  ;;  %v1475_v32 = vmul.f32 0.5, %v4962_v27  ;;  %v3552_v54 = vld [vmem:[#allocation11 + $0xb8] sm:$0xff] }
 0x3e6   : > { %v1497_v57 = vmul.f32 %v1496_v53, %v1479_v38  ;;  %v1522_v58 = vmul.f32 %v1521_v55, %v1519_v50  ;;  %v1533_v59 = vmul.f32 %v1532_v56, %v1519_v50  ;;  %1693 = vmatpush.bf16.msra.mxu3 %v3552_v54  ;;  %v3551_v55 = vld [vmem:[#allocation11 + $0xb0] sm:$0xff]  ;;  %v3550_v56 = vld [vmem:[#allocation11 + $0xa8] sm:$0xff] }
 0x3e7   : > { %v1486_v3 = vmul.f32 %v1485_v61, %v1479_v38 }
 0x3e8   : > { %v1498_v60 = vadd.f32 0.4994258, %v1497_v57  ;;  %v1534_v62 = vadd.f32 0.014752088, %v1533_v59  ;;  %v1523_v0 = vadd.f32 0.0036580483, %v1522_v58 }
 0x3e9   : > { %v1487_v7 = vadd.f32 0.18741608, %v1486_v3  ;;  %v3549_v57 = vld [vmem:[#allocation11 + $0xa0] sm:$0xff]  ;;  %v3548_v58 = vld [vmem:[#allocation11 + $0x98] sm:$0xff] }
 0x3ea   : > { %v1499_v63 = vmul.f32 %v1498_v60, %v1479_v38  ;;  %v1535_v1 = vmul.f32 %v1534_v62, %v1519_v50  ;;  %v1524_v5 = vmul.f32 %v1523_v0, %v1519_v50  ;;  %1694 = vmatpush.bf16.msra.mxu3 %v3551_v55  ;;  %v3547_v60 = vld [vmem:[#allocation11 + $0x90] sm:$0xff]  ;;  %v3546_v0 = vld [vmem:[#allocation11 + $0x88] sm:$0xff]  ;;  %v3545_v3 = vld [vmem:[#allocation11 + $0x80] sm:$0xff] }
 0x3eb   : > { %v1488_v14 = vmul.f32 %v1487_v7, %v1479_v38 }
 0x3ec   : > { %v1500_v2 = vadd.f32 1.0, %v1499_v63  ;;  %v1536_v4 = vadd.f32 0.112945676, %v1535_v1  ;;  %v1525_v9 = vadd.f32 0.05243302, %v1524_v5 }
 0x3ed   : > { %v1489_v12 = vadd.f32 1.1283791, %v1488_v14 }
 0x3ee   : > { %3857 = vrcp.f32 %v1500_v2  ;;  %v1537_v6 = vmul.f32 %v1536_v4, %v1519_v50  ;;  %v1526_v17 = vmul.f32 %v1525_v9, %v1519_v50  ;;  %v1512_v20 = vand.u32 2147483648, %v1500_v2  ;;  %1695 = vmatpush.bf16.msra.mxu3 %v3550_v56 }
 0x3ef   : > { %v1510_v24 = vand.u32 2147483647, %v1500_v2  ;;  %vm1506_vm14 = vweird.f32 %v1500_v2  ;;  %v1490_v29 = vmul.f32 %v1489_v12, %v1476_v37 }
 0x3f0   : > { %v1538_v8 = vadd.f32 0.4994258, %v1537_v6  ;;  %v1527_v25 = vadd.f32 0.18741608, %v1526_v17  ;;  %v1513_v22 = vor.u32 1.1754944e-38, %v1512_v20 }
 0x3f1   : > { %vm1511_vm0 = vcmp.eq.f32.partialorder %v1510_v24, 8.507059e+37 }
 0x3f2   : > { %v1539_v10 = vmul.f32 %v1538_v8, %v1519_v50  ;;  %v1528_v31 = vmul.f32 %v1527_v25, %v1519_v50  ;;  %1696 = vmatpush.bf16.msra.mxu3 %v3549_v57  ;;  %v3557_v57 = vld [vmem:[#allocation14 + $0x20] sm:$0xff] }
 0x3f4   : > { %v3858_v13 = vpop.eup %3857  ;;  %v1540_v16 = vadd.f32 1.0, %v1539_v10  ;;  %v1529_v39 = vadd.f32 1.1283791, %v1528_v31 }
 0x3f5   : > { %v1502_v15 = vmul.f32 %v3858_v13, %v1500_v2  ;;  %vm1507_vm13 = vweird.f32 %v3858_v13 }
 0x3f6   : > { %3859 = vrcp.f32 %v1540_v16  ;;  %vm1508_vm15 = vmor %vm1506_vm14, %vm1507_vm13  ;;  %v1552_v18 = vand.u32 2147483648, %v1540_v16  ;;  %v1550_v42 = vand.u32 2147483647, %v1540_v16  ;;  %vm1546_vm2 = vweird.f32 %v1540_v16  ;;  %1697 = vmatpush.bf16.msra.mxu3 %v3548_v58 }
 0x3f7   : > { %v1503_v19 = vsub.f32 1.0, %v1502_v15  ;;  %v1530_v47 = vmul.f32 %v1529_v39, %v4965_v45 }
 0x3f8   : > { %v1553_v37 = vor.u32 1.1754944e-38, %v1552_v18  ;;  %vm1551_vm4 = vcmp.eq.f32.partialorder %v1550_v42, 8.507059e+37 }
 0x3f9   : > { %v1504_v23 = vmul.f32 %v3858_v13, %v1503_v19 }
 0x3fa   : > { %1698 = vmatpush.bf16.msra.mxu3 %v3547_v60 }
 0x3fb   : > { %v1505_v26 = vadd.f32 %v3858_v13, %v1504_v23 }
 0x3fc   : > { %v3860_v28 = vpop.eup %3859 }
 0x3fd   : > { %v1509_v21 = vsel %vm1508_vm15, %v3858_v13, %v1505_v26  ;;  %v1542_v33 = vmul.f32 %v3860_v28, %v1540_v16  ;;  %vm1547_vm1 = vweird.f32 %v3860_v28 }
 0x3fe   : > { %v1514_v30 = vsel %vm1511_vm0, %v1513_v22, %v1509_v21  ;;  %vm1548_vm3 = vmor %vm1546_vm2, %vm1547_vm1  ;;  %1699 = vmatpush.bf16.msra.mxu3 %v3546_v0 }
 0x3ff   : > { %v1515_v34 = vmul.f32 %v1514_v30, %v1490_v29  ;;  %v1543_v36 = vsub.f32 1.0, %v1542_v33  ;;  %v3824_v30 = vld [vmem:[#allocation8 + $0x2] ss:$0 sm:$0xff] }
 0x401   : > { %v3293_v38 = vclamps-f32 %v1515_v34, 1.0  ;;  %v1544_v41 = vmul.f32 %v3860_v28, %v1543_v36 }
 0x402   : > { %1700 = vmatpush.bf16.msra.mxu3 %v3545_v3 }
 0x403   : > { %v1558_v44 = vadd.f32 1.0, %v3293_v38  ;;  %v1545_v35 = vadd.f32 %v3860_v28, %v1544_v41  ;;  %v3825_v38 = vld [vmem:[#allocation10 + $0x2] ss:$0 sm:$0xff] }
 0x405   : > { %v4970_v46 = vmul.f32 %v1558_v44, %v1474_v43  ;;  %v1549_v48 = vsel %vm1548_vm3, %v3860_v28, %v1545_v35  ;;  %v3826_v44 = vld [vmem:[#allocation13 + $0x2] ss:$0 sm:$0xff]  ;;  %vm1910_vm3 = vcmask 523264  }
 0x406   : > { %v1554_v49 = vsel %vm1551_vm4, %v1553_v37, %v1549_v48 }
 0x407   : > { %1566 = vadd.xlane.f32.xlu2 %v4970_v46  ;;  %v1572_v50 = vmul.f32 %v4970_v46, %v4970_v46  ;;  %v1555_v51 = vmul.f32 %v1554_v49, %v1530_v47  ;;  %v3559_v49 = vld [vmem:[#allocation14 + $0x30] sm:$0xff] }
 0x409   : > { %1574 = vadd.xlane.f32.xlu1 %v1572_v50  ;;  %v3294_v11 = vclamps-f32 %v1555_v51, 1.0 }
 0x40b   : > { %v1559_v52 = vadd.f32 1.0, %v3294_v11 }
 0x40d   : > { %v4977_v53 = vmul.f32 %v1559_v52, %v1475_v32 }
 0x40f   : > { %1568 = vadd.xlane.f32.xlu0 %v4977_v53  ;;  %v1573_v45 = vmul.f32 %v4977_v53, %v4977_v53 }
 0x411   : > { %1576 = vadd.xlane.f32.xlu2 %v1573_v45 }
 0x47a   : > { %v1567_v59 = vpop.xlane.xlu2 %1566 }
 0x47b   : > { %v1570_v27 = vmul.f32 %v1567_v59, %v4922_v40 }
 0x47c   : > { %v1575_v61 = vpop.xlane.xlu1 %1574 }
 0x47d   : > { %v1580_v62 = vmul.f32 %v1570_v27, %v1570_v27  ;;  %v1578_v63 = vmul.f32 %v1575_v61, %v4922_v40  ;;  %v1586_v28 = vsub.f32 %v4970_v46, %v1570_v27  ;;  %v3560_v46 = vld [vmem:[#allocation14 + $0x38] sm:$0xff] }
 0x47e   : > { %1864 = vmatpush.bf16.msrb.mxu0 %v3560_v46 }
 0x47f   : > { %v1582_v1 = vsub.f32 %v1578_v63, %v1580_v62  ;;  %v3556_v62 = vld [vmem:[#allocation14 + $0x18] sm:$0xff] }
 0x481   : > { %v1584_v2 = vmax.f32 %v1582_v1, 0.0 }
 0x482   : > { %v1569_v5 = vpop.xlane.xlu0 %1568  ;;  %1865 = vmatpush.bf16.msrb.mxu0 %v3559_v49 }
 0x483   : > { %v1588_v4 = vadd.f32 1e-05, %v1584_v2  ;;  %v1571_v6 = vmul.f32 %v1569_v5, %v4922_v40 }
 0x484   : > { %v1577_v7 = vpop.xlane.xlu2 %1576 }
 0x485   : > { %3861 = vrsqrt.f32 %v1588_v4  ;;  %v1581_v8 = vmul.f32 %v1571_v6, %v1571_v6  ;;  %v1579_v9 = vmul.f32 %v1577_v7, %v4922_v40  ;;  %vm1596_vm6 = vweird.f32 %v1588_v4 }
 0x486   : > { %v1587_v33 = vsub.f32 %v4977_v53, %v1571_v6  ;;  %v3558_v53 = vld [vmem:[#allocation14 + $0x28] sm:$0xff]  ;;  %v3555_v6 = vld [vmem:[#allocation14 + $0x10] sm:$0xff] }
 0x487   : > { %v1583_v10 = vsub.f32 %v1579_v9, %v1581_v8  ;;  %1866 = vmatpush.bf16.msrb.mxu0 %v3558_v53 }
 0x489   : > { %v1585_v13 = vmax.f32 %v1583_v10, 0.0 }
 0x48b   : > { %v3862_v14 = vpop.eup %3861  ;;  %v1589_v16 = vadd.f32 1e-05, %v1585_v13  ;;  %1867 = vmatpush.bf16.msrb.mxu0 %v3557_v57 }
 0x48c   : > { %v1591_v15 = vmul.f32 %v3862_v14, %v1588_v4  ;;  %vm1597_vm5 = vweird.f32 %v3862_v14 }
 0x48d   : > { %3863 = vrsqrt.f32 %v1589_v16  ;;  %vm1598_vm7 = vmor %vm1596_vm6, %vm1597_vm5  ;;  %vm1606_vm9 = vweird.f32 %v1589_v16 }
 0x48e   : > { %v1592_v17 = vmul.f32 %v3862_v14, %v1591_v15 }
 0x48f   : > { %1868 = vmatpush.bf16.msrb.mxu0 %v3556_v62 }
 0x490   : > { %v1593_v19 = vmul.f32 0.5, %v1592_v17 }
 0x492   : > { %v1594_v20 = vsub.f32 1.5, %v1593_v19 }
 0x493   : > { %v3864_v12 = vpop.eup %3863  ;;  %1869 = vmatpush.bf16.msrb.mxu0 %v3555_v6 }
 0x494   : > { %v1601_v23 = vmul.f32 %v3864_v12, %v1589_v16  ;;  %v1595_v24 = vmul.f32 %v3862_v14, %v1594_v20  ;;  %vm1607_vm8 = vweird.f32 %v3864_v12  ;;  %v3554_v16 = vld [vmem:[#allocation14 + $0x8] sm:$0xff] }
 0x495   : > { %vm1608_vm10 = vmor %vm1606_vm9, %vm1607_vm8 }
 0x496   : > { %v1602_v25 = vmul.f32 %v3864_v12, %v1601_v23  ;;  %v1599_v22 = vsel %vm1598_vm7, %v3862_v14, %v1595_v24  ;;  %v3553_v24 = vld [vmem:[#allocation14] sm:$0xff] }
 0x497   : > { %v1610_v21 = vmul.f32 %v1599_v22, %v1586_v28  ;;  %1870 = vmatpush.bf16.msrb.mxu0 %v3554_v16 }
 0x498   : > { %v1603_v26 = vmul.f32 0.5, %v1602_v25 }
 0x499   : > { %v1615_v18 = vmul.f32 %v3824_v30, %v1610_v21 }
 0x49a   : > { %v1604_v29 = vsub.f32 1.5, %v1603_v26 }
 0x49b   : > { %v1620_v41 = vadd.f32 %v3825_v38, %v1615_v18  ;;  %1871 = vmatpush.bf16.msrb.mxu0 %v3553_v24 }
 0x49c   : > { %v1605_v31 = vmul.f32 %v3864_v12, %v1604_v29 }
 0x49e   : > { %v1609_v34 = vsel %vm1608_vm10, %v3864_v12, %v1605_v31 }
 0x49f   : > { %v1611_v36 = vmul.f32 %v1609_v34, %v1587_v33 }
 0x4a1   : > { %v1616_v39 = vmul.f32 %v3824_v30, %v1611_v36 }
 0x4a3   : > { %v1621_v42 = vadd.f32 %v3825_v38, %v1616_v39 }
 0x4a5   : > { %v1622_v43 = vpack.c.bf16 %v1621_v42, %v1620_v41 }
 0x4a7   : > { %1701 = vmatmul.bf16.vlgmr.msra.gmra.mxu3 %v1622_v43 }
 0x52a   : > { %v1702_v35 = vpop.f32.mrf.mxu3 }
 0x52b   : > { %v4988_v37 = vadd.f32 %v3826_v44, %v1702_v35 }
 0x52d   : > { %v4991_v47 = vmul.f32 0.70710677, %v4988_v37 }
 0x52f   : > { %v1711_v48 = vmul.f32 %v4991_v47, %v4991_v47 }
 0x531   : > { %v1712_v50 = vmin.f32 %v1711_v48, 16.0 }
 0x532   : > { %v1704_v51 = vpop.f32.mrf.mxu3 }
 0x533   : > { %v1713_v11 = vmul.f32 2.1237322e-06, %v1712_v50  ;;  %v1724_v32 = vmul.f32 3.8918573e-05, %v1712_v50  ;;  %v4995_v52 = vadd.f32 %v3826_v44, %v1704_v51 }
 0x535   : > { %v1714_v45 = vadd.f32 0.00028619796, %v1713_v11  ;;  %v1725_v54 = vadd.f32 0.001143296, %v1724_v32  ;;  %v4998_v55 = vmul.f32 0.70710677, %v4995_v52 }
 0x537   : > { %v1726_v56 = vmul.f32 %v1725_v54, %v1712_v50  ;;  %v1751_v58 = vmul.f32 %v4998_v55, %v4998_v55  ;;  %v1715_v59 = vmul.f32 %v1714_v45, %v1712_v50 }
 0x539   : > { %v1727_v27 = vadd.f32 0.014752088, %v1726_v56  ;;  %v1752_v60 = vmin.f32 %v1751_v58, 16.0  ;;  %v1716_v1 = vadd.f32 0.0036580483, %v1715_v59 }
 0x53b   : > { %v1728_v61 = vmul.f32 %v1727_v27, %v1712_v50  ;;  %v1753_v63 = vmul.f32 2.1237322e-06, %v1752_v60  ;;  %v1764_v0 = vmul.f32 3.8918573e-05, %v1752_v60  ;;  %v1717_v9 = vmul.f32 %v1716_v1, %v1712_v50 }
 0x53c   : > { %v1707_v1 = vmul.f32 0.5, %v4988_v37 }
 0x53d   : > { %v1729_v2 = vadd.f32 0.112945676, %v1728_v61  ;;  %v1754_v3 = vadd.f32 0.00028619796, %v1753_v63  ;;  %v1765_v4 = vadd.f32 0.001143296, %v1764_v0 }
 0x53e   : > { %v1718_v19 = vadd.f32 0.05243302, %v1717_v9 }
 0x53f   : > { %v1730_v5 = vmul.f32 %v1729_v2, %v1712_v50  ;;  %v1755_v7 = vmul.f32 %v1754_v3, %v1752_v60  ;;  %v1766_v8 = vmul.f32 %v1765_v4, %v1752_v60  ;;  %v1708_v2 = vmul.f32 0.5, %v4995_v52 }
 0x540   : > { %v1719_v26 = vmul.f32 %v1718_v19, %v1712_v50  ;;  %v3563_v19 = vld [vmem:[#allocation17 + $0x10] sm:$0xff] }
 0x541   : > { %v1731_v10 = vadd.f32 0.4994258, %v1730_v5  ;;  %v1756_v13 = vadd.f32 0.0036580483, %v1755_v7  ;;  %v1767_v14 = vadd.f32 0.014752088, %v1766_v8 }
 0x542   : > { %v1720_v30 = vadd.f32 0.18741608, %v1719_v26  ;;  %v3564_v7 = vld [vmem:[#allocation17 + $0x18] sm:$0xff] }
 0x543   : > { %v1732_v15 = vmul.f32 %v1731_v10, %v1712_v50  ;;  %v1768_v17 = vmul.f32 %v1767_v14, %v1752_v60  ;;  %v1757_v12 = vmul.f32 %v1756_v13, %v1752_v60  ;;  %1983 = vmatpush.bf16.msrb.mxu1 %v3564_v7  ;;  %v3827_v8 = vld [vmem:[#allocation16] ss:$0 sm:$0xff] }
 0x544   : > { %v1721_v18 = vmul.f32 %v1720_v30, %v1712_v50 }
 0x545   : > { %v1733_v20 = vadd.f32 1.0, %v1732_v15  ;;  %v1769_v23 = vadd.f32 0.112945676, %v1768_v17  ;;  %v1758_v22 = vadd.f32 0.05243302, %v1757_v12  ;;  %v3561_v12 = vld [vmem:[#allocation17] sm:$0xff] }
 0x546   : > { %v1722_v44 = vadd.f32 1.1283791, %v1721_v18 }
 0x547   : > { %3865 = vrcp.f32 %v1733_v20  ;;  %v1770_v25 = vmul.f32 %v1769_v23, %v1752_v60  ;;  %v1759_v33 = vmul.f32 %v1758_v22, %v1752_v60  ;;  %v1745_v39 = vand.u32 2147483648, %v1733_v20  ;;  %1984 = vmatpush.bf16.msrb.mxu1 %v3563_v19  ;;  %v1925_v23 = vld [vmem:[%s4857_s24] sm:$0xff] }
 0x548   : > { %v1743_v42 = vand.u32 2147483647, %v1733_v20  ;;  %vm1739_vm12 = vweird.f32 %v1733_v20  ;;  %v1723_v32 = vmul.f32 %v1722_v44, %v4991_v47 }
 0x549   : > { %v1771_v28 = vadd.f32 0.4994258, %v1770_v25  ;;  %v1760_v41 = vadd.f32 0.18741608, %v1759_v33  ;;  %v1746_v48 = vor.u32 1.1754944e-38, %v1745_v39  ;;  %v1926_v25 = vld [vmem:[%s4857_s24 + $0x8] sm:$0xff] }
 0x54a   : > { %vm1744_vm14 = vcmp.eq.f32.partialorder %v1743_v42, 8.507059e+37  ;;  %s5252_s24 = sld [smem:[#allocation56_spill]] }
 0x54b   : > { %v1772_v29 = vmul.f32 %v1771_v28, %v1752_v60  ;;  %v1761_v49 = vmul.f32 %v1760_v41, %v1752_v60 }
 0x54d   : > { %v3866_v21 = vpop.eup %3865  ;;  %v1773_v34 = vadd.f32 1.0, %v1772_v29  ;;  %v1762_v50 = vadd.f32 1.1283791, %v1761_v49 }
 0x54e   : > { %v1735_v31 = vmul.f32 %v3866_v21, %v1733_v20  ;;  %vm1740_vm11 = vweird.f32 %v3866_v21  ;;  %v3562_v20 = vld [vmem:[#allocation17 + $0x8] sm:$0xff] }
 0x54f   : > { %3867 = vrcp.f32 %v1773_v34  ;;  %vm1741_vm13 = vmor %vm1739_vm12, %vm1740_vm11  ;;  %v1785_v45 = vand.u32 2147483648, %v1773_v34  ;;  %v1783_v57 = vand.u32 2147483647, %v1773_v34  ;;  %vm1779_vm0 = vweird.f32 %v1773_v34  ;;  %1985 = vmatpush.bf16.msrb.mxu1 %v3562_v20 }
 0x550   : > { %v1736_v36 = vsub.f32 1.0, %v1735_v31  ;;  %v1763_v61 = vmul.f32 %v1762_v50, %v4998_v55  ;;  %v3828_v31 = vld [vmem:[#allocation19] ss:$0 sm:$0xff]  ;;  %s913_s1 = scalar_lea.vmem %s5252_s24, %s3188_s28  ;;  %s2862_s28 = scalar_lea.sflag [#allocation4], %s4851_s29 }
 0x551   : > { %v1786_v59 = vor.u32 1.1754944e-38, %v1785_v45  ;;  %vm1784_vm2 = vcmp.eq.f32.partialorder %v1783_v57, 8.507059e+37 }
 0x552   : > { %v1737_v38 = vmul.f32 %v3866_v21, %v1736_v36 }
 0x553   : > { %1986 = vmatpush.bf16.msrb.mxu1 %v3561_v12 }
 0x554   : > { %v1738_v43 = vadd.f32 %v3866_v21, %v1737_v38 }
 0x555   : > { %v3868_v35 = vpop.eup %3867 }
 0x556   : > { %v1742_v46 = vsel %vm1741_vm13, %v3866_v21, %v1738_v43  ;;  %v1775_v51 = vmul.f32 %v3868_v35, %v1773_v34  ;;  %vm1780_vm15 = vweird.f32 %v3868_v35 }
 0x557   : > { %v1747_v11 = vsel %vm1744_vm14, %v1746_v48, %v1742_v46  ;;  %vm1781_vm1 = vmor %vm1779_vm0, %vm1780_vm15 }
 0x558   : > { %v1776_v53 = vsub.f32 1.0, %v1775_v51  ;;  %v1748_v54 = vmul.f32 %v1747_v11, %v1723_v32 }
 0x55a   : > { %v1777_v56 = vmul.f32 %v3868_v35, %v1776_v53  ;;  %v3327_v27 = vclamps-f32 %v1748_v54, 1.0 }
 0x55c   : > { %v1778_v58 = vadd.f32 %v3868_v35, %v1777_v56  ;;  %v1791_v0 = vadd.f32 1.0, %v3327_v27 }
 0x55e   : > { %v1782_v60 = vsel %vm1781_vm1, %v3868_v35, %v1778_v58  ;;  %v1793_v4 = vmul.f32 %v1791_v0, %v1707_v1 }
 0x55f   : > { %v1787_v62 = vsel %vm1784_vm2, %v1786_v59, %v1782_v60 }
 0x560   : > { %v1788_v63 = vmul.f32 %v1787_v62, %v1763_v61 }
 0x562   : > { %v3328_v47 = vclamps-f32 %v1788_v63, 1.0 }
 0x564   : > { %v1792_v3 = vadd.f32 1.0, %v3328_v47 }
 0x566   : > { %v1794_v5 = vmul.f32 %v1792_v3, %v1708_v2 }
 0x568   : > { %v1795_v6 = vpack.c.bf16 %v1794_v5, %v1793_v4 }
 0x56a   : > { %1872 = vmatmul.bf16.vlgmr.msrb.gmra.mxu0 %v1795_v6 }
 0x5e7   : > { %v1873_v9 = vpop.f32.mrf.mxu0 }
 0x5e8   : > { %v5006_v55 = vadd.f32 %v3827_v8, %v1873_v9 }
 0x5ea   : > { %v1878_v10 = vmul.f32 0.5, %v5006_v55 }
 0x5ec   : > { %v1880_v13 = vmul.f32 1.442695, %v1878_v10 }
 0x5ee   : > { %3869 = vpow2.f32 %v1880_v13 }
 0x5ef   : > { %v1875_v14 = vpop.f32.mrf.mxu0 }
 0x5f0   : > { %v5009_v37 = vadd.f32 %v3827_v8, %v1875_v14 }
 0x5f2   : > { %v1879_v52 = vmul.f32 0.5, %v5009_v37 }
 0x5f4   : > { %v5012_v15 = vpop.eup %3869  ;;  %v1882_v16 = vmul.f32 1.442695, %v1879_v52 }
 0x5f5   : > { %1929 = vrot.lane.b32.xlu0 %v5012_v15, %s4534_s0 }
 0x5f6   : > { %3871 = vpow2.f32 %v1882_v16 }
 0x5fc   : > { %v5016_v17 = vpop.eup %3871 }
 0x5fd   : > { %1931 = vrot.lane.b32.xlu1 %v5016_v17, %s4534_s0 }
 0x667   : > { %v1930_v24 = vpop.permute.xlu0 %1929 }
 0x668   : > { %v1935_v26 = vmul.f32 %v1930_v24, %v1925_v23 }
 0x66a   : > { %v1937_v29 = vadd.f32 %v1935_v26, %v5006_v55 }
 0x66f   : > { %v1932_v22 = vpop.permute.xlu1 %1931 }
 0x670   : > { %v1936_v28 = vmul.f32 %v1932_v22, %v1926_v25 }
 0x672   : > { %v1938_v21 = vadd.f32 %v1936_v28, %v5009_v37 }
 0x674   : > { %v1939_v30 = vpack.c.bf16 %v1938_v21, %v1937_v29 }
 0x676   : > { %3377 = vmatmul.msk.bf16.vlgmr.msrb.gmra.mxu1 %vm1910_vm3, %v1939_v30 }
 0x6f3   : > { %v1988_v33 = vpop.f32.mrf.mxu1 }
 0x6f4   : > { %v5025_v34 = vadd.f32 %v3828_v31, %v1988_v33 }
 0x6f6   : > { %v1995_v36 = vmul.f32 0.70710677, %v5025_v34 }
 0x6f8   : > { %v1997_v18 = vmul.f32 %v1995_v36, %v1995_v36 }
 0x6fa   : > { %v1998_v38 = vmin.f32 %v1997_v18, 16.0 }
 0x6fb   : > { %v1990_v39 = vpop.f32.mrf.mxu1 }
 0x6fc   : > { %v1999_v41 = vmul.f32 2.1237322e-06, %v1998_v38  ;;  %v2010_v42 = vmul.f32 3.8918573e-05, %v1998_v38  ;;  %v5028_v43 = vadd.f32 %v3828_v31, %v1990_v39 }
 0x6fe   : > { %v2000_v44 = vadd.f32 0.00028619796, %v1999_v41  ;;  %v2011_v35 = vadd.f32 0.001143296, %v2010_v42  ;;  %v5031_v46 = vmul.f32 0.70710677, %v5028_v43 }
 0x700   : > { %v2001_v48 = vmul.f32 %v2000_v44, %v1998_v38  ;;  %v2012_v49 = vmul.f32 %v2011_v35, %v1998_v38  ;;  %v2037_v51 = vmul.f32 %v5031_v46, %v5031_v46 }
 0x702   : > { %v2013_v11 = vadd.f32 0.014752088, %v2012_v49  ;;  %v2002_v32 = vadd.f32 0.0036580483, %v2001_v48  ;;  %v2038_v53 = vmin.f32 %v2037_v51, 16.0  ;;  %v1993_v51 = vmul.f32 0.5, %v5025_v34 }
 0x704   : > { %v2014_v50 = vmul.f32 %v2013_v11, %v1998_v38  ;;  %v2039_v45 = vmul.f32 2.1237322e-06, %v2038_v53  ;;  %v2050_v54 = vmul.f32 3.8918573e-05, %v2038_v53  ;;  %v2003_v57 = vmul.f32 %v2002_v32, %v1998_v38 }
 0x706   : > { %v2015_v56 = vadd.f32 0.112945676, %v2014_v50  ;;  %v2040_v58 = vadd.f32 0.00028619796, %v2039_v45  ;;  %v2051_v59 = vadd.f32 0.001143296, %v2050_v54 }
 0x707   : > { %v2004_v63 = vadd.f32 0.05243302, %v2003_v57 }
 0x708   : > { %v2016_v27 = vmul.f32 %v2015_v56, %v1998_v38  ;;  %v2041_v61 = vmul.f32 %v2040_v58, %v2038_v53  ;;  %v2052_v60 = vmul.f32 %v2051_v59, %v2038_v53  ;;  %v1994_v58 = vmul.f32 0.5, %v5028_v43  ;;  %v3567_v43 = vld [vmem:[#allocation23 + $0x10] sm:$0xff] }
 0x709   : > { %v2005_v4 = vmul.f32 %v2004_v63, %v1998_v38 }
 0x70a   : > { %v2017_v62 = vadd.f32 0.4994258, %v2016_v27  ;;  %v2053_v0 = vadd.f32 0.014752088, %v2052_v60  ;;  %v2042_v1 = vadd.f32 0.0036580483, %v2041_v61 }
 0x70b   : > { %v2006_v8 = vadd.f32 0.18741608, %v2005_v4  ;;  %v3572_v60 = vld [vmem:[#allocation23 + $0x38] sm:$0xff] }
 0x70c   : > { %v2018_v47 = vmul.f32 %v2017_v62, %v1998_v38  ;;  %v2054_v2 = vmul.f32 %v2053_v0, %v2038_v53  ;;  %v2043_v6 = vmul.f32 %v2042_v1, %v2038_v53  ;;  %2208 = vmatpush.bf16.msrb.mxu2 %v3572_v60  ;;  %v3570_v62 = vld [vmem:[#allocation23 + $0x28] sm:$0xff]  ;;  %v3569_v0 = vld [vmem:[#allocation23 + $0x20] sm:$0xff] }
 0x70d   : > { %v2007_v52 = vmul.f32 %v2006_v8, %v1998_v38 }
 0x70e   : > { %v2019_v3 = vadd.f32 1.0, %v2018_v47  ;;  %v2055_v5 = vadd.f32 0.112945676, %v2054_v2  ;;  %v2044_v10 = vadd.f32 0.05243302, %v2043_v6  ;;  %v3568_v47 = vld [vmem:[#allocation23 + $0x18] sm:$0xff] }
 0x70f   : > { %v2008_v24 = vadd.f32 1.1283791, %v2007_v52 }
 0x710   : > { %3873 = vrcp.f32 %v2019_v3  ;;  %v2056_v7 = vmul.f32 %v2055_v5, %v2038_v53  ;;  %v2045_v20 = vmul.f32 %v2044_v10, %v2038_v53  ;;  %v2031_v23 = vand.u32 2147483648, %v2019_v3 }
 0x711   : > { %v2029_v26 = vand.u32 2147483647, %v2019_v3  ;;  %vm2025_vm5 = vweird.f32 %v2019_v3  ;;  %v2009_v30 = vmul.f32 %v2008_v24, %v1995_v36 }
 0x712   : > { %v2057_v9 = vadd.f32 0.4994258, %v2056_v7  ;;  %v2046_v22 = vadd.f32 0.18741608, %v2045_v20  ;;  %v2032_v29 = vor.u32 1.1754944e-38, %v2031_v23 }
 0x713   : > { %vm2030_vm7 = vcmp.eq.f32.partialorder %v2029_v26, 8.507059e+37 }
 0x714   : > { %v2058_v13 = vmul.f32 %v2057_v9, %v2038_v53  ;;  %v2047_v18 = vmul.f32 %v2046_v22, %v2038_v53  ;;  %v3565_v9 = vld [vmem:[#allocation23] sm:$0xff] }
 0x716   : > { %v3874_v14 = vpop.eup %3873  ;;  %v2059_v19 = vadd.f32 1.0, %v2058_v13  ;;  %v2048_v35 = vadd.f32 1.1283791, %v2047_v18 }
 0x717   : > { %v2021_v16 = vmul.f32 %v3874_v14, %v2019_v3  ;;  %vm2026_vm4 = vweird.f32 %v3874_v14  ;;  %v3566_v3 = vld [vmem:[#allocation23 + $0x8] sm:$0xff] }
 0x718   : > { %3875 = vrcp.f32 %v2059_v19  ;;  %vm2027_vm6 = vmor %vm2025_vm5, %vm2026_vm4  ;;  %v2071_v42 = vand.u32 2147483648, %v2059_v19  ;;  %v2069_v49 = vand.u32 2147483647, %v2059_v19  ;;  %vm2065_vm9 = vweird.f32 %v2059_v19 }
 0x719   : > { %v2022_v12 = vsub.f32 1.0, %v2021_v16  ;;  %v2049_v53 = vmul.f32 %v2048_v35, %v5031_v46  ;;  %v3571_v46 = vld [vmem:[#allocation23 + $0x30] sm:$0xff] }
 0x71a   : > { %v2072_v36 = vor.u32 1.1754944e-38, %v2071_v42  ;;  %vm2070_vm11 = vcmp.eq.f32.partialorder %v2069_v49, 8.507059e+37  ;;  %2209 = vmatpush.bf16.msrb.mxu2 %v3571_v46 }
 0x71b   : > { %v2023_v25 = vmul.f32 %v3874_v14, %v2022_v12 }
 0x71d   : > { %v2024_v28 = vadd.f32 %v3874_v14, %v2023_v25 }
 0x71e   : > { %v3876_v21 = vpop.eup %3875  ;;  %2210 = vmatpush.bf16.msrb.mxu2 %v3570_v62 }
 0x71f   : > { %v2028_v31 = vsel %vm2027_vm6, %v3874_v14, %v2024_v28  ;;  %v2061_v38 = vmul.f32 %v3876_v21, %v2059_v19  ;;  %vm2066_vm8 = vweird.f32 %v3876_v21 }
 0x720   : > { %v2033_v33 = vsel %vm2030_vm7, %v2032_v29, %v2028_v31  ;;  %vm2067_vm10 = vmor %vm2065_vm9, %vm2066_vm8 }
 0x721   : > { %v2034_v39 = vmul.f32 %v2033_v33, %v2009_v30  ;;  %v2062_v41 = vsub.f32 1.0, %v2061_v38 }
 0x722   : > { %2211 = vmatpush.bf16.msrb.mxu2 %v3569_v0 }
 0x723   : > { %v3378_v44 = vclamps-f32 %v2034_v39, 1.0  ;;  %v2063_v48 = vmul.f32 %v3876_v21, %v2062_v41  ;;  %v3829_v41 = vld [vmem:[#allocation20] ss:$0 sm:$0xff] }
 0x725   : > { %v2077_v11 = vadd.f32 1.0, %v3378_v44  ;;  %v2064_v32 = vadd.f32 %v3876_v21, %v2063_v48 }
 0x726   : > { %2212 = vmatpush.bf16.msrb.mxu2 %v3568_v47 }
 0x727   : > { %v5036_v50 = vmul.f32 %v2077_v11, %v1993_v51  ;;  %v2068_v45 = vsel %vm2067_vm10, %v3876_v21, %v2064_v32  ;;  %v3830_v51 = vld [vmem:[#allocation22] ss:$0 sm:$0xff] }
 0x728   : > { %v2073_v54 = vsel %vm2070_vm11, %v2072_v36, %v2068_v45  ;;  %v3831_v45 = vld [vmem:[#allocation25] ss:$0 sm:$0xff] }
 0x729   : > { %2083 = vadd.xlane.f32.xlu2 %v5036_v50  ;;  %v2074_v56 = vmul.f32 %v2073_v54, %v2049_v53  ;;  %v2089_v61 = vmul.f32 %v5036_v50, %v5036_v50 }
 0x72a   : > { %2213 = vmatpush.bf16.msrb.mxu2 %v3567_v43 }
 0x72b   : > { %v3379_v57 = vclamps-f32 %v2074_v56, 1.0 }
 0x72d   : > { %v2078_v59 = vadd.f32 1.0, %v3379_v57 }
 0x72e   : > { %2214 = vmatpush.bf16.msrb.mxu2 %v3566_v3 }
 0x72f   : > { %v2080_v34 = vmul.f32 %v2078_v59, %v1994_v58 }
 0x731   : > { %2085 = vadd.xlane.f32.xlu2 %v2080_v34  ;;  %v2090_v27 = vmul.f32 %v2080_v34, %v2080_v34 }
 0x732   : > { %2215 = vmatpush.bf16.msrb.mxu2 %v3565_v9 }
 0x733   : > { %2093 = vadd.xlane.f32.xlu0 %v2090_v27 }
 0x739   : > { %2091 = vadd.xlane.f32.xlu2 %v2089_v61 }
 0x79c   : > { %v2084_v63 = vpop.xlane.xlu2 %2083 }
 0x79d   : > { %v2087_v7 = vmul.f32 %v2084_v63, %v4922_v40 }
 0x79f   : > { %v2097_v14 = vmul.f32 %v2087_v7, %v2087_v7  ;;  %v2103_v44 = vsub.f32 %v5036_v50, %v2087_v7 }
 0x7a4   : > { %v2086_v1 = vpop.xlane.xlu2 %2085 }
 0x7a5   : > { %v2088_v2 = vmul.f32 %v2086_v1, %v4922_v40 }
 0x7a6   : > { %v2094_v4 = vpop.xlane.xlu0 %2093 }
 0x7a7   : > { %v2098_v5 = vmul.f32 %v2088_v2, %v2088_v2  ;;  %v2096_v6 = vmul.f32 %v2094_v4, %v4922_v40  ;;  %v2104_v18 = vsub.f32 %v2080_v34, %v2088_v2 }
 0x7a9   : > { %v2100_v8 = vsub.f32 %v2096_v6, %v2098_v5 }
 0x7ab   : > { %v2102_v10 = vmax.f32 %v2100_v8, 0.0 }
 0x7ac   : > { %v2092_v13 = vpop.xlane.xlu2 %2091 }
 0x7ad   : > { %v2106_v52 = vadd.f32 1e-05, %v2102_v10  ;;  %v2095_v16 = vmul.f32 %v2092_v13, %v4922_v40 }
 0x7af   : > { %3877 = vrsqrt.f32 %v2106_v52  ;;  %v2099_v19 = vsub.f32 %v2095_v16, %v2097_v14  ;;  %vm2123_vm13 = vweird.f32 %v2106_v52 }
 0x7b1   : > { %v2101_v20 = vmax.f32 %v2099_v19, 0.0 }
 0x7b3   : > { %v2105_v12 = vadd.f32 1e-05, %v2101_v20 }
 0x7b5   : > { %v3878_v23 = vpop.eup %3877  ;;  %3879 = vrsqrt.f32 %v2105_v12  ;;  %vm2113_vm0 = vweird.f32 %v2105_v12 }
 0x7b6   : > { %v2118_v24 = vmul.f32 %v3878_v23, %v2106_v52  ;;  %vm2124_vm12 = vweird.f32 %v3878_v23 }
 0x7b7   : > { %vm2125_vm14 = vmor %vm2123_vm13, %vm2124_vm12 }
 0x7b8   : > { %v2119_v25 = vmul.f32 %v3878_v23, %v2118_v24 }
 0x7ba   : > { %v2120_v26 = vmul.f32 0.5, %v2119_v25 }
 0x7bb   : > { %v3880_v22 = vpop.eup %3879 }
 0x7bc   : > { %v2121_v28 = vsub.f32 1.5, %v2120_v26  ;;  %v2108_v29 = vmul.f32 %v3880_v22, %v2105_v12  ;;  %vm2114_vm15 = vweird.f32 %v3880_v22 }
 0x7bd   : > { %vm2115_vm1 = vmor %vm2113_vm0, %vm2114_vm15 }
 0x7be   : > { %v2122_v21 = vmul.f32 %v3878_v23, %v2121_v28  ;;  %v2109_v30 = vmul.f32 %v3880_v22, %v2108_v29 }
 0x7c0   : > { %v2110_v31 = vmul.f32 0.5, %v2109_v30  ;;  %v2126_v33 = vsel %vm2125_vm14, %v3878_v23, %v2122_v21 }
 0x7c1   : > { %v2128_v39 = vmul.f32 %v2126_v33, %v2104_v18 }
 0x7c2   : > { %v2111_v38 = vsub.f32 1.5, %v2110_v31 }
 0x7c3   : > { %v2133_v49 = vmul.f32 %v3829_v41, %v2128_v39 }
 0x7c4   : > { %v2112_v42 = vmul.f32 %v3880_v22, %v2111_v38 }
 0x7c5   : > { %v2138_v36 = vadd.f32 %v3830_v51, %v2133_v49 }
 0x7c6   : > { %v2116_v35 = vsel %vm2115_vm1, %v3880_v22, %v2112_v42 }
 0x7c7   : > { %v2127_v48 = vmul.f32 %v2116_v35, %v2103_v44 }
 0x7c9   : > { %v2132_v11 = vmul.f32 %v3829_v41, %v2127_v48 }
 0x7cb   : > { %v2137_v32 = vadd.f32 %v3830_v51, %v2132_v11 }
 0x7cd   : > { %v2139_v53 = vpack.c.bf16 %v2138_v36, %v2137_v32 }
 0x7cf   : > { %2216 = vmatmul.bf16.vlgmr.msrb.gmra.mxu2 %v2139_v53 }
 0x852   : > { %v2217_v54 = vpop.f32.mrf.mxu2 }
 0x853   : > { %v5048_v56 = vadd.f32 %v3831_v45, %v2217_v54 }
 0x855   : > { %v2224_v57 = vmul.f32 0.70710677, %v5048_v56 }
 0x857   : > { %v2226_v58 = vmul.f32 %v2224_v57, %v2224_v57 }
 0x859   : > { %v2227_v59 = vmin.f32 %v2226_v58, 16.0 }
 0x85a   : > { %v2219_v34 = vpop.f32.mrf.mxu2 }
 0x85b   : > { %v2228_v50 = vmul.f32 2.1237322e-06, %v2227_v59  ;;  %v2239_v27 = vmul.f32 3.8918573e-05, %v2227_v59  ;;  %v5051_v61 = vadd.f32 %v3831_v45, %v2219_v34 }
 0x85d   : > { %v2229_v60 = vadd.f32 0.00028619796, %v2228_v50  ;;  %v2240_v46 = vadd.f32 0.001143296, %v2239_v27  ;;  %v5054_v62 = vmul.f32 0.70710677, %v5051_v61 }
 0x85f   : > { %v2230_v63 = vmul.f32 %v2229_v60, %v2227_v59  ;;  %v2241_v0 = vmul.f32 %v2240_v46, %v2227_v59  ;;  %v2266_v47 = vmul.f32 %v5054_v62, %v5054_v62 }
 0x861   : > { %v2242_v43 = vadd.f32 0.014752088, %v2241_v0  ;;  %v2231_v1 = vadd.f32 0.0036580483, %v2230_v63  ;;  %v2267_v2 = vmin.f32 %v2266_v47, 16.0  ;;  %v2222_v47 = vmul.f32 0.5, %v5048_v56 }
 0x863   : > { %v2243_v3 = vmul.f32 %v2242_v43, %v2227_v59  ;;  %v2268_v4 = vmul.f32 2.1237322e-06, %v2267_v2  ;;  %v2279_v5 = vmul.f32 3.8918573e-05, %v2267_v2  ;;  %v2232_v7 = vmul.f32 %v2231_v1, %v2227_v59 }
 0x865   : > { %v2244_v6 = vadd.f32 0.112945676, %v2243_v3  ;;  %v2269_v8 = vadd.f32 0.00028619796, %v2268_v4  ;;  %v2280_v9 = vadd.f32 0.001143296, %v2279_v5 }
 0x866   : > { %v2233_v16 = vadd.f32 0.05243302, %v2232_v7 }
 0x867   : > { %v2245_v10 = vmul.f32 %v2244_v6, %v2227_v59  ;;  %v2270_v13 = vmul.f32 %v2269_v8, %v2267_v2  ;;  %v2281_v14 = vmul.f32 %v2280_v9, %v2267_v2  ;;  %v2223_v8 = vmul.f32 0.5, %v5051_v61  ;;  %v3579_v61 = vld [vmem:[#allocation23 + $0x70] sm:$0xff] }
 0x868   : > { %v2234_v25 = vmul.f32 %v2233_v16, %v2227_v59 }
 0x869   : > { %v2246_v52 = vadd.f32 0.4994258, %v2245_v10  ;;  %v2282_v19 = vadd.f32 0.014752088, %v2281_v14  ;;  %v2271_v12 = vadd.f32 0.0036580483, %v2270_v13  ;;  %v1886_v13 = vmul.f32 %v5006_v55, %v5006_v55 }
 0x86a   : > { %v2235_v29 = vadd.f32 0.18741608, %v2234_v25  ;;  %v3580_v14 = vld [vmem:[#allocation23 + $0x78] sm:$0xff] }
 0x86b   : > { %v2247_v20 = vmul.f32 %v2246_v52, %v2227_v59  ;;  %v2283_v23 = vmul.f32 %v2282_v19, %v2267_v2  ;;  %v2272_v22 = vmul.f32 %v2271_v12, %v2267_v2  ;;  %2441 = vmatpush.bf16.msrb.mxu3 %v3580_v14  ;;  %v3578_v52 = vld [vmem:[#allocation23 + $0x68] sm:$0xff]  ;;  %v3577_v19 = vld [vmem:[#allocation23 + $0x60] sm:$0xff] }
 0x86c   : > { %v2236_v18 = vmul.f32 %v2235_v29, %v2227_v59 }
 0x86d   : > { %v2248_v24 = vadd.f32 1.0, %v2247_v20  ;;  %v2284_v26 = vadd.f32 0.112945676, %v2283_v23  ;;  %v2273_v30 = vadd.f32 0.05243302, %v2272_v22  ;;  %v3576_v20 = vld [vmem:[#allocation23 + $0x58] sm:$0xff] }
 0x86e   : > { %v2237_v35 = vadd.f32 1.1283791, %v2236_v18 }
 0x86f   : > { %3881 = vrcp.f32 %v2248_v24  ;;  %v2285_v28 = vmul.f32 %v2284_v26, %v2267_v2  ;;  %v2274_v41 = vmul.f32 %v2273_v30, %v2267_v2  ;;  %v2260_v44 = vand.u32 2147483648, %v2248_v24  ;;  %2442 = vmatpush.bf16.msrb.mxu3 %v3579_v61 }
 0x870   : > { %v2258_v49 = vand.u32 2147483647, %v2248_v24  ;;  %vm2254_vm4 = vweird.f32 %v2248_v24  ;;  %v2238_v53 = vmul.f32 %v2237_v35, %v2224_v57 }
 0x871   : > { %v2286_v21 = vadd.f32 0.4994258, %v2285_v28  ;;  %v2275_v51 = vadd.f32 0.18741608, %v2274_v41  ;;  %v2261_v32 = vor.u32 1.1754944e-38, %v2260_v44  ;;  %v3574_v28 = vld [vmem:[#allocation23 + $0x48] sm:$0xff] }
 0x872   : > { %vm2259_vm6 = vcmp.eq.f32.partialorder %v2258_v49, 8.507059e+37 }
 0x873   : > { %v2287_v31 = vmul.f32 %v2286_v21, %v2267_v2  ;;  %v2276_v58 = vmul.f32 %v2275_v51, %v2267_v2  ;;  %2443 = vmatpush.bf16.msrb.mxu3 %v3578_v52 }
 0x875   : > { %v3882_v33 = vpop.eup %3881  ;;  %v2288_v39 = vadd.f32 1.0, %v2287_v31  ;;  %v2277_v46 = vadd.f32 1.1283791, %v2276_v58  ;;  %v3573_v31 = vld [vmem:[#allocation23 + $0x40] sm:$0xff] }
 0x876   : > { %v2250_v38 = vmul.f32 %v3882_v33, %v2248_v24  ;;  %vm2255_vm2 = vweird.f32 %v3882_v33  ;;  %v3575_v24 = vld [vmem:[#allocation23 + $0x50] sm:$0xff] }
 0x877   : > { %3883 = vrcp.f32 %v2288_v39  ;;  %vm2256_vm5 = vmor %vm2254_vm4, %vm2255_vm2  ;;  %v2300_v27 = vand.u32 2147483648, %v2288_v39  ;;  %v2298_v0 = vand.u32 2147483647, %v2288_v39  ;;  %vm2294_vm8 = vweird.f32 %v2288_v39  ;;  %2444 = vmatpush.bf16.msrb.mxu3 %v3577_v19 }
 0x878   : > { %v2251_v42 = vsub.f32 1.0, %v2250_v38  ;;  %v2278_v2 = vmul.f32 %v2277_v46, %v5054_v62 }
 0x879   : > { %v2301_v57 = vor.u32 1.1754944e-38, %v2300_v27  ;;  %vm2299_vm10 = vcmp.eq.f32.partialorder %v2298_v0, 8.507059e+37  ;;  %v3832_v27 = vld [vmem:[#allocation20 + $0x1] ss:$0 sm:$0xff] }
 0x87a   : > { %v2252_v48 = vmul.f32 %v3882_v33, %v2251_v42 }
 0x87b   : > { %2445 = vmatpush.bf16.msrb.mxu3 %v3576_v20 }
 0x87c   : > { %v2253_v11 = vadd.f32 %v3882_v33, %v2252_v48 }
 0x87d   : > { %v3884_v36 = vpop.eup %3883 }
 0x87e   : > { %v2257_v45 = vsel %vm2256_vm5, %v3882_v33, %v2253_v11  ;;  %v2290_v59 = vmul.f32 %v3884_v36, %v2288_v39  ;;  %vm2295_vm7 = vweird.f32 %v3884_v36 }
 0x87f   : > { %v2262_v54 = vsel %vm2259_vm6, %v2261_v32, %v2257_v45  ;;  %vm2296_vm9 = vmor %vm2294_vm8, %vm2295_vm7  ;;  %2446 = vmatpush.bf16.msrb.mxu3 %v3575_v24 }
 0x880   : > { %v2263_v34 = vmul.f32 %v2262_v54, %v2238_v53  ;;  %v2291_v50 = vsub.f32 1.0, %v2290_v59 }
 0x882   : > { %v3412_v60 = vclamps-f32 %v2263_v34, 1.0  ;;  %v2292_v63 = vmul.f32 %v3884_v36, %v2291_v50 }
 0x883   : > { %2447 = vmatpush.bf16.msrb.mxu3 %v3574_v28 }
 0x884   : > { %v2306_v43 = vadd.f32 1.0, %v3412_v60  ;;  %v2293_v1 = vadd.f32 %v3884_v36, %v2292_v63 }
 0x886   : > { %v5059_v3 = vmul.f32 %v2306_v43, %v2222_v47  ;;  %v2297_v4 = vsel %vm2296_vm9, %v3884_v36, %v2293_v1  ;;  %v3833_v43 = vld [vmem:[#allocation22 + $0x1] ss:$0 sm:$0xff] }
 0x887   : > { %v2302_v5 = vsel %vm2299_vm10, %v2301_v57, %v2297_v4  ;;  %2448 = vmatpush.bf16.msrb.mxu3 %v3573_v31 }
 0x888   : > { %2314 = vadd.xlane.f32.xlu2 %v5059_v3  ;;  %v2303_v6 = vmul.f32 %v2302_v5, %v2278_v2  ;;  %v2320_v56 = vmul.f32 %v5059_v3, %v5059_v3  ;;  %v3834_v5 = vld [vmem:[#allocation25 + $0x1] ss:$0 sm:$0xff] }
 0x88a   : > { %v3413_v7 = vclamps-f32 %v2303_v6, 1.0 }
 0x88c   : > { %v2307_v9 = vadd.f32 1.0, %v3413_v7 }
 0x88e   : > { %v5066_v10 = vmul.f32 %v2307_v9, %v2223_v8 }
 0x890   : > { %2322 = vadd.xlane.f32.xlu2 %v2320_v56  ;;  %2316 = vadd.xlane.f32.xlu1 %v5066_v10  ;;  %v2321_v62 = vmul.f32 %v5066_v10, %v5066_v10 }
 0x898   : > { %2324 = vadd.xlane.f32.xlu2 %v2321_v62 }
 0x8a9   : > { %1890 = vrot.lane.b32.xlu1 %v1886_v13, %s4534_s0 }
 0x8fb   : > { %v2315_v16 = vpop.xlane.xlu2 %2314 }
 0x8fc   : > { %v2318_v12 = vmul.f32 %v2315_v16, %v4922_v40 }
 0x8fe   : > { %v2328_v25 = vmul.f32 %v2318_v12, %v2318_v12  ;;  %v2334_v59 = vsub.f32 %v5059_v3, %v2318_v12 }
 0x903   : > { %v2323_v23 = vpop.xlane.xlu2 %2322  ;;  %v2317_v22 = vpop.xlane.xlu1 %2316 }
 0x904   : > { %v2326_v26 = vmul.f32 %v2323_v23, %v4922_v40  ;;  %v2319_v21 = vmul.f32 %v2317_v22, %v4922_v40 }
 0x906   : > { %v2330_v29 = vsub.f32 %v2326_v26, %v2328_v25  ;;  %v2329_v38 = vmul.f32 %v2319_v21, %v2319_v21  ;;  %v2335_v46 = vsub.f32 %v5066_v10, %v2319_v21 }
 0x908   : > { %v2332_v30 = vmax.f32 %v2330_v29, 0.0 }
 0x90a   : > { %v2336_v33 = vadd.f32 1e-05, %v2332_v30 }
 0x90b   : > { %v2325_v18 = vpop.xlane.xlu2 %2324 }
 0x90c   : > { %3885 = vrsqrt.f32 %v2336_v33  ;;  %v2327_v39 = vmul.f32 %v2325_v18, %v4922_v40  ;;  %vm2344_vm12 = vweird.f32 %v2336_v33 }
 0x90e   : > { %v2331_v41 = vsub.f32 %v2327_v39, %v2329_v38 }
 0x910   : > { %v2333_v42 = vmax.f32 %v2331_v41, 0.0 }
 0x912   : > { %v3886_v44 = vpop.eup %3885  ;;  %v2337_v35 = vadd.f32 1e-05, %v2333_v42 }
 0x913   : > { %v2339_v48 = vmul.f32 %v3886_v44, %v2336_v33  ;;  %vm2345_vm11 = vweird.f32 %v3886_v44 }
 0x914   : > { %3887 = vrsqrt.f32 %v2337_v35  ;;  %vm2346_vm13 = vmor %vm2344_vm12, %vm2345_vm11  ;;  %vm2354_vm15 = vweird.f32 %v2337_v35 }
 0x915   : > { %v2340_v49 = vmul.f32 %v3886_v44, %v2339_v48 }
 0x917   : > { %v2341_v51 = vmul.f32 0.5, %v2340_v49 }
 0x919   : > { %v2342_v11 = vsub.f32 1.5, %v2341_v51 }
 0x91a   : > { %v3888_v32 = vpop.eup %3887 }
 0x91b   : > { %v2343_v36 = vmul.f32 %v3886_v44, %v2342_v11  ;;  %v2349_v53 = vmul.f32 %v3888_v32, %v2337_v35  ;;  %vm2355_vm14 = vweird.f32 %v3888_v32 }
 0x91c   : > { %vm2356_vm0 = vmor %vm2354_vm15, %vm2355_vm14 }
 0x91d   : > { %v2350_v45 = vmul.f32 %v3888_v32, %v2349_v53  ;;  %v2347_v58 = vsel %vm2346_vm13, %v3886_v44, %v2343_v36 }
 0x91e   : > { %v2358_v50 = vmul.f32 %v2347_v58, %v2334_v59 }
 0x91f   : > { %v2351_v54 = vmul.f32 0.5, %v2350_v45 }
 0x920   : > { %v2363_v47 = vmul.f32 %v3832_v27, %v2358_v50 }
 0x921   : > { %v2352_v34 = vsub.f32 1.5, %v2351_v54 }
 0x922   : > { %v2368_v57 = vadd.f32 %v3833_v43, %v2363_v47 }
 0x923   : > { %v2353_v60 = vmul.f32 %v3888_v32, %v2352_v34 }
 0x925   : > { %v2357_v63 = vsel %vm2356_vm0, %v3888_v32, %v2353_v60 }
 0x926   : > { %v2359_v0 = vmul.f32 %v2357_v63, %v2335_v46 }
 0x928   : > { %v2364_v1 = vmul.f32 %v3832_v27, %v2359_v0 }
 0x92a   : > { %v2369_v2 = vadd.f32 %v3833_v43, %v2364_v1 }
 0x92c   : > { %v2370_v4 = vpack.c.bf16 %v2369_v2, %v2368_v57 }
 0x92e   : > { %2449 = vmatmul.bf16.vlgmr.msrb.gmra.mxu3 %v2370_v4 }
 0x9b1   : > { %v2450_v3 = vpop.f32.mrf.mxu3 }
 0x9b2   : > { %v5080_v6 = vadd.f32 %v3834_v5, %v2450_v3 }
 0x9b4   : > { %v2457_v7 = vmul.f32 0.70710677, %v5080_v6 }
 0x9b6   : > { %v2459_v8 = vmul.f32 %v2457_v7, %v2457_v7 }
 0x9b8   : > { %v2460_v9 = vmin.f32 %v2459_v8, 16.0 }
 0x9b9   : > { %v2452_v56 = vpop.f32.mrf.mxu3 }
 0x9ba   : > { %v2461_v10 = vmul.f32 2.1237322e-06, %v2460_v9  ;;  %v2472_v62 = vmul.f32 3.8918573e-05, %v2460_v9  ;;  %v5083_v13 = vadd.f32 %v3834_v5, %v2452_v56 }
 0x9bc   : > { %v2462_v14 = vadd.f32 0.00028619796, %v2461_v10  ;;  %v2473_v61 = vadd.f32 0.001143296, %v2472_v62  ;;  %v5086_v52 = vmul.f32 0.70710677, %v5083_v13 }
 0x9be   : > { %v2463_v16 = vmul.f32 %v2462_v14, %v2460_v9  ;;  %v2474_v19 = vmul.f32 %v2473_v61, %v2460_v9  ;;  %v2499_v20 = vmul.f32 %v5086_v52, %v5086_v52 }
 0x9c0   : > { %v2475_v12 = vadd.f32 0.014752088, %v2474_v19  ;;  %v2464_v23 = vadd.f32 0.0036580483, %v2463_v16  ;;  %v2500_v24 = vmin.f32 %v2499_v20, 16.0  ;;  %v2455_v20 = vmul.f32 0.5, %v5080_v6 }
 0x9c2   : > { %v2476_v25 = vmul.f32 %v2475_v12, %v2460_v9  ;;  %v2501_v26 = vmul.f32 2.1237322e-06, %v2500_v24  ;;  %v2512_v22 = vmul.f32 3.8918573e-05, %v2500_v24  ;;  %v2465_v29 = vmul.f32 %v2464_v23, %v2460_v9 }
 0x9c4   : > { %v2477_v28 = vadd.f32 0.112945676, %v2476_v25  ;;  %v2502_v21 = vadd.f32 0.00028619796, %v2501_v26  ;;  %v2513_v30 = vadd.f32 0.001143296, %v2512_v22 }
 0x9c5   : > { %v2466_v39 = vadd.f32 0.05243302, %v2465_v29 }
 0x9c6   : > { %v2478_v31 = vmul.f32 %v2477_v28, %v2460_v9  ;;  %v2503_v33 = vmul.f32 %v2502_v21, %v2500_v24  ;;  %v2514_v18 = vmul.f32 %v2513_v30, %v2500_v24  ;;  %v2456_v21 = vmul.f32 0.5, %v5083_v13 }
 0x9c7   : > { %v2467_v49 = vmul.f32 %v2466_v39, %v2460_v9  ;;  %v1898_v13 = vmul.f32 %v5012_v15, %v5012_v15 }
 0x9c8   : > { %v2479_v38 = vadd.f32 0.4994258, %v2478_v31  ;;  %v2515_v41 = vadd.f32 0.014752088, %v2514_v18  ;;  %v2504_v44 = vadd.f32 0.0036580483, %v2503_v33  ;;  %v1887_v33 = vmul.f32 %v5009_v37, %v5009_v37  ;;  %v1891_v18 = vpop.permute.xlu1 %1890 }
 0x9c9   : > { %v2468_v36 = vadd.f32 0.18741608, %v2467_v49  ;;  %v3585_v49 = vld [vmem:[#allocation23 + $0xa0] sm:$0xff] }
 0x9ca   : > { %v2480_v42 = vmul.f32 %v2479_v38, %v2460_v9  ;;  %v2516_v35 = vmul.f32 %v2515_v41, %v2500_v24  ;;  %v2505_v11 = vmul.f32 %v2504_v44, %v2500_v24  ;;  %v1884_v38 = vadd.f32 1.0, %v5006_v55  ;;  %v3587_v44 = vld [vmem:[#allocation23 + $0xb0] sm:$0xff] }
 0x9cb   : > { %v2469_v59 = vmul.f32 %v2468_v36, %v2460_v9  ;;  %v3584_v36 = vld [vmem:[#allocation23 + $0x98] sm:$0xff] }
 0x9cc   : > { %v2481_v48 = vadd.f32 1.0, %v2480_v42  ;;  %v2517_v51 = vadd.f32 0.112945676, %v2516_v35  ;;  %v2506_v45 = vadd.f32 0.05243302, %v2505_v11  ;;  %v1896_v39 = vsub.f32 %v1884_v38, %v1891_v18  ;;  %v3588_v42 = vld [vmem:[#allocation23 + $0xb8] sm:$0xff] }
 0x9cd   : > { %v2470_v63 = vadd.f32 1.1283791, %v2469_v59  ;;  %2674 = vmatpush.bf16.msra.mxu1 %v3588_v42  ;;  %v3586_v35 = vld [vmem:[#allocation23 + $0xa8] sm:$0xff]  ;;  %v3837_v38 = vld [vmem:[#allocation25 + $0x2] ss:$0 sm:$0xff] }
 0x9ce   : > { %3889 = vrcp.f32 %v2481_v48  ;;  %v2518_v32 = vmul.f32 %v2517_v51, %v2500_v24  ;;  %v2507_v27 = vmul.f32 %v2506_v45, %v2500_v24  ;;  %v2493_v46 = vand.u32 2147483648, %v2481_v48  ;;  %v3583_v45 = vld [vmem:[#allocation23 + $0x90] sm:$0xff]  ;;  %v3582_v59 = vld [vmem:[#allocation23 + $0x88] sm:$0xff] }
 0x9cf   : > { %v2491_v47 = vand.u32 2147483647, %v2481_v48  ;;  %vm2487_vm2 = vweird.f32 %v2481_v48  ;;  %v2471_v4 = vmul.f32 %v2470_v63, %v2457_v7  ;;  %v1900_v41 = vsub.f32 %v1896_v39, %v1898_v13  ;;  %v3596_v13 = vld [vmem:[#allocation26 + $0x38] sm:$0xff] }
 0x9d0   : > { %v2519_v53 = vadd.f32 0.4994258, %v2518_v32  ;;  %v2508_v43 = vadd.f32 0.18741608, %v2507_v27  ;;  %v2494_v57 = vor.u32 1.1754944e-38, %v2493_v46  ;;  %2845 = vmatpush.bf16.msra.mxu0 %v3596_v13 }
 0x9d1   : > { %vm2492_vm5 = vcmp.eq.f32.partialorder %v2491_v47, 8.507059e+37  ;;  %2675 = vmatpush.bf16.msra.mxu1 %v3587_v44  ;;  %v3595_v44 = vld [vmem:[#allocation26 + $0x30] sm:$0xff] }
 0x9d2   : > { %v2520_v54 = vmul.f32 %v2519_v53, %v2500_v24  ;;  %v2509_v8 = vmul.f32 %v2508_v43, %v2500_v24  ;;  %v1885_v43 = vadd.f32 1.0, %v5009_v37 }
 0x9d4   : > { %v3890_v58 = vpop.eup %3889  ;;  %v2521_v50 = vadd.f32 1.0, %v2520_v54  ;;  %v2510_v61 = vadd.f32 1.1283791, %v2509_v8  ;;  %2846 = vmatpush.bf16.msra.mxu0 %v3595_v44 }
 0x9d5   : > { %v2483_v34 = vmul.f32 %v3890_v58, %v2481_v48  ;;  %vm2488_vm1 = vweird.f32 %v3890_v58  ;;  %2676 = vmatpush.bf16.msra.mxu1 %v3586_v35 }
 0x9d6   : > { %3891 = vrcp.f32 %v2521_v50  ;;  %vm2489_vm4 = vmor %vm2487_vm2, %vm2488_vm1  ;;  %v2533_v62 = vand.u32 2147483648, %v2521_v50  ;;  %v2531_v19 = vand.u32 2147483647, %v2521_v50  ;;  %vm2527_vm7 = vweird.f32 %v2521_v50 }
 0x9d7   : > { %v2484_v60 = vsub.f32 1.0, %v2483_v34  ;;  %v2511_v24 = vmul.f32 %v2510_v61, %v5086_v52 }
 0x9d8   : > { %v2534_v7 = vor.u32 1.1754944e-38, %v2533_v62  ;;  %vm2532_vm9 = vcmp.eq.f32.partialorder %v2531_v19, 8.507059e+37 }
 0x9d9   : > { %v2485_v0 = vmul.f32 %v3890_v58, %v2484_v60  ;;  %2677 = vmatpush.bf16.msra.mxu1 %v3585_v49 }
 0x9db   : > { %v2486_v1 = vadd.f32 %v3890_v58, %v2485_v0 }
 0x9dc   : > { %v3892_v2 = vpop.eup %3891 }
 0x9dd   : > { %v2490_v5 = vsel %vm2489_vm4, %v3890_v58, %v2486_v1  ;;  %v2523_v9 = vmul.f32 %v3892_v2, %v2521_v50  ;;  %vm2528_vm6 = vweird.f32 %v3892_v2  ;;  %2678 = vmatpush.bf16.msra.mxu1 %v3584_v36  ;;  %v3581_v50 = vld [vmem:[#allocation23 + $0x80] sm:$0xff] }
 0x9de   : > { %v2495_v3 = vsel %vm2492_vm5, %v2494_v57, %v2490_v5  ;;  %vm2529_vm8 = vmor %vm2527_vm7, %vm2528_vm6 }
 0x9df   : > { %v2496_v56 = vmul.f32 %v2495_v3, %v2471_v4  ;;  %v2524_v10 = vsub.f32 1.0, %v2523_v9  ;;  %v1899_v4 = vmul.f32 %v5016_v17, %v5016_v17 }
 0x9e1   : > { %v3446_v14 = vclamps-f32 %v2496_v56, 1.0  ;;  %v2525_v16 = vmul.f32 %v3892_v2, %v2524_v10  ;;  %2679 = vmatpush.bf16.msra.mxu1 %v3583_v45  ;;  %v3593_v45 = vld [vmem:[#allocation26 + $0x20] sm:$0xff] }
 0x9e3   : > { %v2539_v12 = vadd.f32 1.0, %v3446_v14  ;;  %v2526_v23 = vadd.f32 %v3892_v2, %v2525_v16 }
 0x9e5   : > { %v5091_v25 = vmul.f32 %v2539_v12, %v2455_v20  ;;  %v2530_v26 = vsel %vm2529_vm8, %v3892_v2, %v2526_v23  ;;  %2680 = vmatpush.bf16.msra.mxu1 %v3582_v59  ;;  %v3835_v20 = vld [vmem:[#allocation20 + $0x2] ss:$0 sm:$0xff] }
 0x9e6   : > { %v2535_v22 = vsel %vm2532_vm9, %v2534_v7, %v2530_v26 }
 0x9e7   : > { %2547 = vadd.xlane.f32.xlu2 %v5091_v25  ;;  %v2553_v28 = vmul.f32 %v5091_v25, %v5091_v25  ;;  %v2536_v29 = vmul.f32 %v2535_v22, %v2511_v24  ;;  %v3836_v22 = vld [vmem:[#allocation22 + $0x2] ss:$0 sm:$0xff] }
 0x9e9   : > { %2555 = vadd.xlane.f32.xlu0 %v2553_v28  ;;  %v3447_v6 = vclamps-f32 %v2536_v29, 1.0  ;;  %2681 = vmatpush.bf16.msra.mxu1 %v3581_v50 }
 0x9eb   : > { %v2540_v30 = vadd.f32 1.0, %v3447_v6 }
 0x9ed   : > { %v5098_v31 = vmul.f32 %v2540_v30, %v2456_v21 }
 0x9ef   : > { %2549 = vadd.xlane.f32.xlu2 %v5098_v31  ;;  %v2554_v52 = vmul.f32 %v5098_v31, %v5098_v31 }
 0x9f7   : > { %2557 = vadd.xlane.f32.xlu2 %v2554_v52 }
 0x9fd   : > { %1892 = vrot.lane.b32.xlu0 %v1887_v33, %s4534_s0 }
 0xa0f   : > { %1904 = vrot.lane.b32.xlu2 %v1900_v41, %s4534_s0 }
 0xa5a   : > { %v2548_v48 = vpop.xlane.xlu2 %2547 }
 0xa5b   : > { %v2551_v51 = vmul.f32 %v2548_v48, %v4922_v40 }
 0xa5c   : > { %v2556_v11 = vpop.xlane.xlu0 %2555 }
 0xa5d   : > { %v2561_v55 = vmul.f32 %v2551_v51, %v2551_v51  ;;  %v2559_v32 = vmul.f32 %v2556_v11, %v4922_v40  ;;  %v2567_v16 = vsub.f32 %v5091_v25, %v2551_v51 }
 0xa5f   : > { %v2563_v15 = vsub.f32 %v2559_v32, %v2561_v55  ;;  %v3594_v55 = vld [vmem:[#allocation26 + $0x28] sm:$0xff] }
 0xa60   : > { %2847 = vmatpush.bf16.msra.mxu0 %v3594_v55 }
 0xa61   : > { %v2565_v53 = vmax.f32 %v2563_v15, 0.0 }
 0xa62   : > { %v2550_v58 = vpop.xlane.xlu2 %2549 }
 0xa63   : > { %v2569_v54 = vadd.f32 1e-05, %v2565_v53  ;;  %v2552_v34 = vmul.f32 %v2550_v58, %v4922_v40 }
 0xa64   : > { %2848 = vmatpush.bf16.msra.mxu0 %v3593_v45 }
 0xa65   : > { %3893 = vrsqrt.f32 %v2569_v54  ;;  %v2562_v63 = vmul.f32 %v2552_v34, %v2552_v34  ;;  %vm2577_vm11 = vweird.f32 %v2569_v54  ;;  %v2568_v23 = vsub.f32 %v5098_v31, %v2552_v34 }
 0xa6a   : > { %v2558_v60 = vpop.xlane.xlu2 %2557 }
 0xa6b   : > { %v3894_v27 = vpop.eup %3893  ;;  %v2560_v0 = vmul.f32 %v2558_v60, %v4922_v40 }
 0xa6c   : > { %v2572_v46 = vmul.f32 %v3894_v27, %v2569_v54  ;;  %vm2578_vm10 = vweird.f32 %v3894_v27 }
 0xa6d   : > { %v2564_v47 = vsub.f32 %v2560_v0, %v2562_v63  ;;  %vm2579_vm12 = vmor %vm2577_vm11, %vm2578_vm10 }
 0xa6e   : > { %v2573_v1 = vmul.f32 %v3894_v27, %v2572_v46 }
 0xa6f   : > { %v1893_v57 = vpop.permute.xlu0 %1892  ;;  %v2566_v2 = vmax.f32 %v2564_v47, 0.0 }
 0xa70   : > { %v1897_v5 = vsub.f32 %v1885_v43, %v1893_v57  ;;  %v2574_v9 = vmul.f32 0.5, %v2573_v1  ;;  %v3591_v57 = vld [vmem:[#allocation26 + $0x10] sm:$0xff] }
 0xa71   : > { %v2570_v3 = vadd.f32 1e-05, %v2566_v2 }
 0xa72   : > { %v1901_v8 = vsub.f32 %v1897_v5, %v1899_v4  ;;  %v2575_v56 = vsub.f32 1.5, %v2574_v9  ;;  %v1905_v30 = vpop.permute.xlu2 %1904 }
 0xa73   : > { %3895 = vrsqrt.f32 %v2570_v3  ;;  %vm2587_vm14 = vweird.f32 %v2570_v3  ;;  %v1911_v52 = vsel %vm1910_vm3, %v1905_v30, 0.0 }
 0xa74   : > { %1906 = vrot.lane.b32.xlu0 %v1901_v8, %s4534_s0  ;;  %v2576_v40 = vmul.f32 %v3894_v27, %v2575_v56  ;;  %s2877_s0 = scalar_lea.hbm %s5253_s25, %s3597_s6 }
 0xa75   : > { %s2880_s11 = sshll.u32 %s2877_s0, 4  ;;  %s2881_s11 = int_to_ptr.hbm [resolvable:$true] %s2880_s11 }
 0xa76   : > { %v2580_v14 = vsel %vm2579_vm12, %v3894_v27, %v2576_v40  ;;  %v3592_v27 = vld [vmem:[#allocation26 + $0x18] sm:$0xff]  ;;  %s4425_s27 = sshra.s32 %s2881_s11, 4  ;;  %s4426_s27 = int_to_ptr.hbm [resolvable:$true] %s4425_s27 }
 0xa77   : > { %v2591_v19 = vmul.f32 %v2580_v14, %v2567_v16  ;;  %2849 = vmatpush.bf16.msra.mxu0 %v3592_v27  ;;  %v3589_v16 = vld [vmem:[#allocation26] sm:$0xff]  ;;  %s4427_s18 = scalar_lea.hbm %s4426_s27, 16  ;;  %p4432_p8 = scmp.lt.s32.totalorder %s4426_s27, %s5253_s25 }
 0xa78   : > { %p4428_p5 = scmp.ne.s32.totalorder %s4426_s27, %s4427_s18  ;;  %p4433_p9 = scmp.lt.s32.totalorder %s4431_s5, %s4427_s18 }
 0xa79   : > { %v3896_v10 = vpop.eup %3895  ;;  %v2596_v26 = vmul.f32 %v3835_v20, %v2591_v19 }
 0xa7a   : > { %v2582_v62 = vmul.f32 %v3896_v10, %v2570_v3  ;;  %vm2588_vm13 = vweird.f32 %v3896_v10  ;;  %p4429_p12 = pnand %p4428_p5, %p4820_p4  ;;  %p4434_p10 = por %p4433_p9, %p4432_p8 }
 0xa7b   : > { %vm2589_vm15 = vmor %vm2587_vm14, %vm2588_vm13  ;;  %v2601_v29 = vadd.f32 %v3836_v22, %v2596_v26  ;;  %2850 = vmatpush.bf16.msra.mxu0 %v3591_v57 }
 0xa7c   : > { %v2583_v37 = vmul.f32 %v3896_v10, %v2582_v62  ;;  %p4430_p7 = pneg %p4429_p12 }
 0xa7e   : > { %v2584_v61 = vmul.f32 0.5, %v2583_v37  ;;  %p4435_p13 = pnand %p4434_p10, %p4430_p7 }
 0xa80   : > { %v2585_v17 = vsub.f32 1.5, %v2584_v61 }
 0xa82   : > { %v2586_v12 = vmul.f32 %v3896_v10, %v2585_v17 }
 0xa84   : > { %v2590_v7 = vsel %vm2589_vm15, %v3896_v10, %v2586_v12  ;;  %v3590_v10 = vld [vmem:[#allocation26 + $0x8] sm:$0xff] }
 0xa85   : > { %v2592_v24 = vmul.f32 %v2590_v7, %v2568_v23  ;;  %2851 = vmatpush.bf16.msra.mxu0 %v3590_v10 }
 0xa87   : > { %v2597_v28 = vmul.f32 %v3835_v20, %v2592_v24 }
 0xa89   : > { %v2602_v6 = vadd.f32 %v3836_v22, %v2597_v28  ;;  %2852 = vmatpush.bf16.msra.mxu0 %v3589_v16 }
 0xa8b   : > { %v2603_v21 = vpack.c.bf16 %v2602_v6, %v2601_v29 }
 0xa8d   : > { %2682 = vmatmul.bf16.vlgmr.msra.gmra.mxu1 %v2603_v21 }
 0xae6   : > { %v1907_v25 = vpop.permute.xlu0 %1906 }
 0xae7   : > { %v1912_v33 = vsel %vm1910_vm3, %v1907_v25, 0.0 }
 0xae8   : > { %v1913_v18 = vadd.f32 %v1912_v33, %v1911_v52 }
 0xaea   : > { %1914 = vadd.xlane.f32.xlu1 %v1913_v18 }
 0xb0a   : > { %v2683_v31 = vpop.f32.mrf.mxu1 }
 0xb0b   : > { %v5122_v39 = vadd.f32 %v3837_v38, %v2683_v31 }
 0xb0d   : > { %v5125_v41 = vmul.f32 0.70710677, %v5122_v39 }
 0xb0f   : > { %v2692_v42 = vmul.f32 %v5125_v41, %v5125_v41 }
 0xb11   : > { %v2693_v35 = vmin.f32 %v2692_v42, 16.0 }
 0xb12   : > { %v2685_v48 = vpop.f32.mrf.mxu1 }
 0xb13   : > { %v2694_v49 = vmul.f32 2.1237322e-06, %v2693_v35  ;;  %v2705_v51 = vmul.f32 3.8918573e-05, %v2693_v35  ;;  %v5129_v11 = vadd.f32 %v3837_v38, %v2685_v48 }
 0xb15   : > { %v2695_v32 = vadd.f32 0.00028619796, %v2694_v49  ;;  %v2706_v36 = vadd.f32 0.001143296, %v2705_v51  ;;  %v5132_v15 = vmul.f32 0.70710677, %v5129_v11 }
 0xb17   : > { %v2707_v53 = vmul.f32 %v2706_v36, %v2693_v35  ;;  %v2732_v54 = vmul.f32 %v5132_v15, %v5132_v15  ;;  %v2696_v58 = vmul.f32 %v2695_v32, %v2693_v35 }
 0xb19   : > { %v2708_v59 = vadd.f32 0.014752088, %v2707_v53  ;;  %v2733_v34 = vmin.f32 %v2732_v54, 16.0  ;;  %v2697_v63 = vadd.f32 0.0036580483, %v2696_v58 }
 0xb1b   : > { %v2709_v50 = vmul.f32 %v2708_v59, %v2693_v35  ;;  %v2734_v60 = vmul.f32 2.1237322e-06, %v2733_v34  ;;  %v2745_v46 = vmul.f32 3.8918573e-05, %v2733_v34  ;;  %v2698_v5 = vmul.f32 %v2697_v63, %v2693_v35 }
 0xb1c   : > { %v2689_v63 = vmul.f32 0.5, %v5129_v11  ;;  %v3838_v11 = vld [vmem:[#allocation28] ss:$0 sm:$0xff] }
 0xb1d   : > { %v2710_v0 = vadd.f32 0.112945676, %v2709_v50  ;;  %v2735_v47 = vadd.f32 0.00028619796, %v2734_v60  ;;  %v2746_v43 = vadd.f32 0.001143296, %v2745_v46 }
 0xb1e   : > { %v2699_v62 = vadd.f32 0.05243302, %v2698_v5  ;;  %v2688_v46 = vmul.f32 0.5, %v5122_v39 }
 0xb1f   : > { %v2711_v1 = vmul.f32 %v2710_v0, %v2693_v35  ;;  %v2736_v2 = vmul.f32 %v2735_v47, %v2733_v34  ;;  %v2747_v4 = vmul.f32 %v2746_v43, %v2733_v34 }
 0xb20   : > { %v2700_v19 = vmul.f32 %v2699_v62, %v2693_v35 }
 0xb21   : > { %v2712_v3 = vadd.f32 0.4994258, %v2711_v1  ;;  %v2737_v8 = vadd.f32 0.0036580483, %v2736_v2  ;;  %v2748_v9 = vadd.f32 0.014752088, %v2747_v4 }
 0xb22   : > { %v2701_v24 = vadd.f32 0.18741608, %v2700_v19 }
 0xb23   : > { %v2713_v56 = vmul.f32 %v2712_v3, %v2693_v35  ;;  %v2749_v40 = vmul.f32 %v2748_v9, %v2733_v34  ;;  %v2738_v14 = vmul.f32 %v2737_v8, %v2733_v34 }
 0xb24   : > { %v2702_v6 = vmul.f32 %v2701_v24, %v2693_v35 }
 0xb25   : > { %v2714_v37 = vadd.f32 1.0, %v2713_v56  ;;  %v2750_v61 = vadd.f32 0.112945676, %v2749_v40  ;;  %v2739_v20 = vadd.f32 0.05243302, %v2738_v14 }
 0xb26   : > { %v2703_v18 = vadd.f32 1.1283791, %v2702_v6 }
 0xb27   : > { %3897 = vrcp.f32 %v2714_v37  ;;  %v2751_v17 = vmul.f32 %v2750_v61, %v2733_v34  ;;  %v2740_v22 = vmul.f32 %v2739_v20, %v2733_v34  ;;  %v2726_v30 = vand.u32 2147483648, %v2714_v37 }
 0xb28   : > { %v2724_v52 = vand.u32 2147483647, %v2714_v37  ;;  %vm2720_vm0 = vweird.f32 %v2714_v37  ;;  %v2704_v49 = vmul.f32 %v2703_v18, %v5125_v41 }
 0xb29   : > { %v2752_v12 = vadd.f32 0.4994258, %v2751_v17  ;;  %v2741_v25 = vadd.f32 0.18741608, %v2740_v22  ;;  %v2727_v13 = vor.u32 1.1754944e-38, %v2726_v30 }
 0xb2a   : > { %vm2725_vm2 = vcmp.eq.f32.partialorder %v2724_v52, 8.507059e+37 }
 0xb2b   : > { %v2753_v23 = vmul.f32 %v2752_v12, %v2733_v34  ;;  %v2742_v42 = vmul.f32 %v2741_v25, %v2733_v34 }
 0xb2d   : > { %v3898_v7 = vpop.eup %3897  ;;  %v2754_v28 = vadd.f32 1.0, %v2753_v23  ;;  %v2743_v35 = vadd.f32 1.1283791, %v2742_v42 }
 0xb2e   : > { %v2716_v26 = vmul.f32 %v3898_v7, %v2714_v37  ;;  %vm2721_vm3 = vweird.f32 %v3898_v7 }
 0xb2f   : > { %3899 = vrcp.f32 %v2754_v28  ;;  %vm2722_vm1 = vmor %vm2720_vm0, %vm2721_vm3  ;;  %v2766_v55 = vand.u32 2147483648, %v2754_v28  ;;  %v2764_v53 = vand.u32 2147483647, %v2754_v28  ;;  %vm2760_vm5 = vweird.f32 %v2754_v28 }
 0xb30   : > { %v2717_v29 = vsub.f32 1.0, %v2716_v26  ;;  %v2744_v59 = vmul.f32 %v2743_v35, %v5132_v15 }
 0xb31   : > { %v2767_v54 = vor.u32 1.1754944e-38, %v2766_v55  ;;  %vm2765_vm7 = vcmp.eq.f32.partialorder %v2764_v53, 8.507059e+37 }
 0xb32   : > { %v2718_v21 = vmul.f32 %v3898_v7, %v2717_v29 }
 0xb34   : > { %v2719_v33 = vadd.f32 %v3898_v7, %v2718_v21 }
 0xb35   : > { %v3900_v38 = vpop.eup %3899 }
 0xb36   : > { %v2723_v31 = vsel %vm2722_vm1, %v3898_v7, %v2719_v33  ;;  %v2756_v44 = vmul.f32 %v3900_v38, %v2754_v28  ;;  %vm2761_vm4 = vweird.f32 %v3900_v38 }
 0xb37   : > { %v2728_v48 = vsel %vm2725_vm2, %v2727_v13, %v2723_v31  ;;  %vm2762_vm6 = vmor %vm2760_vm5, %vm2761_vm4 }
 0xb38   : > { %v2757_v51 = vsub.f32 1.0, %v2756_v44  ;;  %v2729_v32 = vmul.f32 %v2728_v48, %v2704_v49 }
 0xb3a   : > { %v2758_v36 = vmul.f32 %v3900_v38, %v2757_v51  ;;  %v3480_v58 = vclamps-f32 %v2729_v32, 1.0 }
 0xb3c   : > { %v2759_v45 = vadd.f32 %v3900_v38, %v2758_v36  ;;  %v2772_v60 = vadd.f32 1.0, %v3480_v58 }
 0xb3e   : > { %v2763_v34 = vsel %vm2762_vm6, %v3900_v38, %v2759_v45  ;;  %v2774_v47 = vmul.f32 %v2772_v60, %v2688_v46 }
 0xb3f   : > { %v2768_v50 = vsel %vm2765_vm7, %v2767_v54, %v2763_v34 }
 0xb40   : > { %v2769_v27 = vmul.f32 %v2768_v50, %v2744_v59 }
 0xb42   : > { %v3481_v41 = vclamps-f32 %v2769_v27, 1.0 }
 0xb44   : > { %v2773_v0 = vadd.f32 1.0, %v3481_v41 }
 0xb46   : > { %v2775_v43 = vmul.f32 %v2773_v0, %v2689_v63 }
 0xb48   : > { %v2776_v1 = vpack.c.bf16 %v2775_v43, %v2774_v47 }
 0xb4a   : > { %2853 = vmatmul.bf16.vlgmr.msra.gmra.mxu0 %v2776_v1 }
 0xb5d   : > { %v1915_v57 = vpop.xlane.xlu1 %1914 }
 0xb5e   : > { %v1916_v15 = vrot.slane %v1915_v57, 4 }
 0xb60   : > { %v1917_v2 = vadd.f32 %v1916_v15, %v1915_v57 }
 0xb62   : > { %v1918_v4 = vrot.slane %v1917_v2, 2 }
 0xb64   : > { %v1919_v5 = vadd.f32 %v1918_v4, %v1917_v2 }
 0xb66   : > { %v1920_v3 = vrot.slane %v1919_v5, 1 }
 0xb68   : > { %v1921_v8 = vadd.f32 %v1920_v3, %v1919_v5 }
 0xb6a   : > { %3598 = vpush %v1921_v8 }
 0xb9b   : > { %s3599_s10 = spop %3598 }
 0xb9c   : > { %v1923_v39 = vstv %s3599_s10 }
 0xb9d   : > { %1924 = vst [vmem:[%s913_s1] sm:$0xff] %v1923_v39 }
 0xbc7   : > { %v2854_v9 = vpop.f32.mrf.mxu0 }
 0xbc8   : > { %v2855_v56 = vadd.f32 %v3838_v11, %v2854_v9 }
 0xbca   : > { %2859 = vst [vmem:[%s895_s9] sm:$0xff] %v2855_v56 }
 0xbcf   : > { %v2856_v10 = vpop.f32.mrf.mxu0 }
 0xbd0   : > { %v2857_v40 = vadd.f32 %v3838_v11, %v2856_v10 }
 0xbd2   : > { %2860 = vst [vmem:[%s895_s9 + $0x8] sm:$0xff] %v2857_v40 }
 0xbd3   : > { %4438 = shalt.err (!%p4435_p13)
}
 0xbd4   : > { %s4535_s9 = smov 128   ;;  %s4536_s29 = smov 8  }
 0xbd5   : > { %3666 = dma.vmem_to_hbm [thread:$0]  (%p4820_p4), %s2879_s23, 256, %s2881_s11, %s2862_s28, %s4535_s9, %s4535_s9, %s4536_s29  }
 0xbd6 PF: > { %s5254_s6 = sld [smem:[#allocation40_spill]]  ;;  %p5255_p11 = scmp.ge.s32.totalorder %s4509_s21, 2 }
 0xbd8   : > { %p3722_p0 = pnand %p5255_p11, %p4824_p6 }
 0xbda   : > { %p3723_p2 = pneg %p3722_p0 }
 0xbdc   : > { %s2898_s22 = sand.u32 1, %s5254_s6  }
 0xbdd   : > { %s2899_s26 = scalar_lea.sflag [#allocation4], %s2898_s22 }
 0xbde   : > { %4492 = dma.done.wait (%p3723_p2), %s2899_s26, 256  }
 0xbdf   : > { %4494 = vsyncadd (%p3723_p2), %s2899_s26, 4294967040  ;;  %p41_p3 = scmp.ge.s32.totalorder %s4794_s4, 4   ;;  %s5256_s0 = smov %s4501_s30 }
 0xbe0   : > { %s5257_s30 = smov %s4505_s20  ;;  %s5258_s20 = smov %s4805_s2 }
 0xbe1   : > { %s5259_s21 = smov %s4794_s4  ;;  %43 = sbr.rel (!%p41_p3) target bundleno = 28 (0x1c), region = 232 }
 0xbe6   :  { %2912 = vsyncpa [#allocation3], 1 }
 0xbe7   :  { %2914 = vsyncpa [#allocation3 + $0x1], 1 }
 0xbe8   :  { %2915 = vsyncpa [#allocation6], 1 }
 0xbe9   :  { %2916 = vsyncpa [#allocation9], 1 }
 0xbea   :  { %2917 = vsyncpa [#allocation12], 1 }
 0xbeb   :  { %2918 = vsyncpa [#allocation15], 1 }
 0xbec   :  { %2919 = vsyncpa [#allocation18], 1 }
 0xbed   :  { %2920 = vsyncpa [#allocation21], 1 }
 0xbee   :  { %2921 = vsyncpa [#allocation24], 1 }
 0xbef   :  { %2922 = vsyncpa [#allocation27], 1 }
 0xbf0   :  { %2923 = vsyncpa [#allocation4], 1 }
 0xbf1   :  { %2925 = vsyncpa [#allocation4 + $0x1], 1 }

</bundles_post_ra>
